<compile_context>
chip_gen: v6e
topology: v6e:2x2x1
jax: 0.10.0
libtpu: 0.0.40
codegen_flags: <defaults>
</compile_context>

<pallas_src>
import functools

import numpy as np
import jax
import jax.numpy as jnp
from jax.experimental import pallas as pl
from jax.experimental.pallas import tpu as pltpu

BN_EPS = 1e-5


# ---------------------------------------------------------------------------
# Fused kernel
# ---------------------------------------------------------------------------
def _dcnet_kernel(*refs, N, H, W, K, F, cins, use_bn):
    """Fused DCNet forward pass.

    Ref layout (nl = number of conv layers):
      refs[0]                 x        (N, H, W*Cin0)        f32
      refs[1+2l] / refs[2+2l] wband_l  (K, W*Cin_l, W*F)     bf16
                              vec_l    (3, F)                f32  [bias; gamma; beta]
      refs[1+2nl]             lw       (F, classes)          f32
      refs[2+2nl]             lb       (1, classes)          f32
      refs[3+2nl]             out      (N, classes)          f32
      refs[4+2nl:]            per-layer padded activation scratch (N, H+2p, W*Cin_l) f32
    """
    nl = len(cins)
    x_ref = refs[0]
    w_refs = [refs[1 + 2 * l] for l in range(nl)]
    v_refs = [refs[2 + 2 * l] for l in range(nl)]
    lw_ref = refs[1 + 2 * nl]
    lb_ref = refs[2 + 2 * nl]
    out_ref = refs[3 + 2 * nl]
    pad_refs = list(refs[4 + 2 * nl:])

    p = (K - 1) // 2
    Hp = H + 2 * p
    WF = W * F

    # 0/1 group matrices mapping the lane-tiled (W*F) axis <-> per-channel (F) axis.
    #   G  (W*F, F): sums the W spatial copies of each channel (stats reduction)
    #   GT (F, W*F): tiles a per-channel vector across the W groups (affine bcast)
    G = (jax.lax.broadcasted_iota(jnp.int32, (WF, F), 0) % F
         == jax.lax.broadcasted_iota(jnp.int32, (WF, F), 1)).astype(jnp.float32)
    GT = (jax.lax.broadcasted_iota(jnp.int32, (F, WF), 1) % F
          == jax.lax.broadcasted_iota(jnp.int32, (F, WF), 0)).astype(jnp.float32)

    cur = x_ref[...].astype(jnp.float32)                    # (N, H, W*Cin0)

    for l in range(nl):
        wc = W * cins[l]
        pad_ref = pad_refs[l]

        # 'same' padding along H, entirely in VMEM.
        pad_ref[...] = jnp.zeros((N, Hp, wc), jnp.float32)
        pad_ref[:, p:p + H, :] = cur

        # Convolution: K lane-dense matmuls (contraction = W*Cin, output = W*F).
        acc = jnp.zeros((N * H, WF), jnp.float32)
        for kh in range(K):
            lhs = pad_ref[:, kh:kh + H, :].reshape(N * H, wc).astype(jnp.bfloat16)
            acc = acc + jnp.dot(lhs, w_refs[l][kh],
                                preferred_element_type=jnp.float32)

        # Bias + ReLU.
        bias_t = jnp.dot(v_refs[l][0:1, :], GT, preferred_element_type=jnp.float32)
        y = jnp.maximum(acc + bias_t, 0.0)

        if use_bn:
            # Single-pass batch statistics over (N, H, W) per channel.
            cnt = float(N * H * W)
            mean = jnp.dot(jnp.sum(y, axis=0, keepdims=True), G,
                           preferred_element_type=jnp.float32) / cnt       # (1, F)
            ex2 = jnp.dot(jnp.sum(y * y, axis=0, keepdims=True), G,
                          preferred_element_type=jnp.float32) / cnt        # (1, F)
            var = ex2 - mean * mean                                        # biased var
            scale = v_refs[l][1:2, :] * jax.lax.rsqrt(var + BN_EPS)        # gamma / std
            shift = v_refs[l][2:3, :] - mean * scale                       # beta - mean*scale
            y = (y * jnp.dot(scale, GT, preferred_element_type=jnp.float32)
                 + jnp.dot(shift, GT, preferred_element_type=jnp.float32))

        cur = y.reshape(N, H, WF)                            # lane-dense handoff

    # Global max-pool over (H, W): reduce H (sublane axis), then the W lane-groups.
    mh = jnp.max(cur, axis=1)                                # (N, W*F)
    pooled = mh[:, 0:F]
    for j in range(1, W):
        pooled = jnp.maximum(pooled, mh[:, j * F:(j + 1) * F])

    # Final Linear (tiny; kept in f32).
    out_ref[...] = (jnp.dot(pooled, lw_ref[...], preferred_element_type=jnp.float32)
                    + lb_ref[...])


# ---------------------------------------------------------------------------
# Wrapper: weight preprocessing + pallas_call
# ---------------------------------------------------------------------------
def _banded_conv_weight(w, width):
    """(K, K, Cin, F) conv weight -> (K, W*Cin, W*F) width-banded matrices (bf16).

    Band (j_in, j_out) of matrix kh is w[kh, kw] with j_in = j_out + kw - pad;
    out-of-range taps are dropped, which implements the W-axis zero padding.
    """
    K, _, cin, f = w.shape
    pad = (K - 1) // 2
    sel = np.zeros((K, width, width), np.float32)
    for kw in range(K):
        for j_out in range(width):
            j_in = j_out + kw - pad
            if 0 <= j_in < width:
                sel[kw, j_in, j_out] = 1.0
    wb = jnp.einsum("wio,hwcf->hicof", jnp.asarray(sel), w.astype(jnp.float32))
    return wb.reshape(K, width * cin, width * f).astype(jnp.bfloat16)


def dcnet_forward(x_nchw, conv_params, linear_params, *, batchnorm=True):
    N, C0, H, W = x_nchw.shape
    K = conv_params[0][0].shape[0]
    F = conv_params[0][0].shape[3]
    assert K % 2 == 1, "only odd kernel_size reproduces PyTorch's symmetric padding"
    p = (K - 1) // 2

    # NCHW -> lane-dense (N, H, W*C) slab (input layout plumbing, done once).
    x = jnp.transpose(x_nchw, (0, 2, 3, 1)).reshape(N, H, W * C0).astype(jnp.float32)

    inputs = [x]
    cins = []
    for (w, b, gamma, beta) in conv_params:
        assert w.shape[0] == K and w.shape[3] == F
        cins.append(w.shape[2])
        inputs.append(_banded_conv_weight(w, W))
        inputs.append(jnp.stack([b, gamma, beta], axis=0).astype(jnp.float32))

    lw, lb = linear_params
    classes = lw.shape[1]
    inputs.append(lw.astype(jnp.float32))
    inputs.append(lb.reshape(1, classes).astype(jnp.float32))

    kern = functools.partial(_dcnet_kernel, N=N, H=H, W=W, K=K, F=F,
                             cins=tuple(cins), use_bn=batchnorm)
    return pl.pallas_call(
        kern,
        out_shape=jax.ShapeDtypeStruct((N, classes), jnp.float32),
        in_specs=[pl.BlockSpec(memory_space=pltpu.MemorySpace.VMEM)] * len(inputs),
        out_specs=pl.BlockSpec(memory_space=pltpu.MemorySpace.VMEM),
        scratch_shapes=[pltpu.VMEM((N, H + 2 * p, W * c), jnp.float32) for c in cins],
        compiler_params=pltpu.CompilerParams(vmem_limit_bytes=32 * 1024 * 1024),
    )(*inputs)


# ---------------------------------------------------------------------------
# Deterministic parameter init (PyTorch-equivalent shapes in kernel layout).
# ---------------------------------------------------------------------------
def init_params(key, channels, num_layers, num_filters, kernel_size, classes):
    conv_params = []
    c_in = channels
    for _ in range(num_layers):
        key, k1, k2 = jax.random.split(key, 3)
        w = jax.random.normal(
            k1, (kernel_size, kernel_size, c_in, num_filters), jnp.float32) * 0.1
        b = jax.random.normal(k2, (num_filters,), jnp.float32) * 0.1
        gamma = jnp.ones((num_filters,), jnp.float32)    # BatchNorm2d defaults
        beta = jnp.zeros((num_filters,), jnp.float32)
        conv_params.append((w, b, gamma, beta))
        c_in = num_filters
    key, k1, k2 = jax.random.split(key, 3)
    lw = jax.random.normal(k1, (c_in, classes), jnp.float32) * 0.1
    lb = jax.random.normal(k2, (classes,), jnp.float32) * 0.1
    return conv_params, (lw, lb)


if __name__ == "__main__":
    # DCNet(image_size=16, channels=4, num_layers=2, num_filters=32,
    #       kernel_size=3, classes=10, batchnorm=True)
    image_size, channels, num_layers = 16, 4, 2
    num_filters, kernel_size, classes = 32, 3, 10
    batch = 2

    key = jax.random.PRNGKey(0)
    key, kx, kp = jax.random.split(key, 3)
    x = jax.random.normal(kx, (batch, channels, image_size, image_size),
                          jnp.float32)                  # NCHW, like PyTorch
    conv_params, linear_params = init_params(
        kp, channels, num_layers, num_filters, kernel_size, classes)

    fwd = jax.jit(functools.partial(dcnet_forward, batchnorm=True))
    out = fwd(x, conv_params, linear_params)
    jax.block_until_ready(out)
    assert out.shape == (batch, classes)
    print("KERNEL_OK")
</pallas_src>

<mosaic_0001>
module attributes {stable_mosaic.version = 11 : i64} {
  func.func @_dcnet_kernel(%arg0: memref<2x16x64xf32, #tpu.memory_space<vmem>>, %arg1: memref<3x64x512xbf16, #tpu.memory_space<vmem>>, %arg2: memref<3x32xf32, #tpu.memory_space<vmem>>, %arg3: memref<3x512x512xbf16, #tpu.memory_space<vmem>>, %arg4: memref<3x32xf32, #tpu.memory_space<vmem>>, %arg5: memref<32x10xf32, #tpu.memory_space<vmem>>, %arg6: memref<1x10xf32, #tpu.memory_space<vmem>>, %arg7: memref<2x10xf32, #tpu.memory_space<vmem>>, %arg8: memref<2x18x64xf32, #tpu.memory_space<vmem>>, %arg9: memref<2x18x512xf32, #tpu.memory_space<vmem>>) attributes {dimension_semantics = [], scalar_prefetch = 0 : i64, scratch_operands = 2 : i64, tpu.core_type = #tpu.core_type<tc>} {
    %0 = tpu.iota {dimensions = array<i32: 0>} : vector<512x32xi32>
    %c32_i32 = arith.constant 32 : i32
    %c0_i32 = arith.constant 0 : i32
    %1 = arith.cmpi eq, %c32_i32, %c0_i32 : i32
    %c1_i32 = arith.constant 1 : i32
    %2 = arith.select %1, %c1_i32, %c32_i32 : i32
    %3 = vector.broadcast %2 : i32 to vector<512x32xi32>
    %4 = arith.remsi %0, %3 : vector<512x32xi32>
    %c0_i32_0 = arith.constant 0 : i32
    %5 = vector.broadcast %c0_i32_0 : i32 to vector<512x32xi32>
    %6 = arith.cmpi ne, %4, %5 : vector<512x32xi32>
    %c0_i32_1 = arith.constant 0 : i32
    %7 = vector.broadcast %c0_i32_1 : i32 to vector<512x32xi32>
    %8 = arith.cmpi slt, %4, %7 : vector<512x32xi32>
    %c0_i32_2 = arith.constant 0 : i32
    %9 = arith.cmpi slt, %2, %c0_i32_2 : i32
    %10 = vector.broadcast %9 : i1 to vector<512x32xi1>
    %11 = vector.broadcast %10 : vector<512x32xi1> to vector<512x32xi1>
    %12 = arith.xori %8, %11 : vector<512x32xi1>
    %13 = arith.andi %12, %6 : vector<512x32xi1>
    %14 = vector.broadcast %2 : i32 to vector<512x32xi32>
    %15 = arith.addi %4, %14 : vector<512x32xi32>
    %16 = arith.select %13, %15, %4 : vector<512x32xi1>, vector<512x32xi32>
    %17 = tpu.iota {dimensions = array<i32: 1>} : vector<512x32xi32>
    %18 = arith.cmpi eq, %16, %17 : vector<512x32xi32>
    %19 = arith.extui %18 : vector<512x32xi1> to vector<512x32xi32>
    %20 = arith.sitofp %19 : vector<512x32xi32> to vector<512x32xf32>
    %21 = tpu.iota {dimensions = array<i32: 1>} : vector<32x512xi32>
    %c32_i32_3 = arith.constant 32 : i32
    %c0_i32_4 = arith.constant 0 : i32
    %22 = arith.cmpi eq, %c32_i32_3, %c0_i32_4 : i32
    %c1_i32_5 = arith.constant 1 : i32
    %23 = arith.select %22, %c1_i32_5, %c32_i32_3 : i32
    %24 = vector.broadcast %23 : i32 to vector<32x512xi32>
    %25 = arith.remsi %21, %24 : vector<32x512xi32>
    %c0_i32_6 = arith.constant 0 : i32
    %26 = vector.broadcast %c0_i32_6 : i32 to vector<32x512xi32>
    %27 = arith.cmpi ne, %25, %26 : vector<32x512xi32>
    %c0_i32_7 = arith.constant 0 : i32
    %28 = vector.broadcast %c0_i32_7 : i32 to vector<32x512xi32>
    %29 = arith.cmpi slt, %25, %28 : vector<32x512xi32>
    %c0_i32_8 = arith.constant 0 : i32
    %30 = arith.cmpi slt, %23, %c0_i32_8 : i32
    %31 = vector.broadcast %30 : i1 to vector<32x512xi1>
    %32 = vector.broadcast %31 : vector<32x512xi1> to vector<32x512xi1>
    %33 = arith.xori %29, %32 : vector<32x512xi1>
    %34 = arith.andi %33, %27 : vector<32x512xi1>
    %35 = vector.broadcast %23 : i32 to vector<32x512xi32>
    %36 = arith.addi %25, %35 : vector<32x512xi32>
    %37 = arith.select %34, %36, %25 : vector<32x512xi1>, vector<32x512xi32>
    %38 = tpu.iota {dimensions = array<i32: 0>} : vector<32x512xi32>
    %39 = arith.cmpi eq, %37, %38 : vector<32x512xi32>
    %40 = arith.extui %39 : vector<32x512xi1> to vector<32x512xi32>
    %41 = arith.sitofp %40 : vector<32x512xi32> to vector<32x512xf32>
    %c0 = arith.constant 0 : index
    %c0_9 = arith.constant 0 : index
    %c0_10 = arith.constant 0 : index
    %42 = vector.load %arg0[%c0, %c0_9, %c0_10] : memref<2x16x64xf32, #tpu.memory_space<vmem>>, vector<2x16x64xf32>
    %cst = arith.constant 0.000000e+00 : f32
    %43 = vector.broadcast %cst : f32 to vector<2x18x64xf32>
    %c0_11 = arith.constant 0 : index
    %c0_12 = arith.constant 0 : index
    %c0_13 = arith.constant 0 : index
    %44 = vector.load %arg8[%c0_11, %c0_12, %c0_13] : memref<2x18x64xf32, #tpu.memory_space<vmem>>, vector<2x18x64xf32>
    tpu.vector_store %arg8[%c0_11, %c0_12, %c0_13], %43 {strides = array<i32>} : memref<2x18x64xf32, #tpu.memory_space<vmem>>, vector<2x18x64xf32>,
    %c0_14 = arith.constant 0 : index
    %c1 = arith.constant 1 : index
    %c0_15 = arith.constant 0 : index
    %45 = vector.load %arg8[%c0_14, %c1, %c0_15] : memref<2x18x64xf32, #tpu.memory_space<vmem>>, vector<2x16x64xf32>
    tpu.vector_store %arg8[%c0_14, %c1, %c0_15], %42 {strides = array<i32>} : memref<2x18x64xf32, #tpu.memory_space<vmem>>, vector<2x16x64xf32>,
    %cst_16 = arith.constant 0.000000e+00 : f32
    %46 = vector.broadcast %cst_16 : f32 to vector<32x512xf32>
    %c0_17 = arith.constant 0 : index
    %c0_18 = arith.constant 0 : index
    %c0_19 = arith.constant 0 : index
    %47 = vector.load %arg8[%c0_17, %c0_18, %c0_19] : memref<2x18x64xf32, #tpu.memory_space<vmem>>, vector<2x16x64xf32>
    %48 = vector.shape_cast %47 : vector<2x16x64xf32> to vector<32x64xf32>
    %49 = arith.truncf %48 : vector<32x64xf32> to vector<32x64xbf16>
    %c0_20 = arith.constant 0 : index
    %c0_21 = arith.constant 0 : index
    %c0_22 = arith.constant 0 : index
    %50 = vector.load %arg1[%c0_20, %c0_21, %c0_22] : memref<3x64x512xbf16, #tpu.memory_space<vmem>>, vector<1x64x512xbf16>
    %51 = vector.shape_cast %50 : vector<1x64x512xbf16> to vector<64x512xbf16>
    %cst_23 = arith.constant dense<0.000000e+00> : vector<32x512xf32>
    %52 = tpu.matmul %49, %51, %cst_23 {dimension_numbers = #tpu.dot_dimension_numbers<[1], [0], [0], [1], [0, 0, 1, 1], [], []>} : vector<32x64xbf16>, vector<64x512xbf16>, vector<32x512xf32> -> vector<32x512xf32>
    %53 = arith.addf %46, %52 : vector<32x512xf32>
    %c0_24 = arith.constant 0 : index
    %c1_25 = arith.constant 1 : index
    %c0_26 = arith.constant 0 : index
    %54 = vector.load %arg8[%c0_24, %c1_25, %c0_26] : memref<2x18x64xf32, #tpu.memory_space<vmem>>, vector<2x16x64xf32>
    %55 = vector.shape_cast %54 : vector<2x16x64xf32> to vector<32x64xf32>
    %56 = arith.truncf %55 : vector<32x64xf32> to vector<32x64xbf16>
    %c1_27 = arith.constant 1 : index
    %c0_28 = arith.constant 0 : index
    %c0_29 = arith.constant 0 : index
    %57 = vector.load %arg1[%c1_27, %c0_28, %c0_29] : memref<3x64x512xbf16, #tpu.memory_space<vmem>>, vector<1x64x512xbf16>
    %58 = vector.shape_cast %57 : vector<1x64x512xbf16> to vector<64x512xbf16>
    %cst_30 = arith.constant dense<0.000000e+00> : vector<32x512xf32>
    %59 = tpu.matmul %56, %58, %cst_30 {dimension_numbers = #tpu.dot_dimension_numbers<[1], [0], [0], [1], [0, 0, 1, 1], [], []>} : vector<32x64xbf16>, vector<64x512xbf16>, vector<32x512xf32> -> vector<32x512xf32>
    %60 = arith.addf %53, %59 : vector<32x512xf32>
    %c0_31 = arith.constant 0 : index
    %c2 = arith.constant 2 : index
    %c0_32 = arith.constant 0 : index
    %61 = vector.load %arg8[%c0_31, %c2, %c0_32] : memref<2x18x64xf32, #tpu.memory_space<vmem>>, vector<2x16x64xf32>
    %62 = vector.shape_cast %61 : vector<2x16x64xf32> to vector<32x64xf32>
    %63 = arith.truncf %62 : vector<32x64xf32> to vector<32x64xbf16>
    %c2_33 = arith.constant 2 : index
    %c0_34 = arith.constant 0 : index
    %c0_35 = arith.constant 0 : index
    %64 = vector.load %arg1[%c2_33, %c0_34, %c0_35] : memref<3x64x512xbf16, #tpu.memory_space<vmem>>, vector<1x64x512xbf16>
    %65 = vector.shape_cast %64 : vector<1x64x512xbf16> to vector<64x512xbf16>
    %cst_36 = arith.constant dense<0.000000e+00> : vector<32x512xf32>
    %66 = tpu.matmul %63, %65, %cst_36 {dimension_numbers = #tpu.dot_dimension_numbers<[1], [0], [0], [1], [0, 0, 1, 1], [], []>} : vector<32x64xbf16>, vector<64x512xbf16>, vector<32x512xf32> -> vector<32x512xf32>
    %67 = arith.addf %60, %66 : vector<32x512xf32>
    %c0_37 = arith.constant 0 : index
    %c0_38 = arith.constant 0 : index
    %68 = vector.load %arg2[%c0_37, %c0_38] : memref<3x32xf32, #tpu.memory_space<vmem>>, vector<1x32xf32>
    %cst_39 = arith.constant dense<0.000000e+00> : vector<1x512xf32>
    %69 = tpu.matmul %68, %41, %cst_39 {dimension_numbers = #tpu.dot_dimension_numbers<[1], [0], [0], [1], [0, 0, 1, 1], [], []>} : vector<1x32xf32>, vector<32x512xf32>, vector<1x512xf32> -> vector<1x512xf32>
    %70 = vector.broadcast %69 : vector<1x512xf32> to vector<32x512xf32>
    %71 = arith.addf %67, %70 : vector<32x512xf32>
    %cst_40 = arith.constant 0.000000e+00 : f32
    %72 = vector.broadcast %cst_40 : f32 to vector<32x512xf32>
    %73 = arith.maximumf %71, %72 : vector<32x512xf32>
    %cst_41 = arith.constant dense<0.000000e+00> : vector<512xf32>
    %74 = vector.multi_reduction <add>, %73, %cst_41 [0] : vector<32x512xf32> to vector<512xf32>
    %75 = vector.shape_cast %74 : vector<512xf32> to vector<1x512xf32>
    %cst_42 = arith.constant dense<0.000000e+00> : vector<1x32xf32>
    %76 = tpu.matmul %75, %20, %cst_42 {dimension_numbers = #tpu.dot_dimension_numbers<[1], [0], [0], [1], [0, 0, 1, 1], [], []>} : vector<1x512xf32>, vector<512x32xf32>, vector<1x32xf32> -> vector<1x32xf32>
    %cst_43 = arith.constant 5.120000e+02 : f32
    %77 = vector.broadcast %cst_43 : f32 to vector<1x32xf32>
    %78 = arith.divf %76, %77 : vector<1x32xf32>
    %79 = arith.mulf %73, %73 : vector<32x512xf32>
    %cst_44 = arith.constant dense<0.000000e+00> : vector<512xf32>
    %80 = vector.multi_reduction <add>, %79, %cst_44 [0] : vector<32x512xf32> to vector<512xf32>
    %81 = vector.shape_cast %80 : vector<512xf32> to vector<1x512xf32>
    %cst_45 = arith.constant dense<0.000000e+00> : vector<1x32xf32>
    %82 = tpu.matmul %81, %20, %cst_45 {dimension_numbers = #tpu.dot_dimension_numbers<[1], [0], [0], [1], [0, 0, 1, 1], [], []>} : vector<1x512xf32>, vector<512x32xf32>, vector<1x32xf32> -> vector<1x32xf32>
    %cst_46 = arith.constant 5.120000e+02 : f32
    %83 = vector.broadcast %cst_46 : f32 to vector<1x32xf32>
    %84 = arith.divf %82, %83 : vector<1x32xf32>
    %85 = arith.mulf %78, %78 : vector<1x32xf32>
    %86 = arith.subf %84, %85 : vector<1x32xf32>
    %c1_47 = arith.constant 1 : index
    %c0_48 = arith.constant 0 : index
    %87 = vector.load %arg2[%c1_47, %c0_48] : memref<3x32xf32, #tpu.memory_space<vmem>>, vector<1x32xf32>
    %cst_49 = arith.constant 9.99999974E-6 : f32
    %88 = vector.broadcast %cst_49 : f32 to vector<1x32xf32>
    %89 = arith.addf %86, %88 : vector<1x32xf32>
    %90 = math.rsqrt %89 : vector<1x32xf32>
    %91 = arith.mulf %87, %90 : vector<1x32xf32>
    %c2_50 = arith.constant 2 : index
    %c0_51 = arith.constant 0 : index
    %92 = vector.load %arg2[%c2_50, %c0_51] : memref<3x32xf32, #tpu.memory_space<vmem>>, vector<1x32xf32>
    %93 = arith.mulf %78, %91 : vector<1x32xf32>
    %94 = arith.subf %92, %93 : vector<1x32xf32>
    %cst_52 = arith.constant dense<0.000000e+00> : vector<1x512xf32>
    %95 = tpu.matmul %91, %41, %cst_52 {dimension_numbers = #tpu.dot_dimension_numbers<[1], [0], [0], [1], [0, 0, 1, 1], [], []>} : vector<1x32xf32>, vector<32x512xf32>, vector<1x512xf32> -> vector<1x512xf32>
    %96 = vector.broadcast %95 : vector<1x512xf32> to vector<32x512xf32>
    %97 = arith.mulf %73, %96 : vector<32x512xf32>
    %cst_53 = arith.constant dense<0.000000e+00> : vector<1x512xf32>
    %98 = tpu.matmul %94, %41, %cst_53 {dimension_numbers = #tpu.dot_dimension_numbers<[1], [0], [0], [1], [0, 0, 1, 1], [], []>} : vector<1x32xf32>, vector<32x512xf32>, vector<1x512xf32> -> vector<1x512xf32>
    %99 = vector.broadcast %98 : vector<1x512xf32> to vector<32x512xf32>
    %100 = arith.addf %97, %99 : vector<32x512xf32>
    %101 = vector.shape_cast %100 : vector<32x512xf32> to vector<2x16x512xf32>
    %cst_54 = arith.constant 0.000000e+00 : f32
    %102 = vector.broadcast %cst_54 : f32 to vector<2x18x512xf32>
    %c0_55 = arith.constant 0 : index
    %c0_56 = arith.constant 0 : index
    %c0_57 = arith.constant 0 : index
    %103 = vector.load %arg9[%c0_55, %c0_56, %c0_57] : memref<2x18x512xf32, #tpu.memory_space<vmem>>, vector<2x18x512xf32>
    tpu.vector_store %arg9[%c0_55, %c0_56, %c0_57], %102 {strides = array<i32>} : memref<2x18x512xf32, #tpu.memory_space<vmem>>, vector<2x18x512xf32>,
    %c0_58 = arith.constant 0 : index
    %c1_59 = arith.constant 1 : index
    %c0_60 = arith.constant 0 : index
    %104 = vector.load %arg9[%c0_58, %c1_59, %c0_60] : memref<2x18x512xf32, #tpu.memory_space<vmem>>, vector<2x16x512xf32>
    tpu.vector_store %arg9[%c0_58, %c1_59, %c0_60], %101 {strides = array<i32>} : memref<2x18x512xf32, #tpu.memory_space<vmem>>, vector<2x16x512xf32>,
    %cst_61 = arith.constant 0.000000e+00 : f32
    %105 = vector.broadcast %cst_61 : f32 to vector<32x512xf32>
    %c0_62 = arith.constant 0 : index
    %c0_63 = arith.constant 0 : index
    %c0_64 = arith.constant 0 : index
    %106 = vector.load %arg9[%c0_62, %c0_63, %c0_64] : memref<2x18x512xf32, #tpu.memory_space<vmem>>, vector<2x16x512xf32>
    %107 = vector.shape_cast %106 : vector<2x16x512xf32> to vector<32x512xf32>
    %108 = arith.truncf %107 : vector<32x512xf32> to vector<32x512xbf16>
    %c0_65 = arith.constant 0 : index
    %c0_66 = arith.constant 0 : index
    %c0_67 = arith.constant 0 : index
    %109 = vector.load %arg3[%c0_65, %c0_66, %c0_67] : memref<3x512x512xbf16, #tpu.memory_space<vmem>>, vector<1x512x512xbf16>
    %110 = vector.shape_cast %109 : vector<1x512x512xbf16> to vector<512x512xbf16>
    %cst_68 = arith.constant dense<0.000000e+00> : vector<32x512xf32>
    %111 = tpu.matmul %108, %110, %cst_68 {dimension_numbers = #tpu.dot_dimension_numbers<[1], [0], [0], [1], [0, 0, 1, 1], [], []>} : vector<32x512xbf16>, vector<512x512xbf16>, vector<32x512xf32> -> vector<32x512xf32>
    %112 = arith.addf %105, %111 : vector<32x512xf32>
    %c0_69 = arith.constant 0 : index
    %c1_70 = arith.constant 1 : index
    %c0_71 = arith.constant 0 : index
    %113 = vector.load %arg9[%c0_69, %c1_70, %c0_71] : memref<2x18x512xf32, #tpu.memory_space<vmem>>, vector<2x16x512xf32>
    %114 = vector.shape_cast %113 : vector<2x16x512xf32> to vector<32x512xf32>
    %115 = arith.truncf %114 : vector<32x512xf32> to vector<32x512xbf16>
    %c1_72 = arith.constant 1 : index
    %c0_73 = arith.constant 0 : index
    %c0_74 = arith.constant 0 : index
    %116 = vector.load %arg3[%c1_72, %c0_73, %c0_74] : memref<3x512x512xbf16, #tpu.memory_space<vmem>>, vector<1x512x512xbf16>
    %117 = vector.shape_cast %116 : vector<1x512x512xbf16> to vector<512x512xbf16>
    %cst_75 = arith.constant dense<0.000000e+00> : vector<32x512xf32>
    %118 = tpu.matmul %115, %117, %cst_75 {dimension_numbers = #tpu.dot_dimension_numbers<[1], [0], [0], [1], [0, 0, 1, 1], [], []>} : vector<32x512xbf16>, vector<512x512xbf16>, vector<32x512xf32> -> vector<32x512xf32>
    %119 = arith.addf %112, %118 : vector<32x512xf32>
    %c0_76 = arith.constant 0 : index
    %c2_77 = arith.constant 2 : index
    %c0_78 = arith.constant 0 : index
    %120 = vector.load %arg9[%c0_76, %c2_77, %c0_78] : memref<2x18x512xf32, #tpu.memory_space<vmem>>, vector<2x16x512xf32>
    %121 = vector.shape_cast %120 : vector<2x16x512xf32> to vector<32x512xf32>
    %122 = arith.truncf %121 : vector<32x512xf32> to vector<32x512xbf16>
    %c2_79 = arith.constant 2 : index
    %c0_80 = arith.constant 0 : index
    %c0_81 = arith.constant 0 : index
    %123 = vector.load %arg3[%c2_79, %c0_80, %c0_81] : memref<3x512x512xbf16, #tpu.memory_space<vmem>>, vector<1x512x512xbf16>
    %124 = vector.shape_cast %123 : vector<1x512x512xbf16> to vector<512x512xbf16>
    %cst_82 = arith.constant dense<0.000000e+00> : vector<32x512xf32>
    %125 = tpu.matmul %122, %124, %cst_82 {dimension_numbers = #tpu.dot_dimension_numbers<[1], [0], [0], [1], [0, 0, 1, 1], [], []>} : vector<32x512xbf16>, vector<512x512xbf16>, vector<32x512xf32> -> vector<32x512xf32>
    %126 = arith.addf %119, %125 : vector<32x512xf32>
    %c0_83 = arith.constant 0 : index
    %c0_84 = arith.constant 0 : index
    %127 = vector.load %arg4[%c0_83, %c0_84] : memref<3x32xf32, #tpu.memory_space<vmem>>, vector<1x32xf32>
    %cst_85 = arith.constant dense<0.000000e+00> : vector<1x512xf32>
    %128 = tpu.matmul %127, %41, %cst_85 {dimension_numbers = #tpu.dot_dimension_numbers<[1], [0], [0], [1], [0, 0, 1, 1], [], []>} : vector<1x32xf32>, vector<32x512xf32>, vector<1x512xf32> -> vector<1x512xf32>
    %129 = vector.broadcast %128 : vector<1x512xf32> to vector<32x512xf32>
    %130 = arith.addf %126, %129 : vector<32x512xf32>
    %cst_86 = arith.constant 0.000000e+00 : f32
    %131 = vector.broadcast %cst_86 : f32 to vector<32x512xf32>
    %132 = arith.maximumf %130, %131 : vector<32x512xf32>
    %cst_87 = arith.constant dense<0.000000e+00> : vector<512xf32>
    %133 = vector.multi_reduction <add>, %132, %cst_87 [0] : vector<32x512xf32> to vector<512xf32>
    %134 = vector.shape_cast %133 : vector<512xf32> to vector<1x512xf32>
    %cst_88 = arith.constant dense<0.000000e+00> : vector<1x32xf32>
    %135 = tpu.matmul %134, %20, %cst_88 {dimension_numbers = #tpu.dot_dimension_numbers<[1], [0], [0], [1], [0, 0, 1, 1], [], []>} : vector<1x512xf32>, vector<512x32xf32>, vector<1x32xf32> -> vector<1x32xf32>
    %cst_89 = arith.constant 5.120000e+02 : f32
    %136 = vector.broadcast %cst_89 : f32 to vector<1x32xf32>
    %137 = arith.divf %135, %136 : vector<1x32xf32>
    %138 = arith.mulf %132, %132 : vector<32x512xf32>
    %cst_90 = arith.constant dense<0.000000e+00> : vector<512xf32>
    %139 = vector.multi_reduction <add>, %138, %cst_90 [0] : vector<32x512xf32> to vector<512xf32>
    %140 = vector.shape_cast %139 : vector<512xf32> to vector<1x512xf32>
    %cst_91 = arith.constant dense<0.000000e+00> : vector<1x32xf32>
    %141 = tpu.matmul %140, %20, %cst_91 {dimension_numbers = #tpu.dot_dimension_numbers<[1], [0], [0], [1], [0, 0, 1, 1], [], []>} : vector<1x512xf32>, vector<512x32xf32>, vector<1x32xf32> -> vector<1x32xf32>
    %cst_92 = arith.constant 5.120000e+02 : f32
    %142 = vector.broadcast %cst_92 : f32 to vector<1x32xf32>
    %143 = arith.divf %141, %142 : vector<1x32xf32>
    %144 = arith.mulf %137, %137 : vector<1x32xf32>
    %145 = arith.subf %143, %144 : vector<1x32xf32>
    %c1_93 = arith.constant 1 : index
    %c0_94 = arith.constant 0 : index
    %146 = vector.load %arg4[%c1_93, %c0_94] : memref<3x32xf32, #tpu.memory_space<vmem>>, vector<1x32xf32>
    %cst_95 = arith.constant 9.99999974E-6 : f32
    %147 = vector.broadcast %cst_95 : f32 to vector<1x32xf32>
    %148 = arith.addf %145, %147 : vector<1x32xf32>
    %149 = math.rsqrt %148 : vector<1x32xf32>
    %150 = arith.mulf %146, %149 : vector<1x32xf32>
    %c2_96 = arith.constant 2 : index
    %c0_97 = arith.constant 0 : index
    %151 = vector.load %arg4[%c2_96, %c0_97] : memref<3x32xf32, #tpu.memory_space<vmem>>, vector<1x32xf32>
    %152 = arith.mulf %137, %150 : vector<1x32xf32>
    %153 = arith.subf %151, %152 : vector<1x32xf32>
    %cst_98 = arith.constant dense<0.000000e+00> : vector<1x512xf32>
    %154 = tpu.matmul %150, %41, %cst_98 {dimension_numbers = #tpu.dot_dimension_numbers<[1], [0], [0], [1], [0, 0, 1, 1], [], []>} : vector<1x32xf32>, vector<32x512xf32>, vector<1x512xf32> -> vector<1x512xf32>
    %155 = vector.broadcast %154 : vector<1x512xf32> to vector<32x512xf32>
    %156 = arith.mulf %132, %155 : vector<32x512xf32>
    %cst_99 = arith.constant dense<0.000000e+00> : vector<1x512xf32>
    %157 = tpu.matmul %153, %41, %cst_99 {dimension_numbers = #tpu.dot_dimension_numbers<[1], [0], [0], [1], [0, 0, 1, 1], [], []>} : vector<1x32xf32>, vector<32x512xf32>, vector<1x512xf32> -> vector<1x512xf32>
    %158 = vector.broadcast %157 : vector<1x512xf32> to vector<32x512xf32>
    %159 = arith.addf %156, %158 : vector<32x512xf32>
    %160 = vector.shape_cast %159 : vector<32x512xf32> to vector<2x16x512xf32>
    %cst_100 = arith.constant dense<0xFF800000> : vector<2x512xf32>
    %161 = vector.multi_reduction <maximumf>, %160, %cst_100 [1] : vector<2x16x512xf32> to vector<2x512xf32>
    %162 = vector.extract_strided_slice %161 {offsets = [0, 0], sizes = [2, 32], strides = [1, 1]} : vector<2x512xf32> to vector<2x32xf32>
    %163 = vector.extract_strided_slice %161 {offsets = [0, 32], sizes = [2, 32], strides = [1, 1]} : vector<2x512xf32> to vector<2x32xf32>
    %164 = arith.maximumf %162, %163 : vector<2x32xf32>
    %165 = vector.extract_strided_slice %161 {offsets = [0, 64], sizes = [2, 32], strides = [1, 1]} : vector<2x512xf32> to vector<2x32xf32>
    %166 = arith.maximumf %164, %165 : vector<2x32xf32>
    %167 = vector.extract_strided_slice %161 {offsets = [0, 96], sizes = [2, 32], strides = [1, 1]} : vector<2x512xf32> to vector<2x32xf32>
    %168 = arith.maximumf %166, %167 : vector<2x32xf32>
    %169 = vector.extract_strided_slice %161 {offsets = [0, 128], sizes = [2, 32], strides = [1, 1]} : vector<2x512xf32> to vector<2x32xf32>
    %170 = arith.maximumf %168, %169 : vector<2x32xf32>
    %171 = vector.extract_strided_slice %161 {offsets = [0, 160], sizes = [2, 32], strides = [1, 1]} : vector<2x512xf32> to vector<2x32xf32>
    %172 = arith.maximumf %170, %171 : vector<2x32xf32>
    %173 = vector.extract_strided_slice %161 {offsets = [0, 192], sizes = [2, 32], strides = [1, 1]} : vector<2x512xf32> to vector<2x32xf32>
    %174 = arith.maximumf %172, %173 : vector<2x32xf32>
    %175 = vector.extract_strided_slice %161 {offsets = [0, 224], sizes = [2, 32], strides = [1, 1]} : vector<2x512xf32> to vector<2x32xf32>
    %176 = arith.maximumf %174, %175 : vector<2x32xf32>
    %177 = vector.extract_strided_slice %161 {offsets = [0, 256], sizes = [2, 32], strides = [1, 1]} : vector<2x512xf32> to vector<2x32xf32>
    %178 = arith.maximumf %176, %177 : vector<2x32xf32>
    %179 = vector.extract_strided_slice %161 {offsets = [0, 288], sizes = [2, 32], strides = [1, 1]} : vector<2x512xf32> to vector<2x32xf32>
    %180 = arith.maximumf %178, %179 : vector<2x32xf32>
    %181 = vector.extract_strided_slice %161 {offsets = [0, 320], sizes = [2, 32], strides = [1, 1]} : vector<2x512xf32> to vector<2x32xf32>
    %182 = arith.maximumf %180, %181 : vector<2x32xf32>
    %183 = vector.extract_strided_slice %161 {offsets = [0, 352], sizes = [2, 32], strides = [1, 1]} : vector<2x512xf32> to vector<2x32xf32>
    %184 = arith.maximumf %182, %183 : vector<2x32xf32>
    %185 = vector.extract_strided_slice %161 {offsets = [0, 384], sizes = [2, 32], strides = [1, 1]} : vector<2x512xf32> to vector<2x32xf32>
    %186 = arith.maximumf %184, %185 : vector<2x32xf32>
    %187 = vector.extract_strided_slice %161 {offsets = [0, 416], sizes = [2, 32], strides = [1, 1]} : vector<2x512xf32> to vector<2x32xf32>
    %188 = arith.maximumf %186, %187 : vector<2x32xf32>
    %189 = vector.extract_strided_slice %161 {offsets = [0, 448], sizes = [2, 32], strides = [1, 1]} : vector<2x512xf32> to vector<2x32xf32>
    %190 = arith.maximumf %188, %189 : vector<2x32xf32>
    %191 = vector.extract_strided_slice %161 {offsets = [0, 480], sizes = [2, 32], strides = [1, 1]} : vector<2x512xf32> to vector<2x32xf32>
    %192 = arith.maximumf %190, %191 : vector<2x32xf32>
    %c0_101 = arith.constant 0 : index
    %c0_102 = arith.constant 0 : index
    %193 = vector.load %arg5[%c0_101, %c0_102] : memref<32x10xf32, #tpu.memory_space<vmem>>, vector<32x10xf32>
    %cst_103 = arith.constant dense<0.000000e+00> : vector<2x10xf32>
    %194 = tpu.matmul %192, %193, %cst_103 {dimension_numbers = #tpu.dot_dimension_numbers<[1], [0], [0], [1], [0, 0, 1, 1], [], []>} : vector<2x32xf32>, vector<32x10xf32>, vector<2x10xf32> -> vector<2x10xf32>
    %c0_104 = arith.constant 0 : index
    %c0_105 = arith.constant 0 : index
    %195 = vector.load %arg6[%c0_104, %c0_105] : memref<1x10xf32, #tpu.memory_space<vmem>>, vector<1x10xf32>
    %196 = vector.broadcast %195 : vector<1x10xf32> to vector<2x10xf32>
    %197 = arith.addf %194, %196 : vector<2x10xf32>
    %c0_106 = arith.constant 0 : index
    %c0_107 = arith.constant 0 : index
    %198 = vector.load %arg7[%c0_106, %c0_107] : memref<2x10xf32, #tpu.memory_space<vmem>>, vector<2x10xf32>
    tpu.vector_store %arg7[%c0_106, %c0_107], %197 {strides = array<i32>} : memref<2x10xf32, #tpu.memory_space<vmem>>, vector<2x10xf32>,
    return
  }
}

</mosaic_0001>

<bundles_post_ra>
// kernel: dcnet_forward.1
= control target key start
LH: loop header
LB: loop body
LE: loop exit
PB: predicated region body
PF: predicated region fallthrough
CT: control target
= control target key end

     0   :  { %vm13000_vm0 = vcmask 523264   ;;  %v9416_v2 = vmov 0   ;;  %vm1161_vm1 = vcmask 517120   ;;  %v9417_v5 = vmov 0.0   ;;  %s12992_s0 = inlined_call_operand.vmem [shape: f32[2,16,64], index: 0, kind: input, shape index: {}]   ;;  %s12993_s1 = inlined_call_operand.vmem [shape: bf16[3,64,512], index: 1, kind: input, shape index: {}]   ;;  %s12994_s2 = inlined_call_operand.vmem [shape: f32[3,32], index: 2, kind: input, shape index: {}]   ;;  %s12995_s3 = inlined_call_operand.vmem [shape: bf16[3,512,512], index: 3, kind: input, shape index: {}]   ;;  %s12996_s4 = inlined_call_operand.vmem [shape: f32[3,32], index: 4, kind: input, shape index: {}]   ;;  %s12997_s5 = inlined_call_operand.vmem [shape: f32[32,10], index: 5, kind: input, shape index: {}]   ;;  %s12998_s6 = inlined_call_operand.vmem [shape: f32[1,10], index: 6, kind: input, shape index: {}]   ;;  %s12999_s7 = inlined_call_operand.hbm [shape: f32[2,10], index: 7, kind: output, shape index: {}]  }
   0x1   :  { %v8735_v0 = vld [vmem:[%s12993_s1 + $0xe4] ss:$16 sps:$4 sm:$0xff]   ;;  %v8737_v1 = vld [vmem:[%s12993_s1 + $0xec] ss:$16 sps:$4 sm:$0xff]   ;;  %1333 = vmatprep.mubr.bf16.mxu0 %v9416_v2  ;;  %1386 = vmatprep.mubr.bf16.mxu1 %v9416_v2  ;;  %v8739_v3 = vld [vmem:[%s12993_s1 + $0xe0] ss:$16 sps:$4 sm:$0xff]   ;;  %v28_v48 = vlaneseq }
   0x2   :  { %1309 = vmatprep.subr.bf16.mxu0 %v8735_v0  ;;  %v8740_v4 = vld [vmem:[%s12993_s1 + $0xe8] ss:$16 sps:$4 sm:$0xff]   ;;  %1159 = vst.msk [vmem:[#allocation2] sm:$0xff] %vm13000_vm0, %v9417_v5  ;;  %1160 = vst.msk [vmem:[#allocation2 + $0x8] sm:$0xff] %vm13000_vm0, %v9417_v5  ;;  %1362 = vmatprep.subr.bf16.mxu1 %v8737_v1  ;;  %v8741_v6 = vld [vmem:[%s12993_s1 + $0xc4] ss:$16 sps:$4 sm:$0xff]  }
   0x3   :  { %1162 = vst.msk [vmem:[#allocation2 + $0x10] sm:$0x3] %vm1161_vm1, %v9417_v5  ;;  %1165 = vst.msk [vmem:[#allocation2 + $0x28] sm:$0x3] %vm1161_vm1, %v9417_v5  ;;  %1310 = vmatpush1.bf16.msra.mxu0 %v8739_v3  ;;  %1363 = vmatpush1.bf16.msra.mxu1 %v8740_v4  ;;  %v8743_v7 = vld [vmem:[%s12993_s1 + $0xcc] ss:$16 sps:$4 sm:$0xff]  }
   0x4   :  { %1163 = vst.msk [vmem:[#allocation2 + $0x18] sm:$0xff] %vm13000_vm0, %v9417_v5  ;;  %1164 = vst.msk [vmem:[#allocation2 + $0x20] sm:$0xff] %vm13000_vm0, %v9417_v5  ;;  %v8745_v8 = vld [vmem:[%s12993_s1 + $0xc0] ss:$16 sps:$4 sm:$0xff]   ;;  %1311 = vmatprep.subr.bf16.mxu0 %v8741_v6  ;;  %v8746_v9 = vld [vmem:[%s12993_s1 + $0xc8] ss:$16 sps:$4 sm:$0xff]   ;;  %1364 = vmatprep.subr.bf16.mxu1 %v8743_v7 }
   0x5   :  { %2759 = vst [vmem:[#allocation3 + $0xb0] sm:$0xff] %v9417_v5  ;;  %2760 = vst [vmem:[#allocation3] sm:$0xff] %v9417_v5  ;;  %v8747_v10 = vld [vmem:[%s12993_s1 + $0xa4] ss:$16 sps:$4 sm:$0xff]   ;;  %v8749_v11 = vld [vmem:[%s12993_s1 + $0xac] ss:$16 sps:$4 sm:$0xff]  }
   0x6   :  { %2761 = vst [vmem:[#allocation3 + $0x10] sm:$0xff] %v9417_v5  ;;  %2762 = vst [vmem:[#allocation3 + $0x48] sm:$0xff] %v9417_v5  ;;  %v8751_v12 = vld [vmem:[%s12993_s1 + $0xa0] ss:$16 sps:$4 sm:$0xff]   ;;  %v8752_v13 = vld [vmem:[%s12993_s1 + $0xa8] ss:$16 sps:$4 sm:$0xff]  }
   0x7   :  { %2767 = vst [vmem:[#allocation3 + $0x88] sm:$0x3] %v9417_v5  ;;  %2768 = vst [vmem:[#allocation3 + $0x90] sm:$0x3] %v9417_v5  ;;  %1312 = vmatpush1.bf16.msra.mxu0 %v8745_v8  ;;  %1365 = vmatpush1.bf16.msra.mxu1 %v8746_v9  ;;  %v8753_v14 = vld [vmem:[%s12993_s1 + $0x84] ss:$16 sps:$4 sm:$0xff]  }
   0x8   :  { %2769 = vst [vmem:[#allocation3 + $0x18] sm:$0x3] %v9417_v5  ;;  %2770 = vst [vmem:[#allocation3 + $0x98] sm:$0x3] %v9417_v5  ;;  %1313 = vmatprep.subr.bf16.mxu0 %v8747_v10  ;;  %1366 = vmatprep.subr.bf16.mxu1 %v8749_v11  ;;  %v8755_v15 = vld [vmem:[%s12993_s1 + $0x8c] ss:$16 sps:$4 sm:$0xff]  }
   0x9   :  { %2771 = vst [vmem:[#allocation3 + $0x38] sm:$0xff] %v9417_v5  ;;  %2772 = vst [vmem:[#allocation3 + $0x50] sm:$0xff] %v9417_v5  ;;  %v1154_v16 = vld [vmem:[%s12992_s0] sm:$0xff]  ;;  %v1155_v17 = vld [vmem:[%s12992_s0 + $0x8] sm:$0xff]  ;;  %v9636_v58 = vand.u32 127, %v28_v48  ;;  %v9654_v63 = vshrl.u32 %v28_v48, 7 }
   0xa   :  { %2773 = vst [vmem:[#allocation3 + $0x70] sm:$0xff] %v9417_v5  ;;  %2774 = vst [vmem:[#allocation3 + $0xa0] sm:$0xff] %v9417_v5  ;;  %v8757_v18 = vld [vmem:[%s12993_s1 + $0x80] ss:$16 sps:$4 sm:$0xff]   ;;  %v8758_v19 = vld [vmem:[%s12993_s1 + $0x88] ss:$16 sps:$4 sm:$0xff]  }
   0xb   :  { %2779 = vst [vmem:[#allocation3 + $0x80] sm:$0x3] %v9417_v5  ;;  %2780 = vst [vmem:[#allocation3 + $0xb8] sm:$0x3] %v9417_v5  ;;  %1314 = vmatpush1.bf16.msra.mxu0 %v8751_v12  ;;  %1367 = vmatpush1.bf16.msra.mxu1 %v8752_v13  ;;  %v8761_v20 = vld [vmem:[%s12993_s1 + $0x64] ss:$16 sps:$4 sm:$0xff]  }
   0xc   :  { %2781 = vst [vmem:[#allocation3 + $0x20] sm:$0x3] %v9417_v5  ;;  %2782 = vst [vmem:[#allocation3 + $0x8] sm:$0x3] %v9417_v5  ;;  %1315 = vmatprep.subr.bf16.mxu0 %v8753_v14  ;;  %1368 = vmatprep.subr.bf16.mxu1 %v8755_v15  ;;  %v8764_v21 = vld [vmem:[%s12993_s1 + $0x6c] ss:$16 sps:$4 sm:$0xff]  }
   0xd   :  { %1166 = vst.msk [vmem:[#allocation2 + $0x1] sm:$0xff] %vm13000_vm0, %v1154_v16  ;;  %1167 = vst.msk [vmem:[#allocation2 + $0x9] sm:$0xff] %vm13000_vm0, %v1155_v17  ;;  %v1156_v22 = vld [vmem:[%s12992_s0 + $0x10] sm:$0xff]  ;;  %v1157_v23 = vld [vmem:[%s12992_s0 + $0x18] sm:$0xff]  ;;  %v1055_v0 = vadd.s32 128, %v9636_v58  ;;  %v1057_v1 = vadd.s32 384, %v9636_v58 }
   0xe   :  { %1168 = vst.msk [vmem:[#allocation2 + $0x19] sm:$0xff] %vm13000_vm0, %v1156_v22  ;;  %v8759_v25 = vld [vmem:[%s12993_s1 + $0x60] ss:$16 sps:$4 sm:$0xff]   ;;  %v8762_v26 = vld [vmem:[%s12993_s1 + $0x68] ss:$16 sps:$4 sm:$0xff]   ;;  %1169 = vst.msk [vmem:[#allocation2 + $0x21] sm:$0xff] %vm13000_vm0, %v1157_v23 }
   0xf   :  { %1316 = vmatpush1.bf16.msra.mxu0 %v8757_v18  ;;  %1369 = vmatpush1.bf16.msra.mxu1 %v8758_v19  ;;  %v8767_v29 = vld [vmem:[%s12993_s1 + $0x44] ss:$16 sps:$4 sm:$0xff]   ;;  %v8770_v30 = vld [vmem:[%s12993_s1 + $0x4c] ss:$16 sps:$4 sm:$0xff]   ;;  %v8765_v31 = vld [vmem:[%s12993_s1 + $0x40] ss:$16 sps:$4 sm:$0xff]  }
  0x10   :  { %1501 = vmatprep.subr.bf16.mxu0 %v8761_v20  ;;  %1554 = vmatprep.subr.bf16.mxu1 %v8764_v21  ;;  %v8768_v32 = vld [vmem:[%s12993_s1 + $0x48] ss:$16 sps:$4 sm:$0xff]   ;;  %v8773_v33 = vld [vmem:[%s12993_s1 + $0x24] ss:$16 sps:$4 sm:$0xff]   ;;  %v8776_v34 = vld [vmem:[%s12993_s1 + $0x2c] ss:$16 sps:$4 sm:$0xff]  }
  0x11   :  { %v8771_v38 = vld [vmem:[%s12993_s1 + $0x20] ss:$16 sps:$4 sm:$0xff]   ;;  %v8774_v39 = vld [vmem:[%s12993_s1 + $0x28] ss:$16 sps:$4 sm:$0xff]   ;;  %v8779_v40 = vld [vmem:[%s12993_s1 + $0x4] ss:$16 sps:$4 sm:$0xff]  }
  0x12   :  { %v8782_v41 = vld [vmem:[%s12993_s1 + $0xc] ss:$16 sps:$4 sm:$0xff]   ;;  %v8777_v42 = vld [vmem:[%s12993_s1] ss:$16 sps:$4 sm:$0xff]   ;;  %v8780_v43 = vld [vmem:[%s12993_s1 + $0x8] ss:$16 sps:$4 sm:$0xff]  }
  0x13   :  { %v8785_v46 = vld [vmem:[%s12993_s1 + $0x164] ss:$16 sps:$4 sm:$0xff]   ;;  %v8788_v47 = vld [vmem:[%s12993_s1 + $0x16c] ss:$16 sps:$4 sm:$0xff]   ;;  %v8783_v50 = vld [vmem:[%s12993_s1 + $0x160] ss:$16 sps:$4 sm:$0xff]  }
  0x14   :  { %v1192_v24 = vld [vmem:[#allocation2 + $0x1] sm:$0xff]  ;;  %v1193_v27 = vld [vmem:[#allocation2 + $0x9] sm:$0xff]  ;;  %v1056_v7 = vadd.s32 256, %v9636_v58  ;;  %v9672_v12 = vadd.s32 24, %v9654_v63  ;;  %v1069_v13 = vand.u32 31, %v1055_v0  ;;  %v1083_v14 = vand.u32 31, %v1057_v1 }
  0x15   :  { %v1196_v28 = vpack.c.bf16 %v1193_v27, %v1192_v24  ;;  %v1194_v35 = vld [vmem:[#allocation2 + $0x19] sm:$0xff]  ;;  %v1195_v36 = vld [vmem:[#allocation2 + $0x21] sm:$0xff]  ;;  %v1600_v11 = vld [vmem:[#allocation2 + $0xa] sm:$0xff]  ;;  %v1062_v15 = vand.u32 31, %v9636_v58  ;;  %v13369_v17 = vmov 0  ;;  %v13372_v18 = vmov 0 }
  0x16   :  { %v1197_v37 = vpack.c.bf16 %v1195_v36, %v1194_v35  ;;  %v1170_v44 = vld [vmem:[#allocation2] sm:$0xff]  ;;  %v1171_v45 = vld [vmem:[#allocation2 + $0x8] sm:$0xff]  ;;  %v1172_v56 = vld [vmem:[#allocation2 + $0x18] sm:$0xff]  ;;  %v1076_v16 = vand.u32 31, %v1056_v7  ;;  %vm9680_vm2 = vcmp.eq.s32.totalorder %v1069_v13, %v9672_v12  ;;  %vm9685_vm3 = vcmp.eq.s32.totalorder %v1083_v14, %v9672_v12 }
  0x17   :  { %7365 = vmatmul.mubr.msk.bf16.vlgmr.msra.gmra.mxu0 %vm13000_vm0, %v1196_v28  ;;  %7367 = vmatmul.mubr.msk.bf16.vlgmr.msra.gmra.mxu1 %vm13000_vm0, %v1196_v28  ;;  %v1174_v49 = vpack.c.bf16 %v1171_v45, %v1170_v44  ;;  %v8786_v51 = vld [vmem:[%s12993_s1 + $0x168] ss:$16 sps:$4 sm:$0xff]   ;;  %v8791_v52 = vld [vmem:[%s12993_s1 + $0x144] ss:$16 sps:$4 sm:$0xff]   ;;  %v8794_v53 = vld [vmem:[%s12993_s1 + $0x14c] ss:$16 sps:$4 sm:$0xff]   ;;  %vm9699_vm4 = vcmp.eq.s32.totalorder %v1062_v15, %v9672_v12  ;;  %vm9774_vm14 = vcmp.eq.s32.totalorder %v1069_v13, %v9654_v63 }
  0x18   :  { %1502 = vmatpush1.bf16.msra.mxu0 %v8759_v25  ;;  %1555 = vmatpush1.bf16.msra.mxu1 %v8762_v26  ;;  %v8789_v54 = vld [vmem:[%s12993_s1 + $0x140] ss:$16 sps:$4 sm:$0xff]   ;;  %v8792_v55 = vld [vmem:[%s12993_s1 + $0x148] ss:$16 sps:$4 sm:$0xff]   ;;  %v8797_v59 = vld [vmem:[%s12993_s1 + $0x124] ss:$16 sps:$4 sm:$0xff]   ;;  %vm9704_vm5 = vcmp.eq.s32.totalorder %v1076_v16, %v9672_v12  ;;  %vm9779_vm15 = vcmp.eq.s32.totalorder %v1083_v14, %v9654_v63  ;;  %vm9796_vm1 = vcmp.eq.s32.totalorder %v1062_v15, %v9654_v63 }
  0x19   :  { %1503 = vmatprep.subr.bf16.mxu0 %v8767_v29  ;;  %1556 = vmatprep.subr.bf16.mxu1 %v8770_v30  ;;  %v1173_v57 = vld [vmem:[#allocation2 + $0x20] sm:$0xff]  ;;  %v8800_v60 = vld [vmem:[%s12993_s1 + $0x12c] ss:$16 sps:$4 sm:$0xff]   ;;  %v8798_v62 = vld [vmem:[%s12993_s1 + $0x128] ss:$16 sps:$4 sm:$0xff]   ;;  %v13370_v17 = vsel %vm9680_vm2, 4294967295, %v13369_v17 }
  0x1a   :  { %1343 = vmatprep.mubr.bf16.mxu0 %v9416_v2  ;;  %1396 = vmatprep.mubr.bf16.mxu1 %v9416_v2  ;;  %v8795_v61 = vld [vmem:[%s12993_s1 + $0x120] ss:$16 sps:$4 sm:$0xff]   ;;  %v1175_v3 = vpack.c.bf16 %v1173_v57, %v1172_v56  ;;  %v8803_v4 = vld [vmem:[%s12993_s1 + $0x104] ss:$16 sps:$4 sm:$0xff]   ;;  %v8806_v6 = vld [vmem:[%s12993_s1 + $0x10c] ss:$16 sps:$4 sm:$0xff]  }
  0x1b   :  { %v8801_v8 = vld [vmem:[%s12993_s1 + $0x100] ss:$16 sps:$4 sm:$0xff]   ;;  %v8804_v9 = vld [vmem:[%s12993_s1 + $0x108] ss:$16 sps:$4 sm:$0xff]   ;;  %13371 = vst [vmem:[#allocation7_spill] sm:$0xff] %v13370_v17  ;;  %v13373_v18 = vsel %vm9685_vm3, 4294967295, %v13372_v18 }
  0x1c   :  { %1504 = vmatpush1.bf16.msra.mxu0 %v8765_v31  ;;  %1557 = vmatpush1.bf16.msra.mxu1 %v8768_v32  ;;  %v1599_v10 = vld [vmem:[#allocation2 + $0x2] sm:$0xff]  ;;  %13374 = vst [vmem:[#allocation8_spill] sm:$0xff] %v13373_v18  ;;  %v9690_v19 = vadd.s32 16, %v9654_v63  ;;  %v13068_v21 = vmov 1.0   ;;  %v13375_v22 = vmov 0  ;;  %v13378_v23 = vmov 0 }
  0x1d   :  { %1505 = vmatprep.subr.bf16.mxu0 %v8773_v33  ;;  %1558 = vmatprep.subr.bf16.mxu1 %v8776_v34  ;;  %v1603_v20 = vpack.c.bf16 %v1600_v11, %v1599_v10  ;;  %v13376_v22 = vsel %vm9699_vm4, 4294967295, %v13375_v22  ;;  %v13379_v23 = vsel %vm9704_vm5, 4294967295, %v13378_v23  ;;  %v9709_v24 = vadd.s32 8, %v9654_v63  ;;  %v1601_v27 = vld [vmem:[#allocation2 + $0x1a] sm:$0xff]  ;;  %v1602_v28 = vld [vmem:[#allocation2 + $0x22] sm:$0xff] }
  0x1e   :  { %13377 = vst [vmem:[#allocation9_spill] sm:$0xff] %v13376_v22  ;;  %13380 = vst [vmem:[#allocation10_spill] sm:$0xff] %v13379_v23  ;;  %vm9712_vm6 = vcmp.eq.s32.totalorder %v1069_v13, %v9690_v19  ;;  %v13381_v25 = vmov 0  ;;  %vm9717_vm7 = vcmp.eq.s32.totalorder %v1083_v14, %v9690_v19  ;;  %v13384_v26 = vmov 0 }
  0x1f   :  { %7366 = vmatmul.mubr.msk.bf16.gmra.mxu0 %vm13000_vm0, %v1197_v37  ;;  %7368 = vmatmul.mubr.msk.bf16.gmra.mxu1 %vm13000_vm0, %v1197_v37  ;;  %v13382_v25 = vsel %vm9712_vm6, 4294967295, %v13381_v25  ;;  %v13385_v26 = vsel %vm9717_vm7, 4294967295, %v13384_v26  ;;  %vm9724_vm8 = vcmp.eq.s32.totalorder %v1062_v15, %v9690_v19  ;;  %v13387_v29 = vmov 0 }
  0x20   :  { %1506 = vmatpush1.bf16.msra.mxu0 %v8771_v38  ;;  %1559 = vmatpush1.bf16.msra.mxu1 %v8774_v39  ;;  %13383 = vst [vmem:[#allocation11_spill] sm:$0xff] %v13382_v25  ;;  %13386 = vst [vmem:[#allocation12_spill] sm:$0xff] %v13385_v26  ;;  %v13388_v29 = vsel %vm9724_vm8, 4294967295, %v13387_v29  ;;  %vm9729_vm9 = vcmp.eq.s32.totalorder %v1076_v16, %v9690_v19  ;;  %v13390_v30 = vmov 0  ;;  %vm9746_vm10 = vcmp.eq.s32.totalorder %v1069_v13, %v9709_v24  ;;  %v1830_v39 = vld [vmem:[%s12994_s2] sm:$0x1] }
  0x21   :  { %1507 = vmatprep.subr.bf16.mxu0 %v8779_v40  ;;  %1560 = vmatprep.subr.bf16.mxu1 %v8782_v41  ;;  %13389 = vst [vmem:[#allocation13_spill] sm:$0xff] %v13388_v29  ;;  %v13391_v30 = vsel %vm9729_vm9, 4294967295, %v13390_v30  ;;  %v13393_v31 = vmov 0  ;;  %vm9751_vm11 = vcmp.eq.s32.totalorder %v1083_v14, %v9709_v24  ;;  %v13396_v32 = vmov 0 }
  0x22   :  { %1525 = vmatprep.mubr.bf16.mxu0 %v9416_v2  ;;  %1578 = vmatprep.mubr.bf16.mxu1 %v9416_v2  ;;  %13392 = vst [vmem:[#allocation14_spill] sm:$0xff] %v13391_v30  ;;  %v13394_v31 = vsel %vm9746_vm10, 4294967295, %v13393_v31  ;;  %v13397_v32 = vsel %vm9751_vm11, 4294967295, %v13396_v32  ;;  %vm9762_vm12 = vcmp.eq.s32.totalorder %v1062_v15, %v9709_v24  ;;  %v13399_v33 = vmov 0 }
  0x23   :  { %13395 = vst [vmem:[#allocation15_spill] sm:$0xff] %v13394_v31  ;;  %13398 = vst [vmem:[#allocation16_spill] sm:$0xff] %v13397_v32  ;;  %v13400_v33 = vsel %vm9762_vm12, 4294967295, %v13399_v33  ;;  %vm9767_vm13 = vcmp.eq.s32.totalorder %v1076_v16, %v9709_v24  ;;  %v13402_v34 = vmov 0  ;;  %v1604_v35 = vpack.c.bf16 %v1602_v28, %v1601_v27 }
  0x24   :  { %1508 = vmatpush1.bf16.msra.mxu0 %v8777_v42  ;;  %1561 = vmatpush1.bf16.msra.mxu1 %v8780_v43  ;;  %13401 = vst [vmem:[#allocation17_spill] sm:$0xff] %v13400_v33  ;;  %v13403_v34 = vsel %vm9767_vm13, 4294967295, %v13402_v34  ;;  %v13405_v36 = vmov 0  ;;  %v13408_v37 = vmov 0  ;;  %v13414_v38 = vmov 0 }
  0x25   :  { %1716 = vmatprep.subr.bf16.mxu0 %v8785_v46  ;;  %1769 = vmatprep.subr.bf16.mxu1 %v8788_v47  ;;  %13404 = vst [vmem:[#allocation18_spill] sm:$0xff] %v13403_v34  ;;  %v13406_v36 = vsel %vm9774_vm14, 4294967295, %v13405_v36  ;;  %v13409_v37 = vsel %vm9779_vm15, 4294967295, %v13408_v37  ;;  %v60_v40 = vadd.s32 248, %v9654_v63  ;;  %v92_v41 = vadd.s32 504, %v9654_v63 }
  0x26   :  { %13407 = vst [vmem:[#allocation19_spill] sm:$0xff] %v13406_v36  ;;  %13410 = vst [vmem:[#allocation20_spill] sm:$0xff] %v13409_v37  ;;  %v44_v42 = vadd.s32 120, %v9654_v63  ;;  %v76_v43 = vadd.s32 376, %v9654_v63  ;;  %v91_v46 = vadd.s32 496, %v9654_v63  ;;  %v13428_v56 = vmov 0 }
  0x27   :  { %7385 = vmatmul.mubr.msk.bf16.vlgmr.msra.gmra.mxu0 %vm13000_vm0, %v1174_v49  ;;  %7387 = vmatmul.mubr.msk.bf16.vlgmr.msra.gmra.mxu1 %vm13000_vm0, %v1174_v49  ;;  %v314_v44 = vand.u32 31, %v60_v40  ;;  %v538_v45 = vand.u32 31, %v92_v41  ;;  %v43_v49 = vadd.s32 112, %v9654_v63  ;;  %v90_v0 = vadd.s32 488, %v9654_v63 }
  0x28   :  { %1717 = vmatpush1.bf16.msra.mxu0 %v8783_v50  ;;  %1770 = vmatpush1.bf16.msra.mxu1 %v8786_v51  ;;  %v202_v47 = vand.u32 31, %v44_v42  ;;  %v426_v48 = vand.u32 31, %v76_v43  ;;  %v75_v50 = vadd.s32 368, %v9654_v63  ;;  %v13419_v51 = vmov 0 }
  0x29   :  { %1718 = vmatprep.subr.bf16.mxu0 %v8791_v52  ;;  %1771 = vmatprep.subr.bf16.mxu1 %v8794_v53  ;;  %v13422_v52 = vmov 0  ;;  %v195_v57 = vand.u32 31, %v43_v49  ;;  %v13437_v1 = vmov 0  ;;  %v89_v10 = vadd.s32 480, %v9654_v63 }
  0x2a   :  { %1535 = vmatprep.mubr.bf16.mxu0 %v9416_v2  ;;  %1588 = vmatprep.mubr.bf16.mxu1 %v9416_v2  ;;  %v13443_v14 = vmov 0  ;;  %v13446_v15 = vmov 0  ;;  %v13449_v27 = vmov 0  ;;  %v13452_v28 = vmov 0 }
  0x2b   :  { %v41_v40 = vadd.s32 96, %v9654_v63  ;;  %v73_v41 = vadd.s32 352, %v9654_v63  ;;  %v56_v42 = vadd.s32 216, %v9654_v63  ;;  %v88_v43 = vadd.s32 472, %v9654_v63 }
  0x2c   :  { %1719 = vmatpush1.bf16.msra.mxu0 %v8789_v54  ;;  %1772 = vmatpush1.bf16.msra.mxu1 %v8792_v55  ;;  %v531_v54 = vand.u32 31, %v91_v46  ;;  %v13425_v55 = vmov 0  ;;  %v72_v46 = vadd.s32 344, %v9654_v63  ;;  %v55_v49 = vadd.s32 208, %v9654_v63 }
  0x2d   :  { %1720 = vmatprep.subr.bf16.mxu0 %v8797_v59  ;;  %1773 = vmatprep.subr.bf16.mxu1 %v8800_v60  ;;  %v419_v59 = vand.u32 31, %v75_v50  ;;  %v13431_v60 = vmov 0  ;;  %v87_v50 = vadd.s32 464, %v9654_v63  ;;  %v34_v36 = vadd.s32 40, %v9654_v63 }
  0x2e   :  { %v49_v32 = vadd.s32 160, %v9654_v63  ;;  %v81_v31 = vadd.s32 416, %v9654_v63  ;;  %v13534_v30 = vmov 0  ;;  %v13537_v29 = vmov 0 }
  0x2f   :  { %7386 = vmatmul.mubr.msk.bf16.gmra.mxu0 %vm13000_vm0, %v1175_v3  ;;  %7388 = vmatmul.mubr.msk.bf16.gmra.mxu1 %vm13000_vm0, %v1175_v3  ;;  %v13440_v3 = vmov 0  ;;  %v118_v25 = vand.u32 31, %v9672_v12  ;;  %v47_v18 = vadd.s32 144, %v9654_v63  ;;  %v79_v17 = vadd.s32 400, %v9654_v63 }
  0x30   :  { %1721 = vmatpush1.bf16.msra.mxu0 %v8795_v61  ;;  %1774 = vmatpush1.bf16.msra.mxu1 %v8798_v62  ;;  %v13434_v61 = vmov 0  ;;  %v58_v62 = vadd.s32 232, %v9654_v63  ;;  %v13564_v12 = vmov 0 }
  0x31   :  { %1722 = vmatprep.subr.bf16.mxu0 %v8803_v4  ;;  %1775 = vmatprep.subr.bf16.mxu1 %v8806_v6  ;;  %v42_v4 = vadd.s32 104, %v9654_v63  ;;  %v74_v6 = vadd.s32 360, %v9654_v63 }
  0x32   :  { %1740 = vmatprep.mubr.bf16.mxu0 %v9416_v2  ;;  %1793 = vmatprep.mubr.bf16.mxu1 %v9416_v2  ;;  %v300_v7 = vand.u32 31, %v58_v62  ;;  %v13467_v62 = vmov 0 }
  0x33   :  { %v188_v11 = vand.u32 31, %v42_v4  ;;  %v412_v13 = vand.u32 31, %v74_v6  ;;  %v279_v4 = vand.u32 31, %v55_v49  ;;  %v503_v6 = vand.u32 31, %v87_v50 }
  0x34   :  { %1723 = vmatpush1.bf16.msra.mxu0 %v8801_v8  ;;  %1776 = vmatpush1.bf16.msra.mxu1 %v8804_v9  ;;  %v524_v8 = vand.u32 31, %v90_v0  ;;  %v57_v9 = vadd.s32 224, %v9654_v63  ;;  %v13470_v0 = vmov 0 }
  0x35   :  { %7425 = vmatprep.subr.msk.mxu0 %vm9680_vm2, %v13068_v21  ;;  %7434 = vmatprep.subr.msk.mxu1 %vm9685_vm3, %v13068_v21 }
  0x37   :  { %7421 = vmatmul.mubr.msk.bf16.vlgmr.msra.gmra.mxu0 %vm13000_vm0, %v1603_v20  ;;  %7423 = vmatmul.mubr.msk.bf16.vlgmr.msra.gmra.mxu1 %vm13000_vm0, %v1603_v20  ;;  %vm9801_vm0 = vcmp.eq.s32.totalorder %v1076_v16, %v9654_v63  ;;  %v293_v16 = vand.u32 31, %v57_v9  ;;  %v517_v20 = vand.u32 31, %v89_v10  ;;  %v39_v9 = vadd.s32 80, %v9654_v63 }
  0x38   :  { %7426 = vmatpush1.msk.msra.mxu0 %vm9699_vm4, %v13068_v21  ;;  %7435 = vmatpush1.msk.msra.mxu1 %vm9704_vm5, %v13068_v21  ;;  %v13415_v38 = vsel %vm9801_vm0, 4294967295, %v13414_v38  ;;  %v71_v10 = vadd.s32 336, %v9654_v63 }
  0x39   :  { %7427 = vmatprep.subr.msk.mxu0 %vm9712_vm6, %v13068_v21  ;;  %7436 = vmatprep.subr.msk.mxu1 %vm9717_vm7, %v13068_v21  ;;  %13416 = vst [vmem:[#allocation22_spill] sm:$0xff] %v13415_v38  ;;  %vm9921_vm7 = vcmp.eq.s32.totalorder %v188_v11, %v9636_v58  ;;  %vm9926_vm6 = vcmp.eq.s32.totalorder %v412_v13, %v9636_v58  ;;  %v13479_v11 = vmov 0  ;;  %v13482_v13 = vmov 0 }
  0x3a   :  { %7428 = vmatpush1.msk.msra.mxu0 %vm9724_vm8, %v13068_v21  ;;  %7437 = vmatpush1.msk.msra.mxu1 %vm9729_vm9, %v13068_v21  ;;  %vm9905_vm9 = vcmp.eq.s32.totalorder %v300_v7, %v9636_v58  ;;  %vm9910_vm8 = vcmp.eq.s32.totalorder %v524_v8, %v9636_v58  ;;  %v13450_v27 = vsel %vm9921_vm7, 4294967295, %v13449_v27  ;;  %v13453_v28 = vsel %vm9926_vm6, 4294967295, %v13452_v28 }
  0x3b   :  { %1750 = vmatprep.mubr.bf16.mxu0 %v9416_v2  ;;  %1803 = vmatprep.mubr.bf16.mxu1 %v9416_v2  ;;  %v13411_v2 = vmov 0  ;;  %v13444_v14 = vsel %vm9905_vm9, 4294967295, %v13443_v14  ;;  %v13447_v15 = vsel %vm9910_vm8, 4294967295, %v13446_v15  ;;  %13451 = vst [vmem:[#allocation33_spill] sm:$0xff] %v13450_v27  ;;  %13454 = vst [vmem:[#allocation34_spill] sm:$0xff] %v13453_v28  ;;  %vm9937_vm5 = vcmp.eq.s32.totalorder %v293_v16, %v9636_v58 }
  0x3c   :  { %7429 = vmatprep.subr.msk.mxu0 %vm9746_vm10, %v13068_v21  ;;  %7438 = vmatprep.subr.msk.mxu1 %vm9751_vm11, %v13068_v21  ;;  %v13412_v2 = vsel %vm9796_vm1, 4294967295, %v13411_v2  ;;  %vm9885_vm11 = vcmp.eq.s32.totalorder %v195_v57, %v9636_v58  ;;  %vm9890_vm10 = vcmp.eq.s32.totalorder %v419_v59, %v9636_v58  ;;  %13445 = vst [vmem:[#allocation31_spill] sm:$0xff] %v13444_v14  ;;  %13448 = vst [vmem:[#allocation32_spill] sm:$0xff] %v13447_v15  ;;  %v13473_v7 = vmov 0 }
  0x3d   :  { %7430 = vmatpush1.msk.msra.mxu0 %vm9762_vm12, %v13068_v21  ;;  %7439 = vmatpush1.msk.msra.mxu1 %vm9767_vm13, %v13068_v21  ;;  %13413 = vst [vmem:[#allocation21_spill] sm:$0xff] %v13412_v2  ;;  %vm13417_vm12 = vcmask 523264   ;;  %v13438_v1 = vsel %vm9885_vm11, 4294967295, %v13437_v1  ;;  %v13441_v3 = vsel %vm9890_vm10, 4294967295, %v13440_v3  ;;  %vm9942_vm4 = vcmp.eq.s32.totalorder %v517_v20, %v9636_v58 }
  0x3e   :  { %7431 = vmatprep.subr.msk.mxu0 %vm9774_vm14, %v13068_v21  ;;  %7440 = vmatprep.subr.msk.mxu1 %vm9779_vm15, %v13068_v21  ;;  %vm13418_vm13 = vmmov %vm13417_vm12  ;;  %vm13007_vm15 = vcmask 261120   ;;  %vm9872_vm14 = vcmp.eq.s32.totalorder %v531_v54, %v9636_v58  ;;  %13439 = vst [vmem:[#allocation29_spill] sm:$0xff] %v13438_v1  ;;  %v13464_v54 = vmov 0  ;;  %v398_v59 = vand.u32 31, %v72_v46 }
  0x3f   :  { %7422 = vmatmul.mubr.msk.bf16.gmra.mxu0 %vm13417_vm12, %v1604_v35  ;;  %7424 = vmatmul.mubr.msk.bf16.gmra.mxu1 %vm13418_vm13, %v1604_v35  ;;  %vm9835_vm12 = vcmp.eq.s32.totalorder %v314_v44, %v9636_v58  ;;  %vm9840_vm13 = vcmp.eq.s32.totalorder %v538_v45, %v9636_v58  ;;  %v13435_v61 = vsel %vm9872_vm14, 4294967295, %v13434_v61  ;;  %13442 = vst [vmem:[#allocation30_spill] sm:$0xff] %v13441_v3  ;;  %v13455_v35 = vmov 0 }
  0x40   :  { %7432 = vmatpush1.msk.msra.mxu0 %vm9796_vm1, %v13068_v21  ;;  %7441 = vmatpush1.msk.msra.mxu1 %vm9801_vm0, %v13068_v21  ;;  %v13420_v51 = vsel %vm9835_vm12, 4294967295, %v13419_v51  ;;  %v13423_v52 = vsel %vm9840_vm13, 4294967295, %v13422_v52  ;;  %vm9856_vm0 = vcmp.eq.s32.totalorder %v426_v48, %v9636_v58  ;;  %13436 = vst [vmem:[#allocation28_spill] sm:$0xff] %v13435_v61  ;;  %v13456_v35 = vsel %vm9937_vm5, 4294967295, %v13455_v35 }
  0x41   :  { %1899 = vmatprep.mubr.f32.mxu0 %v9417_v5  ;;  %1970 = vmatprep.mubr.f32.mxu1 %v9417_v5  ;;  %v59_v5 = vadd.s32 240, %v9654_v63  ;;  %13421 = vst [vmem:[#allocation23_spill] sm:$0xff] %v13420_v51  ;;  %13424 = vst [vmem:[#allocation24_spill] sm:$0xff] %v13423_v52  ;;  %v13429_v56 = vsel %vm9856_vm0, 4294967295, %v13428_v56  ;;  %v181_v44 = vand.u32 31, %v41_v40  ;;  %v405_v45 = vand.u32 31, %v73_v41 }
  0x42   :  { %8431 = vmatprep.subr.msk.mxu0 %vm9835_vm12, %v13068_v21  ;;  %8466 = vmatprep.subr.msk.mxu1 %vm9840_vm13, %v13068_v21  ;;  %13430 = vst [vmem:[#allocation26_spill] sm:$0xff] %v13429_v56  ;;  %13457 = vst [vmem:[#allocation35_spill] sm:$0xff] %v13456_v35  ;;  %v510_v48 = vand.u32 31, %v88_v43  ;;  %v13476_v8 = vmov 0  ;;  %v54_v16 = vadd.s32 200, %v9654_v63  ;;  %v86_v20 = vadd.s32 456, %v9654_v63 }
  0x43   :  { %v307_v53 = vand.u32 31, %v59_v5  ;;  %v40_v5 = vadd.s32 88, %v9654_v63  ;;  %vm9961_vm3 = vcmp.eq.s32.totalorder %v181_v44, %v9636_v58  ;;  %vm9966_vm2 = vcmp.eq.s32.totalorder %v405_v45, %v9636_v58 }
  0x44   :  { %v13465_v54 = vsel %vm9966_vm2, 4294967295, %v13464_v54  ;;  %v167_v40 = vand.u32 31, %v39_v9  ;;  %v391_v41 = vand.u32 31, %v71_v10  ;;  %v70_v43 = vadd.s32 328, %v9654_v63 }
  0x45   :  { %vm9867_vm1 = vcmp.eq.s32.totalorder %v307_v53, %v9636_v58  ;;  %v13461_v53 = vmov 0  ;;  %13466 = vst [vmem:[#allocation38_spill] sm:$0xff] %v13465_v54  ;;  %v174_v57 = vand.u32 31, %v40_v5  ;;  %v272_v44 = vand.u32 31, %v54_v16 }
  0x46   :  { %v13432_v60 = vsel %vm9867_vm1, 4294967295, %v13431_v60  ;;  %v13462_v53 = vsel %vm9961_vm3, 4294967295, %v13461_v53  ;;  %v496_v45 = vand.u32 31, %v86_v20  ;;  %v53_v5 = vadd.s32 192, %v9654_v63 }
  0x47   :  { %7433 = vmatmul.mubr.msk.f32.vlgmr.msra.gmra.mxu0 %vm13007_vm15, %v1830_v39  ;;  %7442 = vmatmul.mubr.msk.f32.vlgmr.msra.gmra.mxu1 %vm13007_vm15, %v1830_v39  ;;  %vm9851_vm15 = vcmp.eq.s32.totalorder %v202_v47, %v9636_v58  ;;  %13433 = vst [vmem:[#allocation27_spill] sm:$0xff] %v13432_v60  ;;  %v13458_v39 = vmov 0  ;;  %v286_v47 = vand.u32 31, %v56_v42  ;;  %13463 = vst [vmem:[#allocation37_spill] sm:$0xff] %v13462_v53  ;;  %v38_v42 = vadd.s32 72, %v9654_v63 }
  0x48   :  { %v13426_v55 = vsel %vm9851_vm15, 4294967295, %v13425_v55  ;;  %8432 = vmatpush3.msk.msra.mxu0 %vm9851_vm15, %v13068_v21  ;;  %8467 = vmatpush3.msk.msra.mxu1 %vm9856_vm0, %v13068_v21  ;;  %v13459_v39 = vsel %vm9942_vm4, 4294967295, %v13458_v39  ;;  %v85_v46 = vadd.s32 448, %v9654_v63  ;;  %v384_v50 = vand.u32 31, %v70_v43 }
  0x49   :  { %13427 = vst [vmem:[#allocation25_spill] sm:$0xff] %v13426_v55  ;;  %8433 = vmatprep.subr.msk.mxu0 %vm9867_vm1, %v13068_v21  ;;  %8468 = vmatprep.subr.msk.mxu1 %vm9872_vm14, %v13068_v21  ;;  %13460 = vst [vmem:[#allocation36_spill] sm:$0xff] %v13459_v39  ;;  %v160_v49 = vand.u32 31, %v38_v42  ;;  %v13497_v9 = vmov 0  ;;  %v13500_v10 = vmov 0  ;;  %v37_v16 = vadd.s32 64, %v9654_v63 }
  0x4a   :  { %8434 = vmatpush3.msk.msra.mxu0 %vm9885_vm11, %v13068_v21  ;;  %8469 = vmatpush3.msk.msra.mxu1 %vm9890_vm10, %v13068_v21  ;;  %v69_v20 = vadd.s32 320, %v9654_v63  ;;  %v52_v42 = vadd.s32 184, %v9654_v63  ;;  %v84_v43 = vadd.s32 440, %v9654_v63  ;;  %v13509_v38 = vmov 0 }
  0x4b   :  { %8435 = vmatprep.subr.msk.mxu0 %vm9905_vm9, %v13068_v21  ;;  %8470 = vmatprep.subr.msk.mxu1 %vm9910_vm8, %v13068_v21  ;;  %v13515_v2 = vmov 1.0  }
  0x4c   :  { %8436 = vmatpush3.msk.msra.mxu0 %vm9921_vm7, %v13068_v21  ;;  %8471 = vmatpush3.msk.msra.mxu1 %vm9926_vm6, %v13068_v21 }
  0x4d   :  { %8437 = vmatprep.subr.msk.mxu0 %vm9937_vm5, %v13068_v21  ;;  %8472 = vmatprep.subr.msk.mxu1 %vm9942_vm4, %v13068_v21  ;;  %vm9977_vm4 = vcmp.eq.s32.totalorder %v286_v47, %v9636_v58  ;;  %vm9982_vm5 = vcmp.eq.s32.totalorder %v510_v48, %v9636_v58  ;;  %v13485_v47 = vmov 0  ;;  %v13488_v48 = vmov 0 }
  0x4e   :  { %8438 = vmatpush3.msk.msra.mxu0 %vm9961_vm3, %v13068_v21  ;;  %8473 = vmatpush3.msk.msra.mxu1 %vm9966_vm2, %v13068_v21  ;;  %v13468_v62 = vsel %vm9977_vm4, 4294967295, %v13467_v62  ;;  %v13471_v0 = vsel %vm9982_vm5, 4294967295, %v13470_v0  ;;  %vm9993_vm2 = vcmp.eq.s32.totalorder %v174_v57, %v9636_v58  ;;  %vm9998_vm3 = vcmp.eq.s32.totalorder %v398_v59, %v9636_v58 }
  0x4f   :  { %13469 = vst [vmem:[#allocation39_spill] sm:$0xff] %v13468_v62  ;;  %13472 = vst [vmem:[#allocation40_spill] sm:$0xff] %v13471_v0  ;;  %8439 = vmatprep.subr.msk.mxu0 %vm9977_vm4, %v13068_v21  ;;  %8474 = vmatprep.subr.msk.mxu1 %vm9982_vm5, %v13068_v21  ;;  %v13474_v7 = vsel %vm9993_vm2, 4294967295, %v13473_v7  ;;  %v13477_v8 = vsel %vm9998_vm3, 4294967295, %v13476_v8  ;;  %vm10011_vm5 = vcmp.eq.s32.totalorder %v279_v4, %v9636_v58  ;;  %v13491_v57 = vmov 0 }
  0x50   :  { %13475 = vst [vmem:[#allocation41_spill] sm:$0xff] %v13474_v7  ;;  %13478 = vst [vmem:[#allocation42_spill] sm:$0xff] %v13477_v8  ;;  %8440 = vmatpush3.msk.msra.mxu0 %vm9993_vm2, %v13068_v21  ;;  %8475 = vmatpush3.msk.msra.mxu1 %vm9998_vm3, %v13068_v21  ;;  %v13480_v11 = vsel %vm10011_vm5, 4294967295, %v13479_v11  ;;  %vm10016_vm4 = vcmp.eq.s32.totalorder %v503_v6, %v9636_v58  ;;  %vm10033_vm3 = vcmp.eq.s32.totalorder %v167_v40, %v9636_v58  ;;  %v13494_v59 = vmov 0 }
  0x51   :  { %13481 = vst [vmem:[#allocation43_spill] sm:$0xff] %v13480_v11  ;;  %v13483_v13 = vsel %vm10016_vm4, 4294967295, %v13482_v13  ;;  %8441 = vmatprep.subr.msk.mxu0 %vm10011_vm5, %v13068_v21  ;;  %8476 = vmatprep.subr.msk.mxu1 %vm10016_vm4, %v13068_v21  ;;  %v13486_v47 = vsel %vm10033_vm3, 4294967295, %v13485_v47  ;;  %vm10038_vm5 = vcmp.eq.s32.totalorder %v391_v41, %v9636_v58  ;;  %vm10049_vm4 = vcmp.eq.s32.totalorder %v272_v44, %v9636_v58 }
  0x52   :  { %13484 = vst [vmem:[#allocation44_spill] sm:$0xff] %v13483_v13  ;;  %13487 = vst [vmem:[#allocation45_spill] sm:$0xff] %v13486_v47  ;;  %v13489_v48 = vsel %vm10038_vm5, 4294967295, %v13488_v48  ;;  %8442 = vmatpush3.msk.msra.mxu0 %vm10033_vm3, %v13068_v21  ;;  %8477 = vmatpush3.msk.msra.mxu1 %vm10038_vm5, %v13068_v21  ;;  %v13492_v57 = vsel %vm10049_vm4, 4294967295, %v13491_v57  ;;  %vm10054_vm2 = vcmp.eq.s32.totalorder %v496_v45, %v9636_v58  ;;  %v265_v4 = vand.u32 31, %v53_v5 }
  0x53   :  { %13490 = vst [vmem:[#allocation46_spill] sm:$0xff] %v13489_v48  ;;  %13493 = vst [vmem:[#allocation47_spill] sm:$0xff] %v13492_v57  ;;  %v13495_v59 = vsel %vm10054_vm2, 4294967295, %v13494_v59  ;;  %v489_v6 = vand.u32 31, %v85_v46  ;;  %8443 = vmatprep.subr.msk.mxu0 %vm10049_vm4, %v13068_v21  ;;  %8478 = vmatprep.subr.msk.mxu1 %vm10054_vm2, %v13068_v21  ;;  %vm10065_vm5 = vcmp.eq.s32.totalorder %v160_v49, %v9636_v58  ;;  %v13503_v40 = vmov 0 }
  0x54   :  { %13496 = vst [vmem:[#allocation48_spill] sm:$0xff] %v13495_v59  ;;  %v13498_v9 = vsel %vm10065_vm5, 4294967295, %v13497_v9  ;;  %vm10070_vm3 = vcmp.eq.s32.totalorder %v384_v50, %v9636_v58  ;;  %8444 = vmatpush3.msk.msra.mxu0 %vm10065_vm5, %v13068_v21  ;;  %vm10083_vm2 = vcmp.eq.s32.totalorder %v265_v4, %v9636_v58  ;;  %v13506_v41 = vmov 0 }
  0x55   :  { %13499 = vst [vmem:[#allocation49_spill] sm:$0xff] %v13498_v9  ;;  %v13501_v10 = vsel %vm10070_vm3, 4294967295, %v13500_v10  ;;  %8479 = vmatpush3.msk.msra.mxu1 %vm10070_vm3, %v13068_v21  ;;  %v13504_v40 = vsel %vm10083_vm2, 4294967295, %v13503_v40  ;;  %vm10088_vm4 = vcmp.eq.s32.totalorder %v489_v6, %v9636_v58  ;;  %8445 = vmatprep.subr.msk.mxu0 %vm10083_vm2, %v13068_v21  ;;  %v153_v44 = vand.u32 31, %v37_v16 }
  0x56   :  { %13502 = vst [vmem:[#allocation50_spill] sm:$0xff] %v13501_v10  ;;  %13505 = vst [vmem:[#allocation51_spill] sm:$0xff] %v13504_v40  ;;  %v13507_v41 = vsel %vm10088_vm4, 4294967295, %v13506_v41  ;;  %8480 = vmatprep.subr.msk.mxu1 %vm10088_vm4, %v13068_v21  ;;  %v377_v45 = vand.u32 31, %v69_v20  ;;  %v36_v5 = vadd.s32 56, %v9654_v63  ;;  %v68_v46 = vadd.s32 312, %v9654_v63 }
  0x57   :  { %13508 = vst [vmem:[#allocation52_spill] sm:$0xff] %v13507_v41  ;;  %v258_v49 = vand.u32 31, %v52_v42  ;;  %v482_v50 = vand.u32 31, %v84_v43  ;;  %v51_v4 = vadd.s32 176, %v9654_v63  ;;  %v83_v6 = vadd.s32 432, %v9654_v63 }
  0x58   :  { %vm10105_vm3 = vcmp.eq.s32.totalorder %v153_v44, %v9636_v58  ;;  %vm10110_vm2 = vcmp.eq.s32.totalorder %v377_v45, %v9636_v58  ;;  %v13512_v21 = vmov 0  ;;  %v146_v16 = vand.u32 31, %v36_v5 }
  0x59   :  { %v13510_v38 = vsel %vm10105_vm3, 4294967295, %v13509_v38  ;;  %v13513_v21 = vsel %vm10110_vm2, 4294967295, %v13512_v21  ;;  %v370_v20 = vand.u32 31, %v68_v46  ;;  %8446 = vmatpush3.msk.msra.mxu0 %vm10105_vm3, %v13515_v2  ;;  %8481 = vmatpush3.msk.msra.mxu1 %vm10110_vm2, %v13515_v2  ;;  %vm10121_vm4 = vcmp.eq.s32.totalorder %v258_v49, %v9636_v58 }
  0x5a   :  { %13511 = vst [vmem:[#allocation53_spill] sm:$0xff] %v13510_v38  ;;  %13514 = vst [vmem:[#allocation54_spill] sm:$0xff] %v13513_v21  ;;  %v13516_v42 = vmov 0  ;;  %vm10126_vm5 = vcmp.eq.s32.totalorder %v482_v50, %v9636_v58  ;;  %v13519_v43 = vmov 0  ;;  %v251_v44 = vand.u32 31, %v51_v4  ;;  %8447 = vmatprep.subr.msk.mxu0 %vm10121_vm4, %v13515_v2 }
  0x5b   :  { %v13517_v42 = vsel %vm10121_vm4, 4294967295, %v13516_v42  ;;  %v13520_v43 = vsel %vm10126_vm5, 4294967295, %v13519_v43  ;;  %v475_v45 = vand.u32 31, %v83_v6  ;;  %8482 = vmatprep.subr.msk.mxu1 %vm10126_vm5, %v13515_v2  ;;  %vm10137_vm2 = vcmp.eq.s32.totalorder %v146_v16, %v9636_v58 }
  0x5c   :  { %13518 = vst [vmem:[#allocation55_spill] sm:$0xff] %v13517_v42  ;;  %13521 = vst [vmem:[#allocation56_spill] sm:$0xff] %v13520_v43  ;;  %v13522_v5 = vmov 0  ;;  %vm10142_vm3 = vcmp.eq.s32.totalorder %v370_v20, %v9636_v58  ;;  %v13525_v46 = vmov 0  ;;  %v35_v49 = vadd.s32 48, %v9654_v63  ;;  %8448 = vmatpush3.msk.msra.mxu0 %vm10137_vm2, %v13515_v2 }
  0x5d   :  { %v13523_v5 = vsel %vm10137_vm2, 4294967295, %v13522_v5  ;;  %v13526_v46 = vsel %vm10142_vm3, 4294967295, %v13525_v46  ;;  %v67_v50 = vadd.s32 304, %v9654_v63  ;;  %8483 = vmatpush3.msk.msra.mxu1 %vm10142_vm3, %v13515_v2  ;;  %vm10155_vm5 = vcmp.eq.s32.totalorder %v251_v44, %v9636_v58 }
  0x5e   :  { %13524 = vst [vmem:[#allocation57_spill] sm:$0xff] %v13523_v5  ;;  %13527 = vst [vmem:[#allocation58_spill] sm:$0xff] %v13526_v46  ;;  %v13528_v4 = vmov 0  ;;  %vm10160_vm4 = vcmp.eq.s32.totalorder %v475_v45, %v9636_v58  ;;  %v13531_v6 = vmov 0  ;;  %v50_v16 = vadd.s32 168, %v9654_v63  ;;  %8449 = vmatprep.subr.msk.mxu0 %vm10155_vm5, %v13515_v2 }
  0x5f   :  { %v13529_v4 = vsel %vm10155_vm5, 4294967295, %v13528_v4  ;;  %v13532_v6 = vsel %vm10160_vm4, 4294967295, %v13531_v6  ;;  %v82_v20 = vadd.s32 424, %v9654_v63  ;;  %8484 = vmatprep.subr.msk.mxu1 %vm10160_vm4, %v13515_v2  ;;  %v139_v44 = vand.u32 31, %v35_v49 }
  0x60   :  { %13530 = vst [vmem:[#allocation59_spill] sm:$0xff] %v13529_v4  ;;  %13533 = vst [vmem:[#allocation60_spill] sm:$0xff] %v13532_v6  ;;  %v363_v37 = vand.u32 31, %v67_v50  ;;  %v66_v45 = vadd.s32 296, %v9654_v63  ;;  %v244_v34 = vand.u32 31, %v50_v16  ;;  %v132_v49 = vand.u32 31, %v34_v36 }
  0x61   :  { %v468_v33 = vand.u32 31, %v82_v20  ;;  %vm10177_vm3 = vcmp.eq.s32.totalorder %v139_v44, %v9636_v58  ;;  %v13540_v16 = vmov 0  ;;  %v237_v36 = vand.u32 31, %v49_v32 }
  0x62   :  { %v13535_v30 = vsel %vm10177_vm3, 4294967295, %v13534_v30  ;;  %vm10182_vm5 = vcmp.eq.s32.totalorder %v363_v37, %v9636_v58  ;;  %v356_v50 = vand.u32 31, %v66_v45  ;;  %8450 = vmatpush3.msk.msra.mxu0 %vm10177_vm3, %v13515_v2  ;;  %vm10193_vm4 = vcmp.eq.s32.totalorder %v244_v34, %v9636_v58 }
  0x63   :  { %13536 = vst [vmem:[#allocation61_spill] sm:$0xff] %v13535_v30  ;;  %v13538_v29 = vsel %vm10182_vm5, 4294967295, %v13537_v29  ;;  %8485 = vmatpush3.msk.msra.mxu1 %vm10182_vm5, %v13515_v2  ;;  %v13541_v16 = vsel %vm10193_vm4, 4294967295, %v13540_v16  ;;  %vm10198_vm2 = vcmp.eq.s32.totalorder %v468_v33, %v9636_v58  ;;  %v13543_v37 = vmov 0  ;;  %8451 = vmatprep.subr.msk.mxu0 %vm10193_vm4, %v13515_v2 }
  0x64   :  { %13539 = vst [vmem:[#allocation62_spill] sm:$0xff] %v13538_v29  ;;  %13542 = vst [vmem:[#allocation63_spill] sm:$0xff] %v13541_v16  ;;  %v13544_v37 = vsel %vm10198_vm2, 4294967295, %v13543_v37  ;;  %v461_v20 = vand.u32 31, %v81_v31  ;;  %8486 = vmatprep.subr.msk.mxu1 %vm10198_vm2, %v13515_v2  ;;  %vm10209_vm5 = vcmp.eq.s32.totalorder %v132_v49, %v9636_v58  ;;  %v13546_v34 = vmov 0 }
  0x65   :  { %13545 = vst [vmem:[#allocation64_spill] sm:$0xff] %v13544_v37  ;;  %v13547_v34 = vsel %vm10209_vm5, 4294967295, %v13546_v34  ;;  %vm10214_vm3 = vcmp.eq.s32.totalorder %v356_v50, %v9636_v58  ;;  %v13549_v33 = vmov 0  ;;  %v33_v31 = vadd.s32 32, %v9654_v63  ;;  %8452 = vmatpush3.msk.msra.mxu0 %vm10209_vm5, %v13515_v2 }
  0x66   :  { %13548 = vst [vmem:[#allocation65_spill] sm:$0xff] %v13547_v34  ;;  %v13550_v33 = vsel %vm10214_vm3, 4294967295, %v13549_v33  ;;  %v65_v32 = vadd.s32 288, %v9654_v63  ;;  %8487 = vmatpush3.msk.msra.mxu1 %vm10214_vm3, %v13515_v2  ;;  %vm10227_vm2 = vcmp.eq.s32.totalorder %v237_v36, %v9636_v58  ;;  %v13552_v44 = vmov 0 }
  0x67   :  { %13551 = vst [vmem:[#allocation66_spill] sm:$0xff] %v13550_v33  ;;  %v13553_v44 = vsel %vm10227_vm2, 4294967295, %v13552_v44  ;;  %vm10232_vm4 = vcmp.eq.s32.totalorder %v461_v20, %v9636_v58  ;;  %v13555_v45 = vmov 0  ;;  %v48_v49 = vadd.s32 152, %v9654_v63  ;;  %8453 = vmatprep.subr.msk.mxu0 %vm10227_vm2, %v13515_v2 }
  0x68   :  { %13554 = vst [vmem:[#allocation67_spill] sm:$0xff] %v13553_v44  ;;  %v13556_v45 = vsel %vm10232_vm4, 4294967295, %v13555_v45  ;;  %v80_v50 = vadd.s32 408, %v9654_v63  ;;  %8488 = vmatprep.subr.msk.mxu1 %vm10232_vm4, %v13515_v2  ;;  %v125_v36 = vand.u32 31, %v33_v31  ;;  %v349_v26 = vand.u32 31, %v65_v32 }
  0x69   :  { %13557 = vst [vmem:[#allocation68_spill] sm:$0xff] %v13556_v45  ;;  %v64_v20 = vadd.s32 280, %v9654_v63  ;;  %v230_v23 = vand.u32 31, %v48_v49  ;;  %v13558_v44 = vmov 0  ;;  %v13561_v45 = vmov 0 }
  0x6a   :  { %v454_v22 = vand.u32 31, %v80_v50  ;;  %vm10249_vm3 = vcmp.eq.s32.totalorder %v125_v36, %v9636_v58  ;;  %vm10254_vm2 = vcmp.eq.s32.totalorder %v349_v26, %v9636_v58  ;;  %vm10259_vm4 = vcmp.eq.s32.totalorder %v118_v25, %v9636_v58 }
  0x6b   :  { %v13559_v44 = vsel %vm10249_vm3, 4294967295, %v13558_v44  ;;  %v13562_v45 = vsel %vm10254_vm2, 4294967295, %v13561_v45  ;;  %v13565_v12 = vsel %vm10259_vm4, 4294967295, %v13564_v12  ;;  %v342_v31 = vand.u32 31, %v64_v20  ;;  %8454 = vmatpush3.msk.msra.mxu0 %vm10249_vm3, %v13515_v2  ;;  %8489 = vmatpush3.msk.msra.mxu1 %vm10254_vm2, %v13515_v2 }
  0x6c   :  { %13560 = vst [vmem:[#allocation69_spill] sm:$0xff] %v13559_v44  ;;  %13563 = vst [vmem:[#allocation70_spill] sm:$0xff] %v13562_v45  ;;  %vm10270_vm5 = vcmp.eq.s32.totalorder %v230_v23, %v9636_v58  ;;  %v13567_v26 = vmov 0  ;;  %vm10275_vm6 = vcmp.eq.s32.totalorder %v454_v22, %v9636_v58  ;;  %v13570_v25 = vmov 0 }
  0x6d   :  { %13566 = vst [vmem:[#allocation71_spill] sm:$0xff] %v13565_v12  ;;  %v13568_v26 = vsel %vm10270_vm5, 4294967295, %v13567_v26  ;;  %v13571_v25 = vsel %vm10275_vm6, 4294967295, %v13570_v25  ;;  %v223_v32 = vand.u32 31, %v47_v18  ;;  %v447_v49 = vand.u32 31, %v79_v17  ;;  %8455 = vmatprep.subr.msk.mxu0 %vm10270_vm5, %v13515_v2  ;;  %8490 = vmatprep.subr.msk.mxu1 %vm10275_vm6, %v13515_v2 }
  0x6e   :  { %13569 = vst [vmem:[#allocation72_spill] sm:$0xff] %v13568_v26  ;;  %13572 = vst [vmem:[#allocation73_spill] sm:$0xff] %v13571_v25  ;;  %vm10286_vm2 = vcmp.eq.s32.totalorder %v342_v31, %v9636_v58  ;;  %v13573_v23 = vmov 0  ;;  %v111_v22 = vand.u32 31, %v9690_v19  ;;  %v63_v50 = vadd.s32 272, %v9654_v63  ;;  %8456 = vmatpush3.msk.msra.mxu0 %vm10259_vm4, %v13515_v2 }
  0x6f   :  { %v13574_v23 = vsel %vm10286_vm2, 4294967295, %v13573_v23  ;;  %v46_v18 = vadd.s32 136, %v9654_v63  ;;  %8491 = vmatpush3.msk.msra.mxu1 %vm10286_vm2, %v13515_v2  ;;  %vm10300_vm6 = vcmp.eq.s32.totalorder %v223_v32, %v9636_v58  ;;  %v13576_v17 = vmov 0 }
  0x70   :  { %13575 = vst [vmem:[#allocation74_spill] sm:$0xff] %v13574_v23  ;;  %v13577_v17 = vsel %vm10300_vm6, 4294967295, %v13576_v17  ;;  %vm10305_vm5 = vcmp.eq.s32.totalorder %v447_v49, %v9636_v58  ;;  %v13579_v19 = vmov 0  ;;  %v78_v36 = vadd.s32 392, %v9654_v63 }
  0x71   :  { %13578 = vst [vmem:[#allocation75_spill] sm:$0xff] %v13577_v17  ;;  %v13580_v19 = vsel %vm10305_vm5, 4294967295, %v13579_v19  ;;  %v104_v20 = vand.u32 31, %v9709_v24 }
  0x72   :  { %13581 = vst [vmem:[#allocation76_spill] sm:$0xff] %v13580_v19 }
  0x73   :  { %12 = vsyncpa [#allocation5], 0  ;;  %8457 = vmatprep.subr.msk.mxu0 %vm10300_vm6, %v13515_v2  ;;  %8492 = vmatprep.subr.msk.mxu1 %vm10305_vm5, %v13515_v2  ;;  %vm10318_vm2 = vcmp.eq.s32.totalorder %v111_v22, %v9636_v58  ;;  %v13582_v31 = vmov 0  ;;  %v335_v32 = vand.u32 31, %v63_v50  ;;  %v216_v49 = vand.u32 31, %v46_v18  ;;  %s9420_s9 = smov 96  }
  0x74   :  { %v13583_v31 = vsel %vm10318_vm2, 4294967295, %v13582_v31  ;;  %v62_v23 = vadd.s32 264, %v9654_v63  ;;  %8458 = vmatpush3.msk.msra.mxu0 %vm10318_vm2, %v13515_v2  ;;  %v440_v24 = vand.u32 31, %v78_v36  ;;  %vm10327_vm6 = vcmp.eq.s32.totalorder %v104_v20, %v9636_v58  ;;  %s9421_s1 = smov 32   ;;  %s9423_s18 = smov [#allocation4]  }
  0x75   :  { %13584 = vst [vmem:[#allocation77_spill] sm:$0xff] %v13583_v31  ;;  %v13585_v17 = vmov 0  ;;  %v45_v19 = vadd.s32 128, %v9654_v63  ;;  %v77_v22 = vadd.s32 384, %v9654_v63  ;;  %vm10334_vm5 = vcmp.eq.s32.totalorder %v335_v32, %v9636_v58  ;;  %s7245_s19 = sshll.u32 %s9423_s18, 4  ;;  %s7246_s19 = int_to_ptr.vmem [resolvable:$true] %s7245_s19 }
  0x76   :  { %v13586_v17 = vsel %vm10327_vm6, 4294967295, %v13585_v17  ;;  %v13588_v50 = vmov 0  ;;  %vm10339_vm4 = vcmp.eq.s32.totalorder %v216_v49, %v9636_v58  ;;  %v13591_v18 = vmov 0  ;;  %8493 = vmatpush3.msk.msra.mxu1 %vm10334_vm5, %v13515_v2  ;;  %s9394_s20 = scalar_lea.vmem %s7246_s19, 32  ;;  %p9399_p1 = scmp.lt.s32.totalorder %s7246_s19, %s7246_s19 }
  0x77   :  { %13587 = vst [vmem:[#allocation78_spill] sm:$0xff] %v13586_v17  ;;  %v13589_v50 = vsel %vm10334_vm5, 4294967295, %v13588_v50  ;;  %v13592_v18 = vsel %vm10339_vm4, 4294967295, %v13591_v18  ;;  %v328_v36 = vand.u32 31, %v62_v23  ;;  %v97_v20 = vand.u32 31, %v9654_v63  ;;  %8459 = vmatprep.subr.msk.mxu0 %vm10339_vm4, %v13515_v2  ;;  %p9395_p0 = scmp.ne.s32.totalorder %s7246_s19, %s9394_s20  ;;  %p9400_p2 = scmp.lt.s32.totalorder %s9394_s20, %s9394_s20 }
  0x78   :  { %13590 = vst [vmem:[#allocation79_spill] sm:$0xff] %v13589_v50  ;;  %13593 = vst [vmem:[#allocation80_spill] sm:$0xff] %v13592_v18  ;;  %vm10351_vm2 = vcmp.eq.s32.totalorder %v440_v24, %v9636_v58  ;;  %v13594_v32 = vmov 0  ;;  %v209_v49 = vand.u32 31, %v45_v19  ;;  %v433_v31 = vand.u32 31, %v77_v22  ;;  %8460 = vmatpush3.msk.msra.mxu0 %vm10327_vm6, %v13515_v2 }
  0x79   :  { %v13595_v32 = vsel %vm10351_vm2, 4294967295, %v13594_v32  ;;  %v61_v12 = vadd.s32 256, %v9654_v63  ;;  %8494 = vmatprep.subr.msk.mxu1 %vm10351_vm2, %v13515_v2  ;;  %vm10363_vm5 = vcmp.eq.s32.totalorder %v328_v36, %v9636_v58  ;;  %v13597_v23 = vmov 0  ;;  %p9401_p3 = por %p9400_p2, %p9399_p1 }
  0x7a   :  { %13596 = vst [vmem:[#allocation81_spill] sm:$0xff] %v13595_v32  ;;  %v13598_v23 = vsel %vm10363_vm5, 4294967295, %v13597_v23  ;;  %vm10368_vm4 = vcmp.eq.s32.totalorder %v97_v20, %v9636_v58  ;;  %v13600_v24 = vmov 0  ;;  %8495 = vmatpush3.msk.msra.mxu1 %vm10363_vm5, %v13515_v2  ;;  %vm10376_vm2 = vcmp.eq.s32.totalorder %v209_v49, %v9636_v58 }
  0x7b   :  { %13599 = vst [vmem:[#allocation82_spill] sm:$0xff] %v13598_v23  ;;  %v13601_v24 = vsel %vm10368_vm4, 4294967295, %v13600_v24  ;;  %v13603_v19 = vmov 0  ;;  %vm10381_vm6 = vcmp.eq.s32.totalorder %v433_v31, %v9636_v58  ;;  %v13606_v22 = vmov 0  ;;  %8461 = vmatprep.subr.msk.mxu0 %vm10376_vm2, %v13515_v2  ;;  %p9402_p4 = pnand %p9401_p3, %p9395_p0 }
  0x7c   :  { %13602 = vst [vmem:[#allocation83_spill] sm:$0xff] %v13601_v24  ;;  %v13604_v19 = vsel %vm10376_vm2, 4294967295, %v13603_v19  ;;  %v13607_v22 = vsel %vm10381_vm6, 4294967295, %v13606_v22  ;;  %v321_v36 = vand.u32 31, %v61_v12  ;;  %8496 = vmatprep.subr.msk.mxu1 %vm10381_vm6, %v13515_v2  ;;  %8462 = vmatpush3.msk.msra.mxu0 %vm10368_vm4, %v13515_v2  ;;  %v13609_v20 = vmov 0 }
  0x7d   :  { %13605 = vst [vmem:[#allocation84_spill] sm:$0xff] %v13604_v19  ;;  %13608 = vst [vmem:[#allocation85_spill] sm:$0xff] %v13607_v22  ;;  %8501 = vmatprep.subr.msk.mxu0 %vm9835_vm12, %v13515_v2  ;;  %v10413_v0 = vsub.s32 0, %v9654_v63 }
  0x7e   :  { %vm10395_vm5 = vcmp.eq.s32.totalorder %v321_v36, %v9636_v58 }
  0x7f   :  { %v13610_v20 = vsel %vm10395_vm5, 4294967295, %v13609_v20  ;;  %8497 = vmatpush3.msk.msra.mxu1 %vm10395_vm5, %v13515_v2  ;;  %13613 = vst [vmem:[#allocation88_spill] sm:$0xff] %v10413_v0 }
  0x80   :  { %13611 = vst [vmem:[#allocation86_spill] sm:$0xff] %v13610_v20  ;;  %8536 = vmatprep.subr.msk.mxu1 %vm9840_vm13, %v13515_v2 }
  0xd7   :  { %v1335_v12 = vpop.f32.mrf.mxu0  ;;  %v1388_v31 = vpop.f32.mrf.mxu1 }
  0xd9   :  { %v1337_v49 = vpop.f32.mrf.mxu0  ;;  %v1390_v24 = vpop.f32.mrf.mxu1 }
  0xdb   :  { %v1339_v58 = vpop.f32.mrf.mxu0  ;;  %v1392_v36 = vpop.f32.mrf.mxu1 }
  0xdd   :  { %v1341_v22 = vpop.f32.mrf.mxu0  ;;  %v1394_v19 = vpop.f32.mrf.mxu1 }
  0xdf   :  { %v1345_v23 = vpop.f32.mrf.mxu0  ;;  %v1398_v17 = vpop.f32.mrf.mxu1 }
  0xe1   :  { %v1347_v20 = vpop.f32.mrf.mxu0  ;;  %v1400_v32 = vpop.f32.mrf.mxu1 }
  0xe3   :  { %v1349_v18 = vpop.f32.mrf.mxu0  ;;  %v1402_v50 = vpop.f32.mrf.mxu1 }
  0xe5   :  { %v10408_v51 = vpop.f32.mrf.mxu0  ;;  %v10410_v25 = vpop.f32.mrf.mxu1 }
  0xe6   :  { %13612 = vst [vmem:[#allocation87_spill] sm:$0xff] %v10410_v25 }
  0xe7   :  { %v1527_v52 = vpop.f32.mrf.mxu0  ;;  %v1580_v26 = vpop.f32.mrf.mxu1 }
  0xe8   :  { %v1528_v62 = vadd.f32 %v1527_v52, %v1335_v12  ;;  %v1581_v54 = vadd.f32 %v1580_v26, %v1388_v31 }
  0xe9   :  { %v1529_v45 = vpop.f32.mrf.mxu0  ;;  %v1582_v44 = vpop.f32.mrf.mxu1 }
  0xea   :  { %v1530_v53 = vadd.f32 %v1529_v45, %v1337_v49  ;;  %v1583_v28 = vadd.f32 %v1582_v44, %v1390_v24 }
  0xeb   :  { %v1531_v33 = vpop.f32.mrf.mxu0  ;;  %v1584_v34 = vpop.f32.mrf.mxu1 }
  0xec   :  { %v1532_v27 = vadd.f32 %v1531_v33, %v1339_v58  ;;  %v1585_v15 = vadd.f32 %v1584_v34, %v1392_v36 }
  0xed   :  { %v1533_v37 = vpop.f32.mrf.mxu0  ;;  %v1586_v16 = vpop.f32.mrf.mxu1 }
  0xee   :  { %v1534_v14 = vadd.f32 %v1533_v37, %v1341_v22  ;;  %v1587_v3 = vadd.f32 %v1586_v16, %v1394_v19 }
  0xef   :  { %v1537_v29 = vpop.f32.mrf.mxu0  ;;  %v1590_v30 = vpop.f32.mrf.mxu1 }
  0xf0   :  { %v1538_v1 = vadd.f32 %v1537_v29, %v1345_v23  ;;  %v1591_v61 = vadd.f32 %v1590_v30, %v1398_v17 }
  0xf1   :  { %v1539_v6 = vpop.f32.mrf.mxu0  ;;  %v1592_v4 = vpop.f32.mrf.mxu1 }
  0xf2   :  { %v1540_v60 = vadd.f32 %v1539_v6, %v1347_v20  ;;  %v1593_v26 = vadd.f32 %v1592_v4, %v1400_v32 }
  0xf3   :  { %v1541_v46 = vpop.f32.mrf.mxu0  ;;  %v1594_v5 = vpop.f32.mrf.mxu1 }
  0xf4   :  { %v1542_v44 = vadd.f32 %v1541_v46, %v1349_v18  ;;  %v1595_v16 = vadd.f32 %v1594_v5, %v1402_v50 }
  0xf5   :  { %v1543_v43 = vpop.f32.mrf.mxu0  ;;  %v1596_v42 = vpop.f32.mrf.mxu1 }
  0xf7   :  { %v1742_v21 = vpop.f32.mrf.mxu0  ;;  %v1795_v38 = vpop.f32.mrf.mxu1 }
  0xf8   :  { %v1814_v2 = vadd.f32 %v1742_v21, %v1528_v62  ;;  %v1816_v45 = vadd.f32 %v1795_v38, %v1581_v54 }
  0xf9   :  { %v1744_v41 = vpop.f32.mrf.mxu0  ;;  %v1797_v40 = vpop.f32.mrf.mxu1 }
  0xfb   :  { %v1746_v10 = vpop.f32.mrf.mxu0  ;;  %v1799_v9 = vpop.f32.mrf.mxu1 }
  0xfc   :  { %v1818_v25 = vadd.f32 %v1746_v10, %v1532_v27  ;;  %v1820_v12 = vadd.f32 %v1799_v9, %v1585_v15  ;;  %v13614_v27 = vld [vmem:[#allocation87_spill] sm:$0xff] }
  0xfd   :  { %v1748_v59 = vpop.f32.mrf.mxu0  ;;  %v1801_v57 = vpop.f32.mrf.mxu1  ;;  %v1597_v38 = vadd.f32 %v1596_v42, %v13614_v27 }
  0xfe   :  { %v1821_v9 = vadd.f32 %v1801_v57, %v1587_v3 }
  0xff   :  { %v1752_v48 = vpop.f32.mrf.mxu0  ;;  %v1805_v47 = vpop.f32.mrf.mxu1 }
 0x100   :  { %v1822_v31 = vadd.f32 %v1752_v48, %v1538_v1  ;;  %v1824_v33 = vadd.f32 %v1805_v47, %v1591_v61  ;;  %v1817_v61 = vadd.f32 %v1797_v40, %v1583_v28  ;;  %v1819_v48 = vadd.f32 %v1748_v59, %v1534_v14 }
 0x101   :  { %v1754_v13 = vpop.f32.mrf.mxu0  ;;  %v1807_v11 = vpop.f32.mrf.mxu1 }
 0x102   :  { %v1823_v42 = vadd.f32 %v1754_v13, %v1540_v60 }
 0x103   :  { %v1756_v8 = vpop.f32.mrf.mxu0  ;;  %v1809_v7 = vpop.f32.mrf.mxu1 }
 0x104   :  { %v1826_v17 = vadd.f32 %v1756_v8, %v1542_v44  ;;  %v1828_v5 = vadd.f32 %v1809_v7, %v1595_v16 }
 0x105   :  { %v1758_v39 = vpop.f32.mrf.mxu0  ;;  %v1811_v35 = vpop.f32.mrf.mxu1 }
 0x106   :  { %v1829_v4 = vadd.f32 %v1811_v35, %v1597_v38 }
 0x107   :  { %v1901_v56 = vpop.f32.mrf.mxu0  ;;  %v1972_v55 = vpop.f32.mrf.mxu1 }
 0x108   :  { %v1980_v63 = vrot.slane %v1901_v56, %v10413_v0  ;;  %v1988_v52 = vrot.slane %v1972_v55, %v10413_v0  ;;  %v1544_v55 = vadd.f32 %v1543_v43, %v10408_v51  ;;  %v1825_v43 = vadd.f32 %v1807_v11, %v1593_v26 }
 0x109   :  { %v1903_v8 = vpop.f32.mrf.mxu0  ;;  %v1974_v47 = vpop.f32.mrf.mxu1 }
 0x10a   :  { %v1993_v34 = vadd.f32 %v1980_v63, %v1814_v2  ;;  %v1997_v37 = vadd.f32 %v1980_v63, %v1818_v25  ;;  %v2001_v29 = vadd.f32 %v1980_v63, %v1822_v31  ;;  %v1995_v30 = vadd.f32 %v1988_v52, %v1816_v45 }
 0x10b   :  { %v1999_v6 = vadd.f32 %v1988_v52, %v1820_v12  ;;  %v2003_v56 = vadd.f32 %v1988_v52, %v1824_v33  ;;  %v1815_v2 = vadd.f32 %v1744_v41, %v1530_v53  ;;  %v2005_v54 = vadd.f32 %v1980_v63, %v1826_v17 }
 0x10c   :  { %v10417_v23 = vmax.f32 %v1993_v34, 0.0  ;;  %v10419_v21 = vmax.f32 %v1997_v37, 0.0  ;;  %v10423_v15 = vmax.f32 %v1995_v30, 0.0  ;;  %v10429_v10 = vmax.f32 %v2001_v29, 0.0 }
 0x10d   :  { %v10425_v1 = vmax.f32 %v1999_v6, 0.0  ;;  %v10433_v46 = vmax.f32 %v2003_v56, 0.0  ;;  %v1827_v53 = vadd.f32 %v1758_v39, %v1544_v55  ;;  %v1984_v40 = vrot.slane %v1903_v8, %v10413_v0 }
 0x10e   :  { %v2025_v62 = vadd.f32 %v10419_v21, %v10417_v23  ;;  %v1992_v41 = vrot.slane %v1974_v47, %v10413_v0  ;;  %v10438_v14 = vmax.f32 %v2005_v54, 0.0  ;;  %v2007_v3 = vadd.f32 %v1988_v52, %v1828_v5 }
 0x10f   :  { %v2043_v51 = vadd.f32 %v10425_v1, %v10423_v15  ;;  %v1994_v59 = vadd.f32 %v1984_v40, %v1815_v2  ;;  %v1998_v25 = vadd.f32 %v1984_v40, %v1819_v48  ;;  %v2002_v60 = vadd.f32 %v1984_v40, %v1823_v42 }
 0x110   :  { %v2026_v28 = vadd.f32 %v2025_v62, %v10429_v10  ;;  %v2006_v11 = vadd.f32 %v1984_v40, %v1827_v53  ;;  %v1996_v7 = vadd.f32 %v1992_v41, %v1817_v61  ;;  %v2000_v13 = vadd.f32 %v1992_v41, %v1821_v9 }
 0x111   :  { %v2044_v57 = vadd.f32 %v2043_v51, %v10433_v46  ;;  %v2004_v50 = vadd.f32 %v1992_v41, %v1825_v43  ;;  %v2008_v39 = vadd.f32 %v1992_v41, %v1829_v4  ;;  %v10441_v18 = vmax.f32 %v1994_v59, 0.0 }
 0x112   :  { %v10443_v32 = vmax.f32 %v1998_v25, 0.0  ;;  %v10445_v24 = vmax.f32 %v2002_v60, 0.0  ;;  %v2027_v35 = vadd.f32 %v2026_v28, %v10438_v14  ;;  %v10448_v19 = vmax.f32 %v2007_v3, 0.0 }
 0x113   :  { %v10450_v22 = vmax.f32 %v1996_v7, 0.0  ;;  %v10452_v20 = vmax.f32 %v2000_v13, 0.0  ;;  %v10454_v49 = vmax.f32 %v2004_v50, 0.0  ;;  %v10456_v58 = vmax.f32 %v2006_v11, 0.0 }
 0x114   :  { %v2034_v36 = vadd.f32 %v10443_v32, %v10441_v18  ;;  %v2204_v63 = vmul.f32 %v10441_v18, %v10441_v18  ;;  %v2208_v52 = vmul.f32 %v10443_v32, %v10443_v32  ;;  %v10464_v26 = vmax.f32 %v2008_v39, 0.0 }
 0x115   :  { %v2052_v45 = vadd.f32 %v10452_v20, %v10450_v22  ;;  %v2206_v12 = vmul.f32 %v10450_v22, %v10450_v22  ;;  %v2210_v31 = vmul.f32 %v10452_v20, %v10452_v20  ;;  %v2212_v44 = vmul.f32 %v10445_v24, %v10445_v24 }
 0x116   :  { %v2035_v33 = vadd.f32 %v2034_v36, %v10445_v24  ;;  %v2028_v34 = vrot.slane %v2027_v35, 4  ;;  %v2045_v37 = vadd.f32 %v2044_v57, %v10448_v19  ;;  %v2214_v16 = vmul.f32 %v10454_v49, %v10454_v49 }
 0x117   :  { %v2053_v29 = vadd.f32 %v2052_v45, %v10454_v49  ;;  %v2228_v30 = vadd.f32 %v2208_v52, %v2204_v63  ;;  %v2246_v6 = vadd.f32 %v2210_v31, %v2206_v12  ;;  %v2216_v27 = vmul.f32 %v10456_v58, %v10456_v58 }
 0x118   :  { %v2036_v17 = vadd.f32 %v2035_v33, %v10456_v58  ;;  %v2029_v56 = vadd.f32 %v2028_v34, %v2027_v35  ;;  %v2046_v55 = vrot.slane %v2045_v37, 4  ;;  %v2218_v61 = vmul.f32 %v10464_v26, %v10464_v26 }
 0x119   :  { %v2054_v38 = vadd.f32 %v2053_v29, %v10464_v26  ;;  %v2229_v2 = vadd.f32 %v2228_v30, %v2212_v44  ;;  %v2247_v54 = vadd.f32 %v2246_v6, %v2214_v16  ;;  %v2203_v25 = vmul.f32 %v10417_v23, %v10417_v23 }
 0x11a   :  { %v2037_v62 = vrot.slane %v2036_v17, 4  ;;  %v2030_v8 = vrot.slane %v2029_v56, 2  ;;  %v2047_v47 = vadd.f32 %v2046_v55, %v2045_v37  ;;  %v2207_v39 = vmul.f32 %v10419_v21, %v10419_v21 }
 0x11b   :  { %v2055_v48 = vrot.slane %v2054_v38, 4  ;;  %v2230_v9 = vadd.f32 %v2229_v2, %v2216_v27  ;;  %v2248_v51 = vadd.f32 %v2247_v54, %v2218_v61  ;;  %v2205_v35 = vmul.f32 %v10423_v15, %v10423_v15  ;;  %v13617_v61 = vld [vmem:[#allocation26_spill] sm:$0xff]  ;;  %v13618_v54 = vld [vmem:[#allocation27_spill] sm:$0xff] }
 0x11c   :  { %v2038_v42 = vadd.f32 %v2037_v62, %v2036_v17  ;;  %v2048_v43 = vrot.slane %v2047_v47, 2  ;;  %v2031_v53 = vadd.f32 %v2030_v8, %v2029_v56  ;;  %v2209_v52 = vmul.f32 %v10425_v1, %v10425_v1  ;;  %v13619_v62 = vld [vmem:[#allocation28_spill] sm:$0xff] }
 0x11d   :  { %v2056_v5 = vadd.f32 %v2055_v48, %v2054_v38  ;;  %v2231_v28 = vrot.slane %v2230_v9, 4  ;;  %v2249_v40 = vrot.slane %v2248_v51, 4  ;;  %v2219_v29 = vadd.f32 %v2207_v39, %v2203_v25  ;;  %v13616_v38 = vld [vmem:[#allocation25_spill] sm:$0xff]  ;;  %v13635_v25 = vld [vmem:[#allocation39_spill] sm:$0xff]  ;;  %v13645_v39 = vld [vmem:[#allocation44_spill] sm:$0xff] }
 0x11e   :  { %v2039_v41 = vrot.slane %v2038_v42, 2  ;;  %v2049_v4 = vadd.f32 %v2048_v43, %v2047_v47  ;;  %v2032_v7 = vrot.slane %v2031_v53, 1  ;;  %v2237_v6 = vadd.f32 %v2209_v52, %v2205_v35  ;;  %v13620_v47 = vld [vmem:[#allocation29_spill] sm:$0xff]  ;;  %v13651_v52 = vld [vmem:[#allocation47_spill] sm:$0xff] }
 0x11f   :  { %v2057_v3 = vrot.slane %v2056_v5, 2  ;;  %v2232_v57 = vadd.f32 %v2231_v28, %v2230_v9  ;;  %v2250_v59 = vadd.f32 %v2249_v40, %v2248_v51  ;;  %v2211_v55 = vmul.f32 %v10429_v10, %v10429_v10  ;;  %v13621_v51 = vld [vmem:[#allocation30_spill] sm:$0xff]  ;;  %v13627_v40 = vld [vmem:[#allocation35_spill] sm:$0xff]  ;;  %v13647_v35 = vld [vmem:[#allocation45_spill] sm:$0xff] }
 0x120   :  { %v2040_v60 = vadd.f32 %v2039_v41, %v2038_v42  ;;  %v2050_v63 = vrot.slane %v2049_v4, 1  ;;  %v2033_v34 = vadd.f32 %v2032_v7, %v2031_v53  ;;  %v13615_v27 = vmov 1.0   ;;  %v13622_v42 = vld [vmem:[#allocation31_spill] sm:$0xff]  ;;  %v13625_v28 = vld [vmem:[#allocation34_spill] sm:$0xff] }
 0x121   :  { %v2058_v11 = vadd.f32 %v2057_v3, %v2056_v5  ;;  %v2233_v13 = vrot.slane %v2232_v57, 2  ;;  %v2251_v50 = vrot.slane %v2250_v59, 2  ;;  %v2213_v2 = vmul.f32 %v10433_v46, %v10433_v46  ;;  %v13631_v3 = vld [vmem:[#allocation37_spill] sm:$0xff]  ;;  %v13641_v7 = vld [vmem:[#allocation42_spill] sm:$0xff] }
 0x122   :  { %v2041_v36 = vrot.slane %v2040_v60, 1  ;;  %v2051_v30 = vadd.f32 %v2050_v63, %v2049_v4  ;;  %v2220_v8 = vadd.f32 %v2219_v29, %v2211_v55  ;;  %v2215_v9 = vmul.f32 %v10438_v14, %v10438_v14  ;;  %v13629_v4 = vld [vmem:[#allocation36_spill] sm:$0xff]  ;;  %v13649_v63 = vld [vmem:[#allocation46_spill] sm:$0xff]  ;;  %v13675_v55 = vld [vmem:[#allocation59_spill] sm:$0xff] }
 0x123   :  { %v2059_v45 = vrot.slane %v2058_v11, 1  ;;  %v2234_v12 = vadd.f32 %v2233_v13, %v2232_v57  ;;  %v2252_v31 = vadd.f32 %v2251_v50, %v2250_v59  ;;  %v2238_v48 = vadd.f32 %v2237_v6, %v2213_v2  ;;  %v13633_v59 = vld [vmem:[#allocation38_spill] sm:$0xff]  ;;  %v13643_v13 = vld [vmem:[#allocation43_spill] sm:$0xff]  ;;  %v13669_v6 = vld [vmem:[#allocation56_spill] sm:$0xff] }
 0x124   :  { %v2042_v44 = vadd.f32 %v2041_v36, %v2040_v60  ;;  %v2217_v43 = vmul.f32 %v10448_v19, %v10448_v19  ;;  %v2221_v41 = vadd.f32 %v2220_v8, %v2215_v9  ;;  %v13637_v60 = vld [vmem:[#allocation40_spill] sm:$0xff]  ;;  %v13665_v29 = vld [vmem:[#allocation54_spill] sm:$0xff] }
 0x125   :  { %v2060_v33 = vadd.f32 %v2059_v45, %v2058_v11  ;;  %v2235_v37 = vrot.slane %v2234_v12, 1  ;;  %v2253_v16 = vrot.slane %v2252_v31, 1  ;;  %v13639_v11 = vld [vmem:[#allocation41_spill] sm:$0xff]  ;;  %v13653_v45 = vld [vmem:[#allocation48_spill] sm:$0xff] }
 0x126   :  { %2125 = vmatprep.mubr.f32.mxu0 %v2042_v44  ;;  %v2239_v57 = vadd.f32 %v2238_v48, %v2217_v43  ;;  %v2222_v50 = vrot.slane %v2221_v41, 4  ;;  %v13659_v44 = vld [vmem:[#allocation51_spill] sm:$0xff]  ;;  %v13677_v8 = vld [vmem:[#allocation60_spill] sm:$0xff]  ;;  %v13679_v48 = vld [vmem:[#allocation61_spill] sm:$0xff] }
 0x127   :  { %2195 = vmatprep.mubr.f32.mxu1 %v2060_v33  ;;  %2126 = vmatmul.mubr.f32.vlgmr.msra.gmra.mxu0 %v2033_v34  ;;  %v2236_v17 = vadd.f32 %v2235_v37, %v2234_v12  ;;  %v2254_v56 = vadd.f32 %v2253_v16, %v2252_v31  ;;  %v13655_v12 = vld [vmem:[#allocation49_spill] sm:$0xff]  ;;  %v13657_v31 = vld [vmem:[#allocation50_spill] sm:$0xff]  ;;  %v13661_v34 = vld [vmem:[#allocation52_spill] sm:$0xff] }
 0x128   :  { %2196 = vmatmul.mubr.f32.vlgmr.msra.gmra.mxu1 %v2051_v30  ;;  %8502 = vmatpush3.msk.msra.mxu0 %vm9851_vm15, %v13615_v27  ;;  %v2240_v36 = vrot.slane %v2239_v57, 4  ;;  %v2223_v33 = vadd.f32 %v2222_v50, %v2221_v41  ;;  %v13663_v37 = vld [vmem:[#allocation53_spill] sm:$0xff]  ;;  %v13667_v30 = vld [vmem:[#allocation55_spill] sm:$0xff]  ;;  %v13681_v43 = vld [vmem:[#allocation62_spill] sm:$0xff] }
 0x129   :  { %8537 = vmatpush3.msk.msra.mxu1 %vm9856_vm0, %v13615_v27  ;;  %8503 = vmatprep.subr.msk.mxu0 %vm9867_vm1, %v13615_v27  ;;  %v13683_v41 = vld [vmem:[#allocation63_spill] sm:$0xff]  ;;  %v13687_v50 = vld [vmem:[#allocation65_spill] sm:$0xff] }
 0x12a   :  { %2319 = vmatprep.mubr.f32.mxu0 %v2236_v17  ;;  %8538 = vmatprep.subr.msk.mxu1 %vm9872_vm14, %v13615_v27  ;;  %vm13644_vm14 = vnez %v13643_v13  ;;  %v2241_v16 = vadd.f32 %v2240_v36, %v2239_v57  ;;  %v13671_v17 = vld [vmem:[#allocation57_spill] sm:$0xff]  ;;  %v2224_v2 = vrot.slane %v2223_v33, 2  ;;  %v13685_v57 = vld [vmem:[#allocation64_spill] sm:$0xff]  ;;  %v13689_v36 = vld [vmem:[#allocation66_spill] sm:$0xff] }
 0x12b   :  { %2389 = vmatprep.mubr.f32.mxu1 %v2254_v56  ;;  %8504 = vmatpush3.msk.msra.mxu0 %vm9885_vm11, %v13615_v27  ;;  %vm13626_vm11 = vnez %v13625_v28  ;;  %v13673_v56 = vld [vmem:[#allocation58_spill] sm:$0xff]  ;;  %v2398_v28 = vld [vmem:[%s12994_s2 + $0x1] sm:$0x1] }
 0x12c   :  { %8539 = vmatpush3.msk.msra.mxu1 %vm9890_vm10, %v13615_v27  ;;  %8505 = vmatprep.subr.msk.mxu0 %vm9905_vm9, %v13615_v27  ;;  %vm13628_vm10 = vnez %v13627_v40  ;;  %vm13630_vm9 = vnez %v13629_v4  ;;  %v2242_v9 = vrot.slane %v2241_v16, 2 }
 0x12d   :  { %8540 = vmatprep.subr.msk.mxu1 %vm9910_vm8, %v13615_v27  ;;  %8506 = vmatpush3.msk.msra.mxu0 %vm9921_vm7, %v13615_v27  ;;  %vm13632_vm8 = vnez %v13631_v3  ;;  %vm13634_vm7 = vnez %v13633_v59 }
 0x12e   :  { %8541 = vmatpush3.msk.msra.mxu1 %vm13626_vm11, %v13615_v27  ;;  %8507 = vmatprep.subr.msk.mxu0 %vm13628_vm10, %v13615_v27  ;;  %vm13636_vm11 = vnez %v13635_v25  ;;  %vm13638_vm10 = vnez %v13637_v60 }
 0x12f   :  { %8542 = vmatprep.subr.msk.mxu1 %vm13630_vm9, %v13615_v27  ;;  %8508 = vmatpush3.msk.msra.mxu0 %vm13632_vm8, %v13615_v27  ;;  %vm13640_vm9 = vnez %v13639_v11  ;;  %vm13642_vm8 = vnez %v13641_v7 }
 0x130   :  { %8543 = vmatpush3.msk.msra.mxu1 %vm13634_vm7, %v13615_v27  ;;  %8509 = vmatprep.subr.msk.mxu0 %vm13636_vm11, %v13615_v27  ;;  %vm13646_vm11 = vnez %v13645_v39  ;;  %vm13660_vm7 = vnez %v13659_v44 }
 0x131   :  { %8544 = vmatprep.subr.msk.mxu1 %vm13638_vm10, %v13615_v27  ;;  %8510 = vmatpush3.msk.msra.mxu0 %vm13640_vm9, %v13615_v27  ;;  %vm13648_vm10 = vnez %v13647_v35  ;;  %vm13650_vm9 = vnez %v13649_v63 }
 0x132   :  { %8545 = vmatpush3.msk.msra.mxu1 %vm13642_vm8, %v13615_v27  ;;  %8511 = vmatprep.subr.msk.mxu0 %vm13644_vm14, %v13615_v27  ;;  %vm13652_vm8 = vnez %v13651_v52  ;;  %vm13654_vm14 = vnez %v13653_v45 }
 0x133   :  { %8546 = vmatprep.subr.msk.mxu1 %vm13646_vm11, %v13615_v27  ;;  %8512 = vmatpush3.msk.msra.mxu0 %vm13648_vm10, %v13615_v27  ;;  %vm13656_vm11 = vnez %v13655_v12  ;;  %vm13658_vm10 = vnez %v13657_v31 }
 0x134   :  { %8547 = vmatpush3.msk.msra.mxu1 %vm13650_vm9, %v13615_v27  ;;  %8513 = vmatprep.subr.msk.mxu0 %vm13652_vm8, %v13615_v27  ;;  %vm13662_vm8 = vnez %v13661_v34  ;;  %vm13676_vm9 = vnez %v13675_v55  ;;  %v13748_v55 = vld [vmem:[#allocation18_spill] sm:$0xff] }
 0x135   :  { %8548 = vmatprep.subr.msk.mxu1 %vm13654_vm14, %v13615_v27  ;;  %8514 = vmatpush3.msk.msra.mxu0 %vm13656_vm11, %v13615_v27  ;;  %vm13664_vm14 = vnez %v13663_v37  ;;  %vm13666_vm11 = vnez %v13665_v29  ;;  %vm13749_vm1 = vnez %v13748_v55  ;;  %v10735_v29 = vld [vmem:[#allocation3 + $0xb0] sm:$0xff] }
 0x136   :  { %8549 = vmatpush3.msk.msra.mxu1 %vm13658_vm10, %v13615_v27  ;;  %8515 = vmatprep.subr.msk.mxu0 %vm13660_vm7, %v13615_v27  ;;  %vm13668_vm10 = vnez %v13667_v30  ;;  %vm13670_vm7 = vnez %v13669_v6  ;;  %v13754_v6 = vld [vmem:[#allocation21_spill] sm:$0xff]  ;;  %v13756_v30 = vld [vmem:[#allocation22_spill] sm:$0xff]  ;;  %13758 = vst [vmem:[#allocation87_spill] sm:$0xff] %v10735_v29 }
 0x137   :  { %8550 = vmatprep.subr.msk.mxu1 %vm13662_vm8, %v13615_v27  ;;  %8516 = vmatpush3.msk.msra.mxu0 %vm13664_vm14, %v13615_v27  ;;  %vm13672_vm8 = vnez %v13671_v17  ;;  %vm13674_vm14 = vnez %v13673_v56  ;;  %v13750_v56 = vld [vmem:[#allocation19_spill] sm:$0xff]  ;;  %v13752_v17 = vld [vmem:[#allocation20_spill] sm:$0xff]  ;;  %vm13755_vm13 = vnez %v13754_v6  ;;  %vm13757_vm12 = vnez %v13756_v30  ;;  %v13820_v30 = vld [vmem:[#allocation53_spill] sm:$0xff] }
 0x138   :  { %8551 = vmatpush3.msk.msra.mxu1 %vm13666_vm11, %v13615_v27  ;;  %8517 = vmatprep.subr.msk.mxu0 %vm13668_vm10, %v13615_v27  ;;  %vm13678_vm10 = vnez %v13677_v8  ;;  %v2243_v8 = vadd.f32 %v2242_v9, %v2241_v16  ;;  %v13706_v16 = vld [vmem:[#allocation75_spill] sm:$0xff]  ;;  %vm13751_vm0 = vnez %v13750_v56  ;;  %vm13753_vm15 = vnez %v13752_v17  ;;  %v13822_v6 = vld [vmem:[#allocation54_spill] sm:$0xff]  ;;  %v13826_v56 = vld [vmem:[#allocation56_spill] sm:$0xff] }
 0x139   :  { %8552 = vmatprep.subr.msk.mxu1 %vm13670_vm7, %v13615_v27  ;;  %8518 = vmatpush3.msk.msra.mxu0 %vm13672_vm8, %v13615_v27  ;;  %vm13680_vm7 = vnez %v13679_v48  ;;  %vm13682_vm8 = vnez %v13681_v43  ;;  %v13691_v48 = vld [vmem:[#allocation67_spill] sm:$0xff]  ;;  %v2225_v43 = vadd.f32 %v2224_v2, %v2223_v33  ;;  %v13704_v2 = vld [vmem:[#allocation74_spill] sm:$0xff]  ;;  %v13828_v55 = vld [vmem:[#allocation57_spill] sm:$0xff] }
 0x13a   :  { %8553 = vmatpush3.msk.msra.mxu1 %vm13674_vm14, %v13615_v27  ;;  %8519 = vmatprep.subr.msk.mxu0 %vm13676_vm9, %v13615_v27  ;;  %vm13684_vm14 = vnez %v13683_v41  ;;  %vm13686_vm9 = vnez %v13685_v57  ;;  %vm13692_vm11 = vnez %v13691_v48  ;;  %v13693_v41 = vld [vmem:[#allocation68_spill] sm:$0xff]  ;;  %v13700_v48 = vld [vmem:[#allocation73_spill] sm:$0xff]  ;;  %v13702_v33 = vld [vmem:[#allocation71_spill] sm:$0xff] }
 0x13b   :  { %8554 = vmatprep.subr.msk.mxu1 %vm13678_vm10, %v13615_v27  ;;  %8520 = vmatpush3.msk.msra.mxu0 %vm13680_vm7, %v13615_v27  ;;  %vm13688_vm10 = vnez %v13687_v50  ;;  %vm13690_vm7 = vnez %v13689_v36  ;;  %v13696_v50 = vld [vmem:[#allocation70_spill] sm:$0xff]  ;;  %v13698_v36 = vld [vmem:[#allocation72_spill] sm:$0xff]  ;;  %v2226_v9 = vrot.slane %v2225_v43, 1  ;;  %v13746_v57 = vld [vmem:[#allocation17_spill] sm:$0xff] }
 0x13c   :  { %8555 = vmatpush3.msk.msra.mxu1 %vm13682_vm8, %v13615_v27  ;;  %8521 = vmatprep.subr.msk.mxu0 %vm13684_vm14, %v13615_v27  ;;  %vm13694_vm14 = vnez %v13693_v41  ;;  %vm13747_vm8 = vnez %v13746_v57  ;;  %v13824_v17 = vld [vmem:[#allocation55_spill] sm:$0xff]  ;;  %v13830_v57 = vld [vmem:[#allocation58_spill] sm:$0xff] }
 0x13d   :  { %8556 = vmatprep.subr.msk.mxu1 %vm13686_vm9, %v13615_v27  ;;  %8522 = vmatpush3.msk.msra.mxu0 %vm13688_vm10, %v13615_v27  ;;  %vm13697_vm10 = vnez %v13696_v50  ;;  %vm13707_vm9 = vnez %v13706_v16  ;;  %v2244_v50 = vrot.slane %v2243_v8, 1  ;;  %v13716_v16 = vld [vmem:[#allocation81_spill] sm:$0xff] }
 0x13e   :  { %8557 = vmatpush3.msk.msra.mxu1 %vm13690_vm7, %v13615_v27  ;;  %8523 = vmatprep.subr.msk.mxu0 %vm13692_vm11, %v13615_v27  ;;  %vm13699_vm7 = vnez %v13698_v36  ;;  %vm13701_vm11 = vnez %v13700_v48  ;;  %v13708_v36 = vld [vmem:[#allocation76_spill] sm:$0xff]  ;;  %v13710_v48 = vld [vmem:[#allocation77_spill] sm:$0xff] }
 0x13f   :  { %8558 = vmatprep.subr.msk.mxu1 %vm13694_vm14, %v13615_v27  ;;  %8524 = vmatpush3.msk.msra.mxu0 %vm10249_vm3, %v13615_v27  ;;  %vm13703_vm14 = vnez %v13702_v33  ;;  %vm13705_vm3 = vnez %v13704_v2  ;;  %v13712_v33 = vld [vmem:[#allocation79_spill] sm:$0xff]  ;;  %v13714_v2 = vld [vmem:[#allocation80_spill] sm:$0xff]  ;;  %v2245_v41 = vadd.f32 %v2244_v50, %v2243_v8  ;;  %v13732_v8 = vld [vmem:[#allocation10_spill] sm:$0xff] }
 0x140   :  { %8559 = vmatpush3.msk.msra.mxu1 %vm13697_vm10, %v13615_v27  ;;  %8525 = vmatprep.subr.msk.mxu0 %vm13699_vm7, %v13615_v27  ;;  %vm13709_vm7 = vnez %v13708_v36  ;;  %v13718_v36 = vld [vmem:[#allocation78_spill] sm:$0xff]  ;;  %v13734_v50 = vld [vmem:[#allocation11_spill] sm:$0xff] }
 0x141   :  { %8560 = vmatprep.subr.msk.mxu1 %vm13701_vm11, %v13615_v27  ;;  %8526 = vmatpush3.msk.msra.mxu0 %vm13703_vm14, %v13615_v27  ;;  %vm13711_vm11 = vnez %v13710_v48  ;;  %vm13713_vm14 = vnez %v13712_v33  ;;  %v13720_v48 = vld [vmem:[#allocation82_spill] sm:$0xff]  ;;  %v2227_v33 = vadd.f32 %v2226_v9, %v2225_v43  ;;  %v13728_v43 = vld [vmem:[#allocation8_spill] sm:$0xff]  ;;  %v13730_v9 = vld [vmem:[#allocation9_spill] sm:$0xff] }
 0x142   :  { %8561 = vmatpush3.msk.msra.mxu1 %vm13705_vm3, %v13615_v27  ;;  %8527 = vmatprep.subr.msk.mxu0 %vm13707_vm9, %v13615_v27  ;;  %vm13715_vm3 = vnez %v13714_v2  ;;  %vm13717_vm9 = vnez %v13716_v16  ;;  %v13742_v16 = vld [vmem:[#allocation15_spill] sm:$0xff]  ;;  %v13744_v2 = vld [vmem:[#allocation16_spill] sm:$0xff] }
 0x143   :  { %8562 = vmatprep.subr.msk.mxu1 %vm13709_vm7, %v13615_v27  ;;  %8528 = vmatpush3.msk.msra.mxu0 %vm13711_vm11, %v13615_v27  ;;  %vm13719_vm7 = vnez %v13718_v36  ;;  %vm13721_vm11 = vnez %v13720_v48  ;;  %v13726_v48 = vld [vmem:[#allocation7_spill] sm:$0xff]  ;;  %v13740_v36 = vld [vmem:[#allocation14_spill] sm:$0xff]  ;;  %vm13745_vm10 = vnez %v13744_v2 }
 0x144   :  { %8563 = vmatpush3.msk.msra.mxu1 %vm13713_vm14, %v13615_v27  ;;  %8529 = vmatprep.subr.msk.mxu0 %vm13715_vm3, %v13615_v27  ;;  %vm13741_vm3 = vnez %v13740_v36  ;;  %vm13743_vm14 = vnez %v13742_v16  ;;  %v13832_v2 = vld [vmem:[#allocation59_spill] sm:$0xff]  ;;  %v13834_v16 = vld [vmem:[#allocation60_spill] sm:$0xff]  ;;  %v13836_v36 = vld [vmem:[#allocation61_spill] sm:$0xff] }
 0x145   :  { %8564 = vmatprep.subr.msk.mxu1 %vm13717_vm9, %v13615_v27  ;;  %8530 = vmatpush3.msk.msra.mxu0 %vm13719_vm7, %v13615_v27 }
 0x146   :  { %8565 = vmatpush3.msk.msra.mxu1 %vm13721_vm11, %v13615_v27  ;;  %8531 = vmatprep.subr.msk.mxu0 %vm10376_vm2, %v13615_v27  ;;  %vm13727_vm11 = vnez %v13726_v48  ;;  %vm13729_vm2 = vnez %v13728_v43 }
 0x147   :  { %8566 = vmatprep.subr.msk.mxu1 %vm10381_vm6, %v13615_v27  ;;  %8532 = vmatpush3.msk.msra.mxu0 %vm10368_vm4, %v13615_v27  ;;  %vm13731_vm6 = vnez %v13730_v9  ;;  %vm13733_vm4 = vnez %v13732_v8  ;;  %v13844_v8 = vld [vmem:[#allocation65_spill] sm:$0xff]  ;;  %v13846_v9 = vld [vmem:[#allocation66_spill] sm:$0xff] }
 0x148   :  { %8567 = vmatpush3.msk.msra.mxu1 %vm10395_vm5, %v13615_v27  ;;  %2320 = vmatmul.mubr.f32.vlgmr.msra.gmra.mxu0 %v2227_v33  ;;  %vm13735_vm5 = vnez %v13734_v50  ;;  %v13738_v33 = vld [vmem:[#allocation13_spill] sm:$0xff]  ;;  %v13842_v50 = vld [vmem:[#allocation64_spill] sm:$0xff] }
 0x149   :  { %2390 = vmatmul.mubr.f32.vlgmr.msra.gmra.mxu1 %v2245_v41  ;;  %7571 = vmatprep.subr.msk.mxu0 %vm13727_vm11, %v13615_v27  ;;  %v13736_v41 = vld [vmem:[#allocation12_spill] sm:$0xff]  ;;  %vm13739_vm9 = vnez %v13738_v33  ;;  %v13838_v33 = vld [vmem:[#allocation62_spill] sm:$0xff] }
 0x14a   :  { %7580 = vmatprep.subr.msk.mxu1 %vm13729_vm2, %v13615_v27  ;;  %7572 = vmatpush1.msk.msra.mxu0 %vm13731_vm6, %v13615_v27  ;;  %vm13737_vm7 = vnez %v13736_v41  ;;  %v13840_v41 = vld [vmem:[#allocation63_spill] sm:$0xff] }
 0x14b   :  { %7581 = vmatpush1.msk.msra.mxu1 %vm13733_vm4, %v13615_v27  ;;  %7573 = vmatprep.subr.msk.mxu0 %vm13735_vm5, %v13615_v27 }
 0x14c   :  { %7582 = vmatprep.subr.msk.mxu1 %vm13737_vm7, %v13615_v27  ;;  %7574 = vmatpush1.msk.msra.mxu0 %vm13739_vm9, %v13615_v27 }
 0x14d   :  { %7583 = vmatpush1.msk.msra.mxu1 %vm13741_vm3, %v13615_v27  ;;  %7575 = vmatprep.subr.msk.mxu0 %vm13743_vm14, %v13615_v27 }
 0x14e   :  { %7584 = vmatprep.subr.msk.mxu1 %vm13745_vm10, %v13615_v27  ;;  %7576 = vmatpush1.msk.msra.mxu0 %vm13747_vm8, %v13615_v27 }
 0x14f   :  { %7585 = vmatpush1.msk.msra.mxu1 %vm13749_vm1, %v13615_v27  ;;  %7577 = vmatprep.subr.msk.mxu0 %vm13751_vm0, %v13615_v27 }
 0x150   :  { %7586 = vmatprep.subr.msk.mxu1 %vm13753_vm15, %v13615_v27  ;;  %7578 = vmatpush1.msk.msra.mxu0 %vm13755_vm13, %v13615_v27 }
 0x151   :  { %7587 = vmatpush1.msk.msra.mxu1 %vm13757_vm12, %v13615_v27  ;;  %2472 = vmatprep.mubr.f32.mxu0 %v10735_v29 }
 0x152   :  { %2543 = vmatprep.mubr.f32.mxu1 %v10735_v29  ;;  %7589 = vmatprep.subr.msk.mxu0 %vm13727_vm11, %v13615_v27 }
 0x153   :  { %7598 = vmatprep.subr.msk.mxu1 %vm13729_vm2, %v13615_v27  ;;  %vm13759_vm2 = vcmask 261120  }
 0x154   :  { %vm13760_vm11 = vmmov %vm13759_vm2 }
 0x1e7   :  { %v8463_v37 = vpop.f32.mrf.mxu0 }
 0x1e8   :  { %v8498_v34 = vpop.f32.mrf.mxu1 }
 0x1e9   :  { %v8464_v44 = vpop.f32.mrf.mxu0 }
 0x1ea   :  { %v8499_v31 = vpop.f32.mrf.mxu1  ;;  %v8465_v12 = vadd.f32 %v8464_v44, %v8463_v37  ;;  %v8825_v37 = vld [vmem:[%s12995_s3 + $0x480] ss:$16 sps:$4 sm:$0xff]  }
 0x1eb   :  { %v8500_v45 = vadd.f32 %v8499_v31, %v8498_v34  ;;  %v8830_v34 = vld [vmem:[%s12995_s3 + $0x684] ss:$16 sps:$4 sm:$0xff]  }
 0x1ed   :  { %v2198_v52 = vadd.f32 %v8500_v45, %v8465_v12  ;;  %v8822_v45 = vld [vmem:[%s12995_s3 + $0x6a0] ss:$16 sps:$4 sm:$0xff]   ;;  %v8827_v12 = vld [vmem:[%s12995_s3 + $0x484] ss:$16 sps:$4 sm:$0xff]  }
 0x1ef   :  { %v2202_v11 = vmul.f32 0.001953125, %v2198_v52  ;;  %v8819_v52 = vld [vmem:[%s12995_s3 + $0x4a0] ss:$16 sps:$4 sm:$0xff]  }
 0x1f1   :  { %v2396_v59 = vmul.f32 %v2202_v11, %v2202_v11 }
 0x208   :  { %v8533_v63 = vpop.f32.mrf.mxu0 }
 0x209   :  { %v8568_v35 = vpop.f32.mrf.mxu1 }
 0x20a   :  { %v8534_v39 = vpop.f32.mrf.mxu0 }
 0x20b   :  { %v8535_v13 = vadd.f32 %v8534_v39, %v8533_v63  ;;  %v8569_v7 = vpop.f32.mrf.mxu1  ;;  %v8816_v39 = vld [vmem:[%s12995_s3 + $0x6c0] ss:$16 sps:$4 sm:$0xff]   ;;  %v8824_v63 = vld [vmem:[%s12995_s3 + $0x6a4] ss:$16 sps:$4 sm:$0xff]  }
 0x20c   :  { %v8570_v60 = vadd.f32 %v8569_v7, %v8568_v35  ;;  %v8818_v7 = vld [vmem:[%s12995_s3 + $0x6c4] ss:$16 sps:$4 sm:$0xff]  }
 0x20d   :  { %v8821_v35 = vld [vmem:[%s12995_s3 + $0x4a4] ss:$16 sps:$4 sm:$0xff]  }
 0x20e   :  { %v2392_v25 = vadd.f32 %v8570_v60, %v8535_v13  ;;  %v8810_v60 = vld [vmem:[%s12995_s3 + $0x6e0] ss:$16 sps:$4 sm:$0xff]  }
 0x20f   :  { %v8813_v13 = vld [vmem:[%s12995_s3 + $0x4c0] ss:$16 sps:$4 sm:$0xff]  }
 0x210   :  { %v2395_v3 = vmul.f32 0.001953125, %v2392_v25  ;;  %v8807_v25 = vld [vmem:[%s12995_s3 + $0x4e0] ss:$16 sps:$4 sm:$0xff]  }
 0x212   :  { %v2397_v4 = vsub.f32 %v2395_v3, %v2396_v59  ;;  %v8812_v3 = vld [vmem:[%s12995_s3 + $0x6e4] ss:$16 sps:$4 sm:$0xff]  }
 0x214   :  { %v2399_v40 = vadd.f32 1e-05, %v2397_v4  ;;  %v8809_v4 = vld [vmem:[%s12995_s3 + $0x4e4] ss:$16 sps:$4 sm:$0xff]  }
 0x216   :  { %9383 = vrsqrt.f32 %v2399_v40  ;;  %v2402_v40 = vld [vmem:[%s12994_s2 + $0x2] sm:$0x1] }
 0x223   :  { %v9384_v44 = vpop.eup %9383 }
 0x224   :  { %v2401_v31 = vmul.f32 %v9384_v44, %v2398_v28  ;;  %v8828_v44 = vld [vmem:[%s12995_s3 + $0x680] ss:$16 sps:$4 sm:$0xff]  }
 0x226   :  { %7579 = vmatmul.mubr.msk.f32.vlgmr.msra.gmra.mxu0 %vm13759_vm2, %v2401_v31  ;;  %7588 = vmatmul.mubr.msk.f32.vlgmr.msra.gmra.mxu1 %vm13760_vm11, %v2401_v31  ;;  %v2403_v28 = vmul.f32 %v2401_v31, %v2202_v11  ;;  %v8815_v11 = vld [vmem:[%s12995_s3 + $0x4c4] ss:$16 sps:$4 sm:$0xff]   ;;  %vm13761_vm11 = vmmov %vm13759_vm2 }
 0x227   :  { %7590 = vmatpush1.msk.msra.mxu0 %vm13731_vm6, %v13615_v27  ;;  %7599 = vmatpush1.msk.msra.mxu1 %vm13733_vm4, %v13615_v27  ;;  %v8833_v31 = vld [vmem:[%s12995_s3 + $0x464] ss:$16 sps:$4 sm:$0xff]  }
 0x228   :  { %7591 = vmatprep.subr.msk.mxu0 %vm13735_vm5, %v13615_v27  ;;  %7600 = vmatprep.subr.msk.mxu1 %vm13737_vm7, %v13615_v27  ;;  %v2404_v59 = vsub.f32 %v2402_v40, %v2403_v28  ;;  %v8836_v28 = vld [vmem:[%s12995_s3 + $0x664] ss:$16 sps:$4 sm:$0xff]   ;;  %v8831_v40 = vld [vmem:[%s12995_s3 + $0x460] ss:$16 sps:$4 sm:$0xff]  }
 0x229   :  { %7592 = vmatpush1.msk.msra.mxu0 %vm13739_vm9, %v13615_v27  ;;  %7601 = vmatpush1.msk.msra.mxu1 %vm13741_vm3, %v13615_v27 }
 0x22a   :  { %7593 = vmatprep.subr.msk.mxu0 %vm13743_vm14, %v13615_v27  ;;  %7602 = vmatprep.subr.msk.mxu1 %vm13745_vm10, %v13615_v27 }
 0x22b   :  { %7594 = vmatpush1.msk.msra.mxu0 %vm13747_vm8, %v13615_v27  ;;  %7603 = vmatpush1.msk.msra.mxu1 %vm13749_vm1, %v13615_v27 }
 0x22c   :  { %7595 = vmatprep.subr.msk.mxu0 %vm13751_vm0, %v13615_v27  ;;  %7604 = vmatprep.subr.msk.mxu1 %vm13753_vm15, %v13615_v27 }
 0x22d   :  { %7596 = vmatpush1.msk.msra.mxu0 %vm13755_vm13, %v13615_v27  ;;  %2649 = vmatprep.mubr.f32.mxu0 %v10735_v29 }
 0x22e   :  { %7605 = vmatpush1.msk.msra.mxu1 %vm13757_vm12, %v13615_v27  ;;  %2720 = vmatprep.mubr.f32.mxu1 %v10735_v29 }
 0x22f   :  { %7597 = vmatmul.mubr.msk.f32.vlgmr.msra.gmra.mxu0 %vm13759_vm2, %v2404_v59  ;;  %7606 = vmatmul.mubr.msk.f32.vlgmr.msra.gmra.mxu1 %vm13761_vm11, %v2404_v59  ;;  %v8842_v59 = vld [vmem:[%s12995_s3 + $0x644] ss:$16 sps:$4 sm:$0xff]   ;;  %vm2799_vm2 = vcmask 1040384   ;;  %vm3064_vm11 = vcmask 1046528  }
 0x230   :  { %3898 = vmatprep.subr.bf16.mxu0 %v8809_v4  ;;  %3951 = vmatprep.subr.bf16.mxu1 %v8812_v3  ;;  %v8834_v4 = vld [vmem:[%s12995_s3 + $0x660] ss:$16 sps:$4 sm:$0xff]   ;;  %v8839_v3 = vld [vmem:[%s12995_s3 + $0x444] ss:$16 sps:$4 sm:$0xff]  }
 0x231   :  { %3899 = vmatpush1.bf16.msra.mxu0 %v8807_v25  ;;  %3952 = vmatpush1.bf16.msra.mxu1 %v8810_v60  ;;  %v8837_v25 = vld [vmem:[%s12995_s3 + $0x440] ss:$16 sps:$4 sm:$0xff]  }
 0x232   :  { %3900 = vmatprep.subr.bf16.mxu0 %v8815_v11  ;;  %3953 = vmatprep.subr.bf16.mxu1 %v8818_v7  ;;  %v8840_v60 = vld [vmem:[%s12995_s3 + $0x640] ss:$16 sps:$4 sm:$0xff]   ;;  %v8845_v11 = vld [vmem:[%s12995_s3 + $0x424] ss:$16 sps:$4 sm:$0xff]  }
 0x233   :  { %v8848_v7 = vld [vmem:[%s12995_s3 + $0x624] ss:$16 sps:$4 sm:$0xff]  }
 0x235   :  { %3901 = vmatpush1.bf16.msra.mxu0 %v8813_v13  ;;  %3954 = vmatpush1.bf16.msra.mxu1 %v8816_v39  ;;  %v8843_v13 = vld [vmem:[%s12995_s3 + $0x420] ss:$16 sps:$4 sm:$0xff]  }
 0x236   :  { %3902 = vmatprep.subr.bf16.mxu0 %v8821_v35  ;;  %3955 = vmatprep.subr.bf16.mxu1 %v8824_v63  ;;  %v8846_v39 = vld [vmem:[%s12995_s3 + $0x620] ss:$16 sps:$4 sm:$0xff]   ;;  %v8851_v35 = vld [vmem:[%s12995_s3 + $0x404] ss:$16 sps:$4 sm:$0xff]  }
 0x237   :  { %v8854_v63 = vld [vmem:[%s12995_s3 + $0x604] ss:$16 sps:$4 sm:$0xff]  }
 0x239   :  { %3903 = vmatpush1.bf16.msra.mxu0 %v8819_v52  ;;  %3956 = vmatpush1.bf16.msra.mxu1 %v8822_v45  ;;  %v8849_v52 = vld [vmem:[%s12995_s3 + $0x400] ss:$16 sps:$4 sm:$0xff]  }
 0x23a   :  { %3904 = vmatprep.subr.bf16.mxu0 %v8827_v12  ;;  %3957 = vmatprep.subr.bf16.mxu1 %v8830_v34  ;;  %v8852_v45 = vld [vmem:[%s12995_s3 + $0x600] ss:$16 sps:$4 sm:$0xff]   ;;  %v8857_v12 = vld [vmem:[%s12995_s3 + $0x5e4] ss:$16 sps:$4 sm:$0xff]  }
 0x23b   :  { %v8860_v34 = vld [vmem:[%s12995_s3 + $0x7e4] ss:$16 sps:$4 sm:$0xff]  }
 0x23d   :  { %3905 = vmatpush1.bf16.msra.mxu0 %v8825_v37  ;;  %3958 = vmatpush1.bf16.msra.mxu1 %v8828_v44  ;;  %v8855_v37 = vld [vmem:[%s12995_s3 + $0x5e0] ss:$16 sps:$4 sm:$0xff]  }
 0x23e   :  { %3906 = vmatprep.subr.bf16.mxu0 %v8833_v31  ;;  %3959 = vmatprep.subr.bf16.mxu1 %v8836_v28  ;;  %v8858_v44 = vld [vmem:[%s12995_s3 + $0x7e0] ss:$16 sps:$4 sm:$0xff]   ;;  %v8863_v31 = vld [vmem:[%s12995_s3 + $0x5c4] ss:$16 sps:$4 sm:$0xff]  }
 0x23f   :  { %v8866_v28 = vld [vmem:[%s12995_s3 + $0x7c4] ss:$16 sps:$4 sm:$0xff]  }
 0x241   :  { %3907 = vmatpush1.bf16.msra.mxu0 %v8831_v40  ;;  %3960 = vmatpush1.bf16.msra.mxu1 %v8834_v4  ;;  %v8861_v40 = vld [vmem:[%s12995_s3 + $0x5c0] ss:$16 sps:$4 sm:$0xff]  }
 0x242   :  { %3908 = vmatprep.subr.bf16.mxu0 %v8839_v3  ;;  %3961 = vmatprep.subr.bf16.mxu1 %v8842_v59  ;;  %v8864_v4 = vld [vmem:[%s12995_s3 + $0x7c0] ss:$16 sps:$4 sm:$0xff]   ;;  %v8869_v3 = vld [vmem:[%s12995_s3 + $0x5a4] ss:$16 sps:$4 sm:$0xff]  }
 0x243   :  { %v8872_v59 = vld [vmem:[%s12995_s3 + $0x7a4] ss:$16 sps:$4 sm:$0xff]  }
 0x245   :  { %3909 = vmatpush1.bf16.msra.mxu0 %v8837_v25  ;;  %3962 = vmatpush1.bf16.msra.mxu1 %v8840_v60  ;;  %v8867_v25 = vld [vmem:[%s12995_s3 + $0x5a0] ss:$16 sps:$4 sm:$0xff]  }
 0x246   :  { %3910 = vmatprep.subr.bf16.mxu0 %v8845_v11  ;;  %3963 = vmatprep.subr.bf16.mxu1 %v8848_v7  ;;  %v8870_v60 = vld [vmem:[%s12995_s3 + $0x7a0] ss:$16 sps:$4 sm:$0xff]   ;;  %v8875_v11 = vld [vmem:[%s12995_s3 + $0x584] ss:$16 sps:$4 sm:$0xff]  }
 0x247   :  { %v8878_v7 = vld [vmem:[%s12995_s3 + $0x784] ss:$16 sps:$4 sm:$0xff]  }
 0x249   :  { %3911 = vmatpush1.bf16.msra.mxu0 %v8843_v13  ;;  %3964 = vmatpush1.bf16.msra.mxu1 %v8846_v39  ;;  %v8873_v13 = vld [vmem:[%s12995_s3 + $0x580] ss:$16 sps:$4 sm:$0xff]  }
 0x24a   :  { %3912 = vmatprep.subr.bf16.mxu0 %v8851_v35  ;;  %3965 = vmatprep.subr.bf16.mxu1 %v8854_v63  ;;  %v8876_v39 = vld [vmem:[%s12995_s3 + $0x780] ss:$16 sps:$4 sm:$0xff]   ;;  %v8881_v35 = vld [vmem:[%s12995_s3 + $0x564] ss:$16 sps:$4 sm:$0xff]  }
 0x24b   :  { %v8884_v63 = vld [vmem:[%s12995_s3 + $0x764] ss:$16 sps:$4 sm:$0xff]  }
 0x24d   :  { %3913 = vmatpush1.bf16.msra.mxu0 %v8849_v52  ;;  %3966 = vmatpush1.bf16.msra.mxu1 %v8852_v45  ;;  %v8879_v52 = vld [vmem:[%s12995_s3 + $0x560] ss:$16 sps:$4 sm:$0xff]  }
 0x24e   :  { %3914 = vmatprep.subr.bf16.mxu0 %v8857_v12  ;;  %3967 = vmatprep.subr.bf16.mxu1 %v8860_v34  ;;  %v8882_v45 = vld [vmem:[%s12995_s3 + $0x760] ss:$16 sps:$4 sm:$0xff]   ;;  %v8887_v12 = vld [vmem:[%s12995_s3 + $0x544] ss:$16 sps:$4 sm:$0xff]  }
 0x24f   :  { %v8890_v34 = vld [vmem:[%s12995_s3 + $0x744] ss:$16 sps:$4 sm:$0xff]  }
 0x251   :  { %3915 = vmatpush2.bf16.msra.mxu0 %v8855_v37  ;;  %3968 = vmatpush2.bf16.msra.mxu1 %v8858_v44  ;;  %v8885_v37 = vld [vmem:[%s12995_s3 + $0x540] ss:$16 sps:$4 sm:$0xff]  }
 0x252   :  { %3916 = vmatprep.subr.bf16.mxu0 %v8863_v31  ;;  %3969 = vmatprep.subr.bf16.mxu1 %v8866_v28  ;;  %v8888_v44 = vld [vmem:[%s12995_s3 + $0x740] ss:$16 sps:$4 sm:$0xff]   ;;  %v8893_v31 = vld [vmem:[%s12995_s3 + $0x524] ss:$16 sps:$4 sm:$0xff]  }
 0x253   :  { %v8891_v28 = vld [vmem:[%s12995_s3 + $0x520] ss:$16 sps:$4 sm:$0xff]  }
 0x255   :  { %3917 = vmatpush2.bf16.msra.mxu0 %v8861_v40  ;;  %3970 = vmatpush2.bf16.msra.mxu1 %v8864_v4  ;;  %v8894_v40 = vld [vmem:[%s12995_s3 + $0x720] ss:$16 sps:$4 sm:$0xff]   ;;  %v8896_v4 = vld [vmem:[%s12995_s3 + $0x724] ss:$16 sps:$4 sm:$0xff]  }
 0x256   :  { %3918 = vmatprep.subr.bf16.mxu0 %v8869_v3  ;;  %3971 = vmatprep.subr.bf16.mxu1 %v8872_v59  ;;  %v8899_v3 = vld [vmem:[%s12995_s3 + $0x504] ss:$16 sps:$4 sm:$0xff]  }
 0x257   :  { %v8902_v59 = vld [vmem:[%s12995_s3 + $0x704] ss:$16 sps:$4 sm:$0xff]  }
 0x259   :  { %3919 = vmatpush2.bf16.msra.mxu0 %v8867_v25  ;;  %3972 = vmatpush2.bf16.msra.mxu1 %v8870_v60  ;;  %v8897_v25 = vld [vmem:[%s12995_s3 + $0x500] ss:$16 sps:$4 sm:$0xff]  }
 0x25a   :  { %3920 = vmatprep.subr.bf16.mxu0 %v8875_v11  ;;  %3973 = vmatprep.subr.bf16.mxu1 %v8878_v7  ;;  %v8900_v60 = vld [vmem:[%s12995_s3 + $0x700] ss:$16 sps:$4 sm:$0xff]   ;;  %v8905_v11 = vld [vmem:[%s12995_s3 + $0x4ec] ss:$16 sps:$4 sm:$0xff]  }
 0x25b   :  { %v8908_v7 = vld [vmem:[%s12995_s3 + $0x6ec] ss:$16 sps:$4 sm:$0xff]  }
 0x25d   :  { %3921 = vmatpush2.bf16.msra.mxu0 %v8873_v13  ;;  %3974 = vmatpush2.bf16.msra.mxu1 %v8876_v39 }
 0x25e   :  { %3922 = vmatprep.subr.bf16.mxu0 %v8881_v35  ;;  %3975 = vmatprep.subr.bf16.mxu1 %v8884_v63 }
 0x261   :  { %3923 = vmatpush2.bf16.msra.mxu0 %v8879_v52  ;;  %3976 = vmatpush2.bf16.msra.mxu1 %v8882_v45 }
 0x262   :  { %3924 = vmatprep.subr.bf16.mxu0 %v8887_v12  ;;  %3977 = vmatprep.subr.bf16.mxu1 %v8890_v34 }
 0x265   :  { %3925 = vmatpush2.bf16.msra.mxu0 %v8885_v37  ;;  %3978 = vmatpush2.bf16.msra.mxu1 %v8888_v44 }
 0x266   :  { %3926 = vmatprep.subr.bf16.mxu0 %v8893_v31  ;;  %3979 = vmatprep.subr.bf16.mxu1 %v8896_v4 }
 0x269   :  { %3927 = vmatpush2.bf16.msra.mxu0 %v8891_v28  ;;  %3980 = vmatpush2.bf16.msra.mxu1 %v8894_v40 }
 0x26a   :  { %3928 = vmatprep.subr.bf16.mxu0 %v8899_v3  ;;  %3981 = vmatprep.subr.bf16.mxu1 %v8902_v59 }
 0x26d   :  { %3929 = vmatpush2.bf16.msra.mxu0 %v8897_v25  ;;  %3982 = vmatpush2.bf16.msra.mxu1 %v8900_v60 }
 0x26e   :  { %4004 = vmatprep.subr.bf16.mxu0 %v8905_v11  ;;  %4057 = vmatprep.subr.bf16.mxu1 %v8908_v7 }
 0x2e6   :  { %v2474_v13 = vpop.f32.mrf.mxu0  ;;  %v2545_v39 = vpop.f32.mrf.mxu1 }
 0x2e7   :  { %v2553_v63 = vrot.slane %v2474_v13, %v10413_v0  ;;  %v2561_v45 = vrot.slane %v2545_v39, %v10413_v0 }
 0x2e8   :  { %v2476_v35 = vpop.f32.mrf.mxu0  ;;  %v2547_v52 = vpop.f32.mrf.mxu1 }
 0x2e9   :  { %v2557_v12 = vrot.slane %v2476_v35, %v10413_v0  ;;  %v2565_v34 = vrot.slane %v2547_v52, %v10413_v0  ;;  %v2566_v37 = vmul.f32 %v2553_v63, %v10417_v23  ;;  %v2570_v44 = vmul.f32 %v2553_v63, %v10419_v21 }
 0x2ea   :  { %v2574_v31 = vmul.f32 %v2553_v63, %v10429_v10  ;;  %v2578_v28 = vmul.f32 %v2553_v63, %v10438_v14  ;;  %v2568_v40 = vmul.f32 %v2561_v45, %v10423_v15  ;;  %v2572_v4 = vmul.f32 %v2561_v45, %v10425_v1 }
 0x2eb   :  { %v2576_v3 = vmul.f32 %v2561_v45, %v10433_v46  ;;  %v2580_v59 = vmul.f32 %v2561_v45, %v10448_v19  ;;  %v2567_v11 = vmul.f32 %v2557_v12, %v10441_v18  ;;  %v2571_v23 = vmul.f32 %v2557_v12, %v10443_v32 }
 0x2ec   :  { %v2575_v14 = vmul.f32 %v2557_v12, %v10445_v24  ;;  %v2579_v15 = vmul.f32 %v2557_v12, %v10456_v58  ;;  %v2569_v1 = vmul.f32 %v2565_v34, %v10450_v22  ;;  %v2573_v46 = vmul.f32 %v2565_v34, %v10452_v20 }
 0x2ef   :  { %v2651_v25 = vpop.f32.mrf.mxu0  ;;  %v2722_v60 = vpop.f32.mrf.mxu1 }
 0x2f0   :  { %v2730_v21 = vrot.slane %v2651_v25, %v10413_v0  ;;  %v2738_v10 = vrot.slane %v2722_v60, %v10413_v0 }
 0x2f1   :  { %v2653_v52 = vpop.f32.mrf.mxu0  ;;  %v2724_v45 = vpop.f32.mrf.mxu1 }
 0x2f2   :  { %v2743_v7 = vadd.f32 %v2730_v21, %v2566_v37  ;;  %v2747_v19 = vadd.f32 %v2730_v21, %v2570_v44  ;;  %v2751_v13 = vadd.f32 %v2730_v21, %v2574_v31  ;;  %v2755_v39 = vadd.f32 %v2730_v21, %v2578_v28 }
 0x2f3   :  { %v2745_v35 = vadd.f32 %v2738_v10, %v2568_v40  ;;  %v2749_v18 = vadd.f32 %v2738_v10, %v2572_v4  ;;  %v2753_v63 = vadd.f32 %v2738_v10, %v2576_v3  ;;  %v2757_v32 = vadd.f32 %v2738_v10, %v2580_v59 }
 0x2f4   :  { %v2800_v25 = vrot.slane %v2743_v7, 7  ;;  %v2804_v60 = vrot.slane %v2747_v19, 7  ;;  %v2812_v53 = vrot.slane %v2751_v13, 7  ;;  %v2816_v24 = vrot.slane %v2755_v39, 7 }
 0x2f5   :  { %v2802_v5 = vrot.slane %v2745_v35, 7  ;;  %v2808_v58 = vrot.slane %v2749_v18, 7  ;;  %v2814_v12 = vrot.slane %v2753_v63, 7  ;;  %v2820_v22 = vrot.slane %v2757_v32, 7 }
 0x2f6   :  { %v11018_v20 = vsel %vm2799_vm2, %v2800_v25, %v2804_v60  ;;  %v11021_v37 = vsel %vm2799_vm2, %v2812_v53, %v2816_v24  ;;  %2848 = vst [vmem:[#allocation3 + $0xb0] sm:$0xfe] %v2800_v25  ;;  %2856 = vst [vmem:[#allocation3 + $0x88] sm:$0x1] %v2804_v60  ;;  %v2734_v44 = vrot.slane %v2653_v52, %v10413_v0 }
 0x2f7   :  { %2860 = vst [vmem:[#allocation3 + $0x38] sm:$0xfe] %v2812_v53  ;;  %2868 = vst [vmem:[#allocation3 + $0x80] sm:$0x1] %v2816_v24  ;;  %v2742_v31 = vrot.slane %v2724_v45, %v10413_v0  ;;  %v2577_v28 = vmul.f32 %v2565_v34, %v10454_v49  ;;  %v2581_v40 = vmul.f32 %v2565_v34, %v10464_v26  ;;  %v3066_v60 = vrot.slane %v11018_v20, 1 }
 0x2f8   :  { %2852 = vst [vmem:[#allocation3 + $0x60] sm:$0xff] %v11018_v20  ;;  %v11029_v4 = vsel %vm2799_vm2, %v2802_v5, %v2808_v58  ;;  %v11032_v3 = vsel %vm2799_vm2, %v2814_v12, %v2820_v22  ;;  %2850 = vst [vmem:[#allocation3 + $0x10] sm:$0xfe] %v2802_v5  ;;  %v2744_v53 = vadd.f32 %v2734_v44, %v2567_v11 }
 0x2f9   :  { %2858 = vst [vmem:[#allocation3 + $0x18] sm:$0x1] %v2808_v58  ;;  %2862 = vst [vmem:[#allocation3 + $0x70] sm:$0xfe] %v2814_v12  ;;  %v2748_v59 = vadd.f32 %v2734_v44, %v2571_v23  ;;  %v2752_v21 = vadd.f32 %v2734_v44, %v2575_v14  ;;  %v2756_v49 = vadd.f32 %v2734_v44, %v2579_v15  ;;  %v3072_v58 = vrot.slane %v11029_v4, 1 }
 0x2fa   :  { %2870 = vst [vmem:[#allocation3 + $0x20] sm:$0x1] %v2820_v22  ;;  %2854 = vst [vmem:[#allocation3 + $0x40] sm:$0xff] %v11029_v4  ;;  %v2746_v10 = vadd.f32 %v2742_v31, %v2569_v1  ;;  %v2750_v26 = vadd.f32 %v2742_v31, %v2573_v46  ;;  %v2754_v34 = vadd.f32 %v2742_v31, %v2577_v28  ;;  %v2801_v19 = vrot.slane %v2744_v53, 7 }
 0x2fb   :  { %v2758_v7 = vadd.f32 %v2742_v31, %v2581_v40  ;;  %v2806_v13 = vrot.slane %v2748_v59, 7  ;;  %v2813_v39 = vrot.slane %v2752_v21, 7  ;;  %v2818_v35 = vrot.slane %v2756_v49, 7 }
 0x2fc   :  { %v2803_v18 = vrot.slane %v2746_v10, 7  ;;  %v2810_v63 = vrot.slane %v2750_v26, 7  ;;  %v2815_v5 = vrot.slane %v2754_v34, 7  ;;  %2849 = vst [vmem:[#allocation3] sm:$0xfe] %v2801_v19 }
 0x2fd   :  { %v2822_v32 = vrot.slane %v2758_v7, 7  ;;  %v11036_v52 = vsel %vm2799_vm2, %v2801_v19, %v2806_v13  ;;  %v11039_v11 = vsel %vm2799_vm2, %v2813_v39, %v2818_v35  ;;  %2857 = vst [vmem:[#allocation3 + $0x90] sm:$0x1] %v2806_v13  ;;  %2861 = vst [vmem:[#allocation3 + $0x50] sm:$0xfe] %v2813_v39 }
 0x2fe   :  { %2869 = vst [vmem:[#allocation3 + $0xb8] sm:$0x1] %v2818_v35  ;;  %2853 = vst [vmem:[#allocation3 + $0x28] sm:$0xff] %v11036_v52  ;;  %v11044_v23 = vsel %vm2799_vm2, %v2803_v18, %v2810_v63  ;;  %v3024_v15 = vld [vmem:[#allocation3 + $0xb0] sm:$0xfe]  ;;  %v3069_v12 = vrot.slane %v11036_v52, 1 }
 0x2ff   :  { %2865 = vst [vmem:[#allocation3 + $0x68] sm:$0xff] %v11039_v11  ;;  %v11047_v14 = vsel %vm2799_vm2, %v2815_v5, %v2822_v32  ;;  %2851 = vst [vmem:[#allocation3 + $0x48] sm:$0xfe] %v2803_v18  ;;  %v3028_v1 = vld [vmem:[#allocation3 + $0x88] sm:$0x1]  ;;  %v3065_v46 = vrot.slane %v3024_v15, 1 }
 0x300   :  { %2859 = vst [vmem:[#allocation3 + $0x98] sm:$0x1] %v2810_v63  ;;  %2863 = vst [vmem:[#allocation3 + $0xa0] sm:$0xfe] %v2815_v5  ;;  %v3077_v45 = vrot.slane %v3028_v1, 1  ;;  %v3075_v28 = vrot.slane %v11044_v23, 1 }
 0x301   :  { %2871 = vst [vmem:[#allocation3 + $0x8] sm:$0x1] %v2822_v32  ;;  %2855 = vst [vmem:[#allocation3 + $0x78] sm:$0xff] %v11044_v23  ;;  %v3026_v25 = vld [vmem:[#allocation3 + $0x10] sm:$0xfe]  ;;  %v3067_v22 = vsel %vm3064_vm11, %v3065_v46, %v3066_v60  ;;  %v3089_v53 = vrot.slane %v11039_v11, 1 }
 0x302   :  { %2867 = vst [vmem:[#allocation3 + $0x58] sm:$0xff] %v11047_v14  ;;  %v3030_v24 = vld [vmem:[#allocation3 + $0x18] sm:$0x1]  ;;  %v3078_v44 = vsel %vm3064_vm11, %v3066_v60, %v3077_v45  ;;  %v3071_v31 = vrot.slane %v3026_v25, 1  ;;  %v3095_v59 = vrot.slane %v11047_v14, 1  ;;  %vm4994_vm2 = vcmask 1045504  }
 0x303   :  { %v3081_v40 = vrot.slane %v3030_v24, 1  ;;  %v3025_v21 = vld [vmem:[#allocation3] sm:$0xfe]  ;;  %v11059_v13 = vpack.c.bf16 %v3078_v44, %v3067_v22  ;;  %v3032_v39 = vld [vmem:[#allocation3 + $0x38] sm:$0xfe] }
 0x304   :  { %v3029_v49 = vld [vmem:[#allocation3 + $0x90] sm:$0x1]  ;;  %v3033_v10 = vld [vmem:[#allocation3 + $0x50] sm:$0xfe]  ;;  %v3068_v26 = vrot.slane %v3025_v21, 1  ;;  %v3073_v32 = vsel %vm3064_vm11, %v3071_v31, %v3072_v58 }
 0x305   :  { %v3079_v34 = vrot.slane %v3029_v49, 1  ;;  %v3036_v35 = vld [vmem:[#allocation3 + $0x80] sm:$0x1]  ;;  %v3034_v18 = vld [vmem:[#allocation3 + $0x70] sm:$0xfe]  ;;  %v3088_v1 = vrot.slane %v3033_v10, 1  ;;  %v3082_v25 = vsel %vm3064_vm11, %v3072_v58, %v3081_v40 }
 0x306   :  { %v3027_v7 = vld [vmem:[#allocation3 + $0x48] sm:$0xfe]  ;;  %v3037_v15 = vld [vmem:[#allocation3 + $0xb8] sm:$0x1]  ;;  %v3070_v46 = vsel %vm3064_vm11, %v3068_v26, %v3069_v12 }
 0x307   :  { %v3031_v19 = vld [vmem:[#allocation3 + $0x98] sm:$0x1]  ;;  %v3074_v63 = vrot.slane %v3027_v7, 1  ;;  %v3080_v45 = vsel %vm3064_vm11, %v3069_v12, %v3079_v34  ;;  %v3099_v60 = vrot.slane %v3037_v15, 1  ;;  %v3035_v24 = vld [vmem:[#allocation3 + $0xa0] sm:$0xfe]  ;;  %v3090_v10 = vsel %vm3064_vm11, %v3088_v1, %v3089_v53 }
 0x308   :  { %v3083_v5 = vrot.slane %v3031_v19, 1  ;;  %v3039_v21 = vld [vmem:[#allocation3 + $0x8] sm:$0x1]  ;;  %v3122_v22 = vpack.c.bf16 %v3080_v45, %v3070_v46  ;;  %v3038_v7 = vld [vmem:[#allocation3 + $0x20] sm:$0x1]  ;;  %v3094_v40 = vrot.slane %v3035_v24, 1  ;;  %v11075_v19 = vpack.c.bf16 %v3082_v25, %v3073_v32 }
 0x309   :  { %v3076_v44 = vsel %vm3064_vm11, %v3074_v63, %v3075_v28  ;;  %v8903_v31 = vld [vmem:[%s12995_s3 + $0x4e8] ss:$16 sps:$4 sm:$0xff]   ;;  %v3100_v12 = vsel %vm3064_vm11, %v3089_v53, %v3099_v60  ;;  %v3103_v34 = vrot.slane %v3039_v21, 1  ;;  %v3085_v63 = vrot.slane %v3032_v39, 1  ;;  %v8914_v32 = vld [vmem:[%s12995_s3 + $0x6cc] ss:$16 sps:$4 sm:$0xff]  }
 0x30a   :  { %v3084_v49 = vsel %vm3064_vm11, %v3075_v28, %v3083_v5  ;;  %v8906_v58 = vld [vmem:[%s12995_s3 + $0x6e8] ss:$16 sps:$4 sm:$0xff]   ;;  %3930 = vmatprep.mubr.bf16.mxu0 %v3122_v22  ;;  %v8911_v28 = vld [vmem:[%s12995_s3 + $0x4cc] ss:$16 sps:$4 sm:$0xff]   ;;  %v3097_v5 = vrot.slane %v3036_v35, 1  ;;  %v3091_v15 = vrot.slane %v3034_v18, 1  ;;  %v11081_v1 = vpack.c.bf16 %v3100_v12, %v3090_v10 }
 0x30b   :  { %v3124_v26 = vpack.c.bf16 %v3084_v49, %v3076_v44  ;;  %3931 = vmatmul.mubr.bf16.vlgmr.msra.gmra.mxu0 %v11059_v13  ;;  %v3096_v46 = vsel %vm3064_vm11, %v3094_v40, %v3095_v59  ;;  %v3104_v53 = vsel %vm3064_vm11, %v3095_v59, %v3103_v34  ;;  %v3101_v45 = vrot.slane %v3038_v7, 1  ;;  %v8909_v35 = vld [vmem:[%s12995_s3 + $0x4c8] ss:$16 sps:$4 sm:$0xff]   ;;  %v8917_v25 = vld [vmem:[%s12995_s3 + $0x4ac] ss:$16 sps:$4 sm:$0xff]  }
 0x30c   :  { %4005 = vmatpush1.bf16.msra.mxu0 %v8903_v31  ;;  %v11089_v39 = vpack.c.bf16 %v3104_v53, %v3096_v46  ;;  %v3086_v18 = vrot.slane %v11021_v37, 1  ;;  %3940 = vmatprep.mubr.bf16.mxu0 %v11081_v1  ;;  %v8912_v59 = vld [vmem:[%s12995_s3 + $0x6c8] ss:$16 sps:$4 sm:$0xff]   ;;  %v3092_v60 = vrot.slane %v11032_v3, 1  ;;  %v8920_v24 = vld [vmem:[%s12995_s3 + $0x6ac] ss:$16 sps:$4 sm:$0xff]  }
 0x30d   :  { %3983 = vmatprep.mubr.bf16.mxu1 %v3124_v26  ;;  %4006 = vmatprep.subr.bf16.mxu0 %v8911_v28  ;;  %v8915_v10 = vld [vmem:[%s12995_s3 + $0x4a8] ss:$16 sps:$4 sm:$0xff]   ;;  %v8923_v40 = vld [vmem:[%s12995_s3 + $0x48c] ss:$16 sps:$4 sm:$0xff]  }
 0x30e   :  { %3984 = vmatmul.mubr.bf16.vlgmr.msra.gmra.mxu1 %v11075_v19  ;;  %v3087_v21 = vsel %vm3064_vm11, %v3085_v63, %v3086_v18  ;;  %v3098_v44 = vsel %vm3064_vm11, %v3086_v18, %v3097_v5  ;;  %v3093_v49 = vsel %vm3064_vm11, %v3091_v15, %v3092_v60  ;;  %v3102_v31 = vsel %vm3064_vm11, %v3092_v60, %v3101_v45  ;;  %v8918_v7 = vld [vmem:[%s12995_s3 + $0x6a8] ss:$16 sps:$4 sm:$0xff]   ;;  %v8926_v34 = vld [vmem:[%s12995_s3 + $0x68c] ss:$16 sps:$4 sm:$0xff]   ;;  %v4972_v18 = vld [vmem:[#allocation3 + $0x70] sm:$0xfc] }
 0x30f   :  { %4058 = vmatpush1.bf16.msra.mxu1 %v8906_v58  ;;  %3993 = vmatprep.mubr.bf16.mxu1 %v11089_v39  ;;  %v11117_v58 = vpack.c.bf16 %v3098_v44, %v3087_v21  ;;  %v11119_v12 = vpack.c.bf16 %v3102_v31, %v3093_v49  ;;  %v8921_v28 = vld [vmem:[%s12995_s3 + $0x488] ss:$16 sps:$4 sm:$0xff]   ;;  %v8929_v5 = vld [vmem:[%s12995_s3 + $0x46c] ss:$16 sps:$4 sm:$0xff]   ;;  %v4976_v60 = vld [vmem:[#allocation3 + $0x20] sm:$0x3]  ;;  %vm13762_vm11 = vnez %v13726_v48 }
 0x310   :  { %4059 = vmatprep.subr.bf16.mxu1 %v8914_v32  ;;  %4007 = vmatpush1.bf16.msra.mxu0 %v8909_v35  ;;  %v8924_v63 = vld [vmem:[%s12995_s3 + $0x688] ss:$16 sps:$4 sm:$0xff]   ;;  %v8932_v15 = vld [vmem:[%s12995_s3 + $0x66c] ss:$16 sps:$4 sm:$0xff]   ;;  %v4974_v32 = vld [vmem:[#allocation3 + $0x80] sm:$0x3] }
 0x311   :  { %4008 = vmatprep.subr.bf16.mxu0 %v8917_v25  ;;  %v8927_v46 = vld [vmem:[%s12995_s3 + $0x468] ss:$16 sps:$4 sm:$0xff]   ;;  %v5016_v35 = vrot.slane %v11021_v37, 2  ;;  %v5027_v25 = vrot.slane %v4974_v32, 2  ;;  %v5022_v31 = vrot.slane %v11032_v3, 2 }
 0x312   :  { %v4970_v53 = vld [vmem:[#allocation3 + $0x38] sm:$0xfc]  ;;  %v13850_v48 = vld [vmem:[#allocation68_spill] sm:$0xff] }
 0x313   :  { %4060 = vmatpush1.bf16.msra.mxu1 %v8912_v59  ;;  %3941 = vmatmul.mubr.bf16.gmra.mxu0 %v11117_v58  ;;  %v5015_v45 = vrot.slane %v4970_v53, 2  ;;  %v8938_v59 = vld [vmem:[%s12995_s3 + $0x64c] ss:$16 sps:$4 sm:$0xff]   ;;  %v8933_v44 = vld [vmem:[%s12995_s3 + $0x448] ss:$16 sps:$4 sm:$0xff]   ;;  %v5028_v49 = vsel %vm4994_vm2, %v5016_v35, %v5027_v25 }
 0x314   :  { %4061 = vmatprep.subr.bf16.mxu1 %v8920_v24  ;;  %4009 = vmatpush1.bf16.msra.mxu0 %v8915_v10  ;;  %v5021_v24 = vrot.slane %v4972_v18, 2  ;;  %v5031_v10 = vrot.slane %v4976_v60, 2  ;;  %v8950_v53 = vld [vmem:[%s12995_s3 + $0x60c] ss:$16 sps:$4 sm:$0xff]   ;;  %v8945_v32 = vld [vmem:[%s12995_s3 + $0x408] ss:$16 sps:$4 sm:$0xff]  }
 0x315   :  { %4036 = vmatprep.mubr.bf16.mxu0 %v3122_v22  ;;  %4010 = vmatprep.subr.bf16.mxu0 %v8923_v40  ;;  %v8930_v22 = vld [vmem:[%s12995_s3 + $0x668] ss:$16 sps:$4 sm:$0xff]   ;;  %v5017_v21 = vsel %vm4994_vm2, %v5015_v45, %v5016_v35  ;;  %v8941_v40 = vld [vmem:[%s12995_s3 + $0x42c] ss:$16 sps:$4 sm:$0xff]  }
 0x316   :  { %3994 = vmatmul.mubr.bf16.gmra.mxu1 %v11119_v12  ;;  %v8948_v45 = vld [vmem:[%s12995_s3 + $0x608] ss:$16 sps:$4 sm:$0xff]   ;;  %v8953_v35 = vld [vmem:[%s12995_s3 + $0x5ec] ss:$16 sps:$4 sm:$0xff]  }
 0x317   :  { %4062 = vmatpush1.bf16.msra.mxu1 %v8918_v7  ;;  %4089 = vmatprep.mubr.bf16.mxu1 %v3124_v26  ;;  %v8935_v26 = vld [vmem:[%s12995_s3 + $0x44c] ss:$16 sps:$4 sm:$0xff]   ;;  %v8936_v7 = vld [vmem:[%s12995_s3 + $0x648] ss:$16 sps:$4 sm:$0xff]  }
 0x318   :  { %4063 = vmatprep.subr.bf16.mxu1 %v8926_v34  ;;  %4011 = vmatpush1.bf16.msra.mxu0 %v8921_v28  ;;  %v11166_v34 = vpack.c.bf16 %v5028_v49, %v5017_v21  ;;  %v8944_v28 = vld [vmem:[%s12995_s3 + $0x62c] ss:$16 sps:$4 sm:$0xff]   ;;  %v8954_v25 = vld [vmem:[%s12995_s3 + $0x7e8] ss:$16 sps:$4 sm:$0xff]  }
 0x319   :  { %4012 = vmatprep.subr.bf16.mxu0 %v8929_v5  ;;  %v5032_v5 = vsel %vm4994_vm2, %v5022_v31, %v5031_v10  ;;  %v8956_v18 = vld [vmem:[%s12995_s3 + $0x7ec] ss:$16 sps:$4 sm:$0xff]   ;;  %v8957_v21 = vld [vmem:[%s12995_s3 + $0x5c8] ss:$16 sps:$4 sm:$0xff]  }
 0x31a   :  { %v8959_v60 = vld [vmem:[%s12995_s3 + $0x5cc] ss:$16 sps:$4 sm:$0xff]   ;;  %v8963_v10 = vld [vmem:[%s12995_s3 + $0x5a8] ss:$16 sps:$4 sm:$0xff]  }
 0x31b   :  { %4064 = vmatpush1.bf16.msra.mxu1 %v8924_v63  ;;  %v5023_v63 = vsel %vm4994_vm2, %v5021_v24, %v5022_v31  ;;  %v8962_v24 = vld [vmem:[%s12995_s3 + $0x7cc] ss:$16 sps:$4 sm:$0xff]  }
 0x31c   :  { %4065 = vmatprep.subr.bf16.mxu1 %v8932_v15  ;;  %4013 = vmatpush1.bf16.msra.mxu0 %v8927_v46  ;;  %v11173_v15 = vpack.c.bf16 %v5032_v5, %v5023_v63  ;;  %v8939_v46 = vld [vmem:[%s12995_s3 + $0x428] ss:$16 sps:$4 sm:$0xff]   ;;  %v8965_v49 = vld [vmem:[%s12995_s3 + $0x5ac] ss:$16 sps:$4 sm:$0xff]  }
 0x31d   :  { %4014 = vmatprep.subr.bf16.mxu0 %v8935_v26  ;;  %v8947_v26 = vld [vmem:[%s12995_s3 + $0x40c] ss:$16 sps:$4 sm:$0xff]   ;;  %v8969_v63 = vld [vmem:[%s12995_s3 + $0x588] ss:$16 sps:$4 sm:$0xff]  }
 0x31e   :  { %v8968_v31 = vld [vmem:[%s12995_s3 + $0x7ac] ss:$16 sps:$4 sm:$0xff]   ;;  %v8972_v5 = vld [vmem:[%s12995_s3 + $0x788] ss:$16 sps:$4 sm:$0xff]  }
 0x31f   :  { %4066 = vmatpush1.bf16.msra.mxu1 %v8930_v22  ;;  %v8942_v22 = vld [vmem:[%s12995_s3 + $0x628] ss:$16 sps:$4 sm:$0xff]  }
 0x320   :  { %4067 = vmatprep.subr.bf16.mxu1 %v8938_v59  ;;  %4015 = vmatpush1.bf16.msra.mxu0 %v8933_v44  ;;  %v8951_v59 = vld [vmem:[%s12995_s3 + $0x5e8] ss:$16 sps:$4 sm:$0xff]  }
 0x321   :  { %4016 = vmatprep.subr.bf16.mxu0 %v8941_v40  ;;  %v8960_v44 = vld [vmem:[%s12995_s3 + $0x7c8] ss:$16 sps:$4 sm:$0xff]   ;;  %v8971_v40 = vld [vmem:[%s12995_s3 + $0x58c] ss:$16 sps:$4 sm:$0xff]  }
 0x323   :  { %4068 = vmatpush1.bf16.msra.mxu1 %v8936_v7  ;;  %v8966_v7 = vld [vmem:[%s12995_s3 + $0x7a8] ss:$16 sps:$4 sm:$0xff]  }
 0x324   :  { %4069 = vmatprep.subr.bf16.mxu1 %v8944_v28  ;;  %4017 = vmatpush1.bf16.msra.mxu0 %v8939_v46  ;;  %v8974_v28 = vld [vmem:[%s12995_s3 + $0x78c] ss:$16 sps:$4 sm:$0xff]  }
 0x325   :  { %4018 = vmatprep.subr.bf16.mxu0 %v8947_v26  ;;  %v8977_v46 = vld [vmem:[%s12995_s3 + $0x56c] ss:$16 sps:$4 sm:$0xff]   ;;  %v8975_v26 = vld [vmem:[%s12995_s3 + $0x568] ss:$16 sps:$4 sm:$0xff]  }
 0x327   :  { %4070 = vmatpush1.bf16.msra.mxu1 %v8942_v22  ;;  %v8980_v22 = vld [vmem:[%s12995_s3 + $0x76c] ss:$16 sps:$4 sm:$0xff]  }
 0x328   :  { %4071 = vmatprep.subr.bf16.mxu1 %v8950_v53  ;;  %4019 = vmatpush1.bf16.msra.mxu0 %v8945_v32  ;;  %v8978_v53 = vld [vmem:[%s12995_s3 + $0x768] ss:$16 sps:$4 sm:$0xff]   ;;  %v8983_v32 = vld [vmem:[%s12995_s3 + $0x54c] ss:$16 sps:$4 sm:$0xff]  }
 0x329   :  { %4020 = vmatprep.subr.bf16.mxu0 %v8953_v35  ;;  %v8981_v35 = vld [vmem:[%s12995_s3 + $0x548] ss:$16 sps:$4 sm:$0xff]  }
 0x32b   :  { %4072 = vmatpush1.bf16.msra.mxu1 %v8948_v45  ;;  %v8986_v45 = vld [vmem:[%s12995_s3 + $0x74c] ss:$16 sps:$4 sm:$0xff]  }
 0x32c   :  { %4073 = vmatprep.subr.bf16.mxu1 %v8956_v18  ;;  %4021 = vmatpush2.bf16.msra.mxu0 %v8951_v59  ;;  %v8984_v18 = vld [vmem:[%s12995_s3 + $0x748] ss:$16 sps:$4 sm:$0xff]   ;;  %v8989_v59 = vld [vmem:[%s12995_s3 + $0x52c] ss:$16 sps:$4 sm:$0xff]  }
 0x32d   :  { %4022 = vmatprep.subr.bf16.mxu0 %v8959_v60  ;;  %v8987_v60 = vld [vmem:[%s12995_s3 + $0x528] ss:$16 sps:$4 sm:$0xff]  }
 0x32f   :  { %4074 = vmatpush2.bf16.msra.mxu1 %v8954_v25  ;;  %v8992_v25 = vld [vmem:[%s12995_s3 + $0x72c] ss:$16 sps:$4 sm:$0xff]  }
 0x330   :  { %4075 = vmatprep.subr.bf16.mxu1 %v8962_v24  ;;  %4023 = vmatpush2.bf16.msra.mxu0 %v8957_v21  ;;  %v8990_v24 = vld [vmem:[%s12995_s3 + $0x728] ss:$16 sps:$4 sm:$0xff]   ;;  %v8995_v21 = vld [vmem:[%s12995_s3 + $0x50c] ss:$16 sps:$4 sm:$0xff]  }
 0x331   :  { %4024 = vmatprep.subr.bf16.mxu0 %v8965_v49  ;;  %v8993_v49 = vld [vmem:[%s12995_s3 + $0x508] ss:$16 sps:$4 sm:$0xff]  }
 0x333   :  { %4076 = vmatpush2.bf16.msra.mxu1 %v8960_v44  ;;  %v8998_v44 = vld [vmem:[%s12995_s3 + $0x70c] ss:$16 sps:$4 sm:$0xff]  }
 0x334   :  { %4077 = vmatprep.subr.bf16.mxu1 %v8968_v31  ;;  %4025 = vmatpush2.bf16.msra.mxu0 %v8963_v10  ;;  %v8996_v31 = vld [vmem:[%s12995_s3 + $0x708] ss:$16 sps:$4 sm:$0xff]   ;;  %v9001_v10 = vld [vmem:[%s12995_s3 + $0xe4] ss:$16 sps:$4 sm:$0xff]  }
 0x335   :  { %4026 = vmatprep.subr.bf16.mxu0 %v8971_v40  ;;  %v8999_v40 = vld [vmem:[%s12995_s3 + $0xe0] ss:$16 sps:$4 sm:$0xff]  }
 0x337   :  { %4078 = vmatpush2.bf16.msra.mxu1 %v8966_v7  ;;  %v9004_v7 = vld [vmem:[%s12995_s3 + $0x2e4] ss:$16 sps:$4 sm:$0xff]  }
 0x338   :  { %4079 = vmatprep.subr.bf16.mxu1 %v8974_v28  ;;  %4027 = vmatpush2.bf16.msra.mxu0 %v8969_v63  ;;  %v9002_v28 = vld [vmem:[%s12995_s3 + $0x2e0] ss:$16 sps:$4 sm:$0xff]   ;;  %v9007_v63 = vld [vmem:[%s12995_s3 + $0xc4] ss:$16 sps:$4 sm:$0xff]  }
 0x339   :  { %4028 = vmatprep.subr.bf16.mxu0 %v8977_v46  ;;  %v9005_v46 = vld [vmem:[%s12995_s3 + $0xc0] ss:$16 sps:$4 sm:$0xff]  }
 0x33b   :  { %4080 = vmatpush2.bf16.msra.mxu1 %v8972_v5  ;;  %v9010_v5 = vld [vmem:[%s12995_s3 + $0x2c4] ss:$16 sps:$4 sm:$0xff]  }
 0x33c   :  { %4081 = vmatprep.subr.bf16.mxu1 %v8980_v22  ;;  %4029 = vmatpush2.bf16.msra.mxu0 %v8975_v26  ;;  %v9013_v22 = vld [vmem:[%s12995_s3 + $0xa4] ss:$16 sps:$4 sm:$0xff]   ;;  %v9011_v26 = vld [vmem:[%s12995_s3 + $0xa0] ss:$16 sps:$4 sm:$0xff]  }
 0x33d   :  { %4030 = vmatprep.subr.bf16.mxu0 %v8983_v32 }
 0x33f   :  { %4082 = vmatpush2.bf16.msra.mxu1 %v8978_v53  ;;  %v9014_v53 = vld [vmem:[%s12995_s3 + $0x2a0] ss:$16 sps:$4 sm:$0xff]  }
 0x340   :  { %4083 = vmatprep.subr.bf16.mxu1 %v8986_v45  ;;  %4031 = vmatpush2.bf16.msra.mxu0 %v8981_v35  ;;  %v9019_v45 = vld [vmem:[%s12995_s3 + $0x84] ss:$16 sps:$4 sm:$0xff]  }
 0x341   :  { %4032 = vmatprep.subr.bf16.mxu0 %v8989_v59  ;;  %v9023_v59 = vld [vmem:[%s12995_s3 + $0x60] ss:$16 sps:$4 sm:$0xff]  }
 0x343   :  { %4084 = vmatpush2.bf16.msra.mxu1 %v8984_v18  ;;  %v9022_v18 = vld [vmem:[%s12995_s3 + $0x284] ss:$16 sps:$4 sm:$0xff]  }
 0x344   :  { %4085 = vmatprep.subr.bf16.mxu1 %v8992_v25  ;;  %4033 = vmatpush2.bf16.msra.mxu0 %v8987_v60  ;;  %v9026_v25 = vld [vmem:[%s12995_s3 + $0x260] ss:$16 sps:$4 sm:$0xff]   ;;  %v9031_v60 = vld [vmem:[%s12995_s3 + $0x44] ss:$16 sps:$4 sm:$0xff]  }
 0x345   :  { %4034 = vmatprep.subr.bf16.mxu0 %v8995_v21  ;;  %v9029_v21 = vld [vmem:[%s12995_s3 + $0x40] ss:$16 sps:$4 sm:$0xff]  }
 0x347   :  { %4086 = vmatpush2.bf16.msra.mxu1 %v8990_v24  ;;  %v9034_v24 = vld [vmem:[%s12995_s3 + $0x244] ss:$16 sps:$4 sm:$0xff]  }
 0x348   :  { %4087 = vmatprep.subr.bf16.mxu1 %v8998_v44  ;;  %4035 = vmatpush2.bf16.msra.mxu0 %v8993_v49  ;;  %v9032_v44 = vld [vmem:[%s12995_s3 + $0x240] ss:$16 sps:$4 sm:$0xff]   ;;  %v9037_v49 = vld [vmem:[%s12995_s3 + $0x24] ss:$16 sps:$4 sm:$0xff]  }
 0x349   :  { %4750 = vmatprep.subr.bf16.mxu0 %v9001_v10  ;;  %v9035_v10 = vld [vmem:[%s12995_s3 + $0x20] ss:$16 sps:$4 sm:$0xff]  }
 0x34b   :  { %4088 = vmatpush2.bf16.msra.mxu1 %v8996_v31  ;;  %4037 = vmatmul.mubr.bf16.vlgmr.msra.gmra.mxu0 %v11059_v13  ;;  %v9008_v13 = vld [vmem:[%s12995_s3 + $0x2c0] ss:$16 sps:$4 sm:$0xff]   ;;  %v9040_v31 = vld [vmem:[%s12995_s3 + $0x224] ss:$16 sps:$4 sm:$0xff]  }
 0x34c   :  { %4803 = vmatprep.subr.bf16.mxu1 %v9004_v7  ;;  %4046 = vmatprep.mubr.bf16.mxu0 %v11081_v1  ;;  %v2873_v1 = vld [vmem:[#allocation3] sm:$0xff] }
 0x34d   :  { %4751 = vmatpush1.bf16.msra.mxu0 %v8999_v40  ;;  %v11330_v32 = vpack.c.bf16 %v11036_v52, %v2873_v1  ;;  %v9017_v52 = vld [vmem:[%s12995_s3 + $0x80] ss:$16 sps:$4 sm:$0xff]   ;;  %v9043_v40 = vld [vmem:[%s12995_s3 + $0x4] ss:$16 sps:$4 sm:$0xff]  }
 0x34e   :  { %4090 = vmatmul.mubr.bf16.vlgmr.msra.gmra.mxu1 %v11075_v19  ;;  %4752 = vmatprep.subr.bf16.mxu0 %v9007_v63  ;;  %v9016_v19 = vld [vmem:[%s12995_s3 + $0x2a4] ss:$16 sps:$4 sm:$0xff]   ;;  %v9038_v7 = vld [vmem:[%s12995_s3 + $0x220] ss:$16 sps:$4 sm:$0xff]  }
 0x34f   :  { %4099 = vmatprep.mubr.bf16.mxu1 %v11089_v39  ;;  %4804 = vmatpush1.bf16.msra.mxu1 %v9002_v28  ;;  %v2875_v39 = vld [vmem:[#allocation3 + $0x48] sm:$0xff]  ;;  %v9046_v28 = vld [vmem:[%s12995_s3 + $0x204] ss:$16 sps:$4 sm:$0xff]   ;;  %v9041_v63 = vld [vmem:[%s12995_s3] ss:$16 sps:$4 sm:$0xff]  }
 0x350   :  { %4805 = vmatprep.subr.bf16.mxu1 %v9010_v5  ;;  %v11337_v35 = vpack.c.bf16 %v11044_v23, %v2875_v39  ;;  %v9020_v23 = vld [vmem:[%s12995_s3 + $0x280] ss:$16 sps:$4 sm:$0xff]   ;;  %v9055_v1 = vld [vmem:[%s12995_s3 + $0x1c4] ss:$16 sps:$4 sm:$0xff]  }
 0x351   :  { %4753 = vmatpush1.bf16.msra.mxu0 %v9005_v46  ;;  %v9044_v5 = vld [vmem:[%s12995_s3 + $0x200] ss:$16 sps:$4 sm:$0xff]   ;;  %v9049_v46 = vld [vmem:[%s12995_s3 + $0x1e4] ss:$16 sps:$4 sm:$0xff]  }
 0x352   :  { %4754 = vmatprep.subr.bf16.mxu0 %v9013_v22  ;;  %v9047_v22 = vld [vmem:[%s12995_s3 + $0x1e0] ss:$16 sps:$4 sm:$0xff]   ;;  %v9058_v39 = vld [vmem:[%s12995_s3 + $0x3c4] ss:$16 sps:$4 sm:$0xff]  }
 0x353   :  { %4806 = vmatpush1.bf16.msra.mxu1 %v9008_v13  ;;  %4047 = vmatmul.mubr.bf16.gmra.mxu0 %v11117_v58  ;;  %v9025_v58 = vld [vmem:[%s12995_s3 + $0x64] ss:$16 sps:$4 sm:$0xff]  }
 0x354   :  { %4807 = vmatprep.subr.bf16.mxu1 %v9016_v19  ;;  %4782 = vmatprep.mubr.bf16.mxu0 %v11330_v32  ;;  %v9052_v13 = vld [vmem:[%s12995_s3 + $0x3e4] ss:$16 sps:$4 sm:$0xff]   ;;  %v9050_v19 = vld [vmem:[%s12995_s3 + $0x3e0] ss:$16 sps:$4 sm:$0xff]  }
 0x355   :  { %4755 = vmatpush1.bf16.msra.mxu0 %v9011_v26  ;;  %v9053_v26 = vld [vmem:[%s12995_s3 + $0x1c0] ss:$16 sps:$4 sm:$0xff]  }
 0x356   :  { %4100 = vmatmul.mubr.bf16.gmra.mxu1 %v11119_v12  ;;  %4756 = vmatprep.subr.bf16.mxu0 %v9019_v45  ;;  %v9028_v12 = vld [vmem:[%s12995_s3 + $0x264] ss:$16 sps:$4 sm:$0xff]  }
 0x357   :  { %4835 = vmatprep.mubr.bf16.mxu1 %v11337_v35  ;;  %4808 = vmatpush1.bf16.msra.mxu1 %v9014_v53  ;;  %v9056_v53 = vld [vmem:[%s12995_s3 + $0x3c0] ss:$16 sps:$4 sm:$0xff]   ;;  %v9061_v45 = vld [vmem:[%s12995_s3 + $0x1a4] ss:$16 sps:$4 sm:$0xff]  }
 0x358   :  { %4809 = vmatprep.subr.bf16.mxu1 %v9022_v18  ;;  %v9064_v18 = vld [vmem:[%s12995_s3 + $0x3a4] ss:$16 sps:$4 sm:$0xff]  }
 0x359   :  { %4757 = vmatpush1.bf16.msra.mxu0 %v9017_v52  ;;  %v9059_v52 = vld [vmem:[%s12995_s3 + $0x1a0] ss:$16 sps:$4 sm:$0xff]  }
 0x35a   :  { %4758 = vmatprep.subr.bf16.mxu0 %v9025_v58  ;;  %v9067_v58 = vld [vmem:[%s12995_s3 + $0x184] ss:$16 sps:$4 sm:$0xff]  }
 0x35b   :  { %4810 = vmatpush1.bf16.msra.mxu1 %v9020_v23  ;;  %v9062_v23 = vld [vmem:[%s12995_s3 + $0x3a0] ss:$16 sps:$4 sm:$0xff]  }
 0x35c   :  { %4811 = vmatprep.subr.bf16.mxu1 %v9028_v12  ;;  %v9070_v12 = vld [vmem:[%s12995_s3 + $0x384] ss:$16 sps:$4 sm:$0xff]  }
 0x35d   :  { %4759 = vmatpush1.bf16.msra.mxu0 %v9023_v59  ;;  %v9065_v59 = vld [vmem:[%s12995_s3 + $0x180] ss:$16 sps:$4 sm:$0xff]  }
 0x35e   :  { %4760 = vmatprep.subr.bf16.mxu0 %v9031_v60  ;;  %v9073_v60 = vld [vmem:[%s12995_s3 + $0x164] ss:$16 sps:$4 sm:$0xff]  }
 0x35f   :  { %4812 = vmatpush1.bf16.msra.mxu1 %v9026_v25  ;;  %v9068_v25 = vld [vmem:[%s12995_s3 + $0x380] ss:$16 sps:$4 sm:$0xff]  }
 0x360   :  { %4813 = vmatprep.subr.bf16.mxu1 %v9034_v24  ;;  %v9076_v24 = vld [vmem:[%s12995_s3 + $0x364] ss:$16 sps:$4 sm:$0xff]  }
 0x361   :  { %4761 = vmatpush1.bf16.msra.mxu0 %v9029_v21  ;;  %v9071_v21 = vld [vmem:[%s12995_s3 + $0x160] ss:$16 sps:$4 sm:$0xff]  }
 0x362   :  { %4762 = vmatprep.subr.bf16.mxu0 %v9037_v49  ;;  %v9079_v49 = vld [vmem:[%s12995_s3 + $0x144] ss:$16 sps:$4 sm:$0xff]  }
 0x363   :  { %4814 = vmatpush1.bf16.msra.mxu1 %v9032_v44  ;;  %v9074_v44 = vld [vmem:[%s12995_s3 + $0x360] ss:$16 sps:$4 sm:$0xff]  }
 0x364   :  { %4815 = vmatprep.subr.bf16.mxu1 %v9040_v31  ;;  %v9082_v31 = vld [vmem:[%s12995_s3 + $0x344] ss:$16 sps:$4 sm:$0xff]  }
 0x365   :  { %4763 = vmatpush1.bf16.msra.mxu0 %v9035_v10  ;;  %v9077_v10 = vld [vmem:[%s12995_s3 + $0x140] ss:$16 sps:$4 sm:$0xff]  }
 0x366   :  { %4764 = vmatprep.subr.bf16.mxu0 %v9043_v40  ;;  %v9085_v40 = vld [vmem:[%s12995_s3 + $0x124] ss:$16 sps:$4 sm:$0xff]  }
 0x367   :  { %4816 = vmatpush1.bf16.msra.mxu1 %v9038_v7  ;;  %v9080_v7 = vld [vmem:[%s12995_s3 + $0x340] ss:$16 sps:$4 sm:$0xff]  }
 0x368   :  { %4817 = vmatprep.subr.bf16.mxu1 %v9046_v28  ;;  %v9088_v28 = vld [vmem:[%s12995_s3 + $0x324] ss:$16 sps:$4 sm:$0xff]  }
 0x369   :  { %4765 = vmatpush1.bf16.msra.mxu0 %v9041_v63  ;;  %v9083_v63 = vld [vmem:[%s12995_s3 + $0x120] ss:$16 sps:$4 sm:$0xff]  }
 0x36a   :  { %4766 = vmatprep.subr.bf16.mxu0 %v9049_v46  ;;  %v9091_v46 = vld [vmem:[%s12995_s3 + $0x104] ss:$16 sps:$4 sm:$0xff]  }
 0x36b   :  { %4818 = vmatpush1.bf16.msra.mxu1 %v9044_v5  ;;  %v9086_v5 = vld [vmem:[%s12995_s3 + $0x320] ss:$16 sps:$4 sm:$0xff]  }
 0x36c   :  { %4819 = vmatprep.subr.bf16.mxu1 %v9052_v13  ;;  %v9094_v13 = vld [vmem:[%s12995_s3 + $0x304] ss:$16 sps:$4 sm:$0xff]  }
 0x36d   :  { %4767 = vmatpush2.bf16.msra.mxu0 %v9047_v22  ;;  %v9089_v22 = vld [vmem:[%s12995_s3 + $0x100] ss:$16 sps:$4 sm:$0xff]  }
 0x36e   :  { %4768 = vmatprep.subr.bf16.mxu0 %v9055_v1  ;;  %v9097_v1 = vld [vmem:[%s12995_s3 + $0xec] ss:$16 sps:$4 sm:$0xff]  }
 0x36f   :  { %4820 = vmatpush2.bf16.msra.mxu1 %v9050_v19  ;;  %v9092_v19 = vld [vmem:[%s12995_s3 + $0x300] ss:$16 sps:$4 sm:$0xff]  }
 0x370   :  { %4821 = vmatprep.subr.bf16.mxu1 %v9058_v39  ;;  %v2872_v39 = vld [vmem:[#allocation3 + $0xb0] sm:$0xff] }
 0x371   :  { %4769 = vmatpush2.bf16.msra.mxu0 %v9053_v26  ;;  %v9100_v26 = vld [vmem:[%s12995_s3 + $0x2ec] ss:$16 sps:$4 sm:$0xff]  }
 0x372   :  { %4770 = vmatprep.subr.bf16.mxu0 %v9061_v45  ;;  %v2881_v45 = vld [vmem:[#allocation3 + $0x50] sm:$0xff] }
 0x373   :  { %4822 = vmatpush2.bf16.msra.mxu1 %v9056_v53  ;;  %v2874_v53 = vld [vmem:[#allocation3 + $0x10] sm:$0xff] }
 0x374   :  { %4823 = vmatprep.subr.bf16.mxu1 %v9064_v18  ;;  %v2883_v18 = vld [vmem:[#allocation3 + $0xa0] sm:$0xff] }
 0x375   :  { %4771 = vmatpush2.bf16.msra.mxu0 %v9059_v52  ;;  %v11502_v52 = vpack.c.bf16 %v11018_v20, %v2872_v39  ;;  %v9103_v20 = vld [vmem:[%s12995_s3 + $0xcc] ss:$16 sps:$4 sm:$0xff]  }
 0x376   :  { %4772 = vmatprep.subr.bf16.mxu0 %v9067_v58  ;;  %v11508_v58 = vpack.c.bf16 %v11029_v4, %v2874_v53  ;;  %v9106_v4 = vld [vmem:[%s12995_s3 + $0x2cc] ss:$16 sps:$4 sm:$0xff]   ;;  %v9134_v53 = vld [vmem:[%s12995_s3 + $0x228] ss:$16 sps:$4 sm:$0xff]  }
 0x377   :  { %4824 = vmatpush2.bf16.msra.mxu1 %v9062_v23  ;;  %v9095_v23 = vld [vmem:[%s12995_s3 + $0xe8] ss:$16 sps:$4 sm:$0xff]   ;;  %v9136_v39 = vld [vmem:[%s12995_s3 + $0x22c] ss:$16 sps:$4 sm:$0xff]  }
 0x378   :  { %4825 = vmatprep.subr.bf16.mxu1 %v9070_v12  ;;  %v9098_v12 = vld [vmem:[%s12995_s3 + $0x2e8] ss:$16 sps:$4 sm:$0xff]  }
 0x379   :  { %4773 = vmatpush2.bf16.msra.mxu0 %v9065_v59  ;;  %v11514_v59 = vpack.c.bf16 %v11039_v11, %v2881_v45  ;;  %v9101_v11 = vld [vmem:[%s12995_s3 + $0xc8] ss:$16 sps:$4 sm:$0xff]   ;;  %v9139_v45 = vld [vmem:[%s12995_s3 + $0xc] ss:$16 sps:$4 sm:$0xff]  }
 0x37a   :  { %4774 = vmatprep.subr.bf16.mxu0 %v9073_v60  ;;  %v2880_v60 = vld [vmem:[#allocation3 + $0x38] sm:$0xff] }
 0x37b   :  { %4826 = vmatpush2.bf16.msra.mxu1 %v9068_v25  ;;  %v11521_v25 = vpack.c.bf16 %v11047_v14, %v2883_v18  ;;  %v9104_v14 = vld [vmem:[%s12995_s3 + $0x2c8] ss:$16 sps:$4 sm:$0xff]   ;;  %v9142_v18 = vld [vmem:[%s12995_s3 + $0x20c] ss:$16 sps:$4 sm:$0xff]  }
 0x37c   :  { %4827 = vmatprep.subr.bf16.mxu1 %v9076_v24  ;;  %v9109_v24 = vld [vmem:[%s12995_s3 + $0xac] ss:$16 sps:$4 sm:$0xff]  }
 0x37d   :  { %4775 = vmatpush2.bf16.msra.mxu0 %v9071_v21  ;;  %v2882_v21 = vld [vmem:[#allocation3 + $0x70] sm:$0xff] }
 0x37e   :  { %4776 = vmatprep.subr.bf16.mxu0 %v9079_v49  ;;  %v11542_v49 = vpack.c.bf16 %v11021_v37, %v2880_v60  ;;  %v9118_v37 = vld [vmem:[%s12995_s3 + $0x28c] ss:$16 sps:$4 sm:$0xff]  }
 0x37f   :  { %4828 = vmatpush2.bf16.msra.mxu1 %v9074_v44  ;;  %v9112_v44 = vld [vmem:[%s12995_s3 + $0x2ac] ss:$16 sps:$4 sm:$0xff]  }
 0x380   :  { %4829 = vmatprep.subr.bf16.mxu1 %v9082_v31  ;;  %v9107_v31 = vld [vmem:[%s12995_s3 + $0xa8] ss:$16 sps:$4 sm:$0xff]   ;;  %v9151_v60 = vld [vmem:[%s12995_s3 + $0x1cc] ss:$16 sps:$4 sm:$0xff]  }
 0x381   :  { %4777 = vmatpush2.bf16.msra.mxu0 %v9077_v10  ;;  %v11548_v10 = vpack.c.bf16 %v11032_v3, %v2882_v21  ;;  %v9113_v3 = vld [vmem:[%s12995_s3 + $0x88] ss:$16 sps:$4 sm:$0xff]  }
 0x382   :  { %4778 = vmatprep.subr.bf16.mxu0 %v9085_v40  ;;  %v9115_v40 = vld [vmem:[%s12995_s3 + $0x8c] ss:$16 sps:$4 sm:$0xff]   ;;  %v9149_v21 = vld [vmem:[%s12995_s3 + $0x1c8] ss:$16 sps:$4 sm:$0xff]  }
 0x383   :  { %4830 = vmatpush2.bf16.msra.mxu1 %v9080_v7  ;;  %v9110_v7 = vld [vmem:[%s12995_s3 + $0x2a8] ss:$16 sps:$4 sm:$0xff]  }
 0x384   :  { %4831 = vmatprep.subr.bf16.mxu1 %v9088_v28  ;;  %v9116_v28 = vld [vmem:[%s12995_s3 + $0x288] ss:$16 sps:$4 sm:$0xff]  }
 0x385   :  { %4779 = vmatpush2.bf16.msra.mxu0 %v9083_v63  ;;  %v9121_v63 = vld [vmem:[%s12995_s3 + $0x6c] ss:$16 sps:$4 sm:$0xff]  }
 0x386   :  { %4780 = vmatprep.subr.bf16.mxu0 %v9091_v46  ;;  %v9127_v46 = vld [vmem:[%s12995_s3 + $0x4c] ss:$16 sps:$4 sm:$0xff]  }
 0x387   :  { %4832 = vmatpush2.bf16.msra.mxu1 %v9086_v5  ;;  %v9122_v5 = vld [vmem:[%s12995_s3 + $0x268] ss:$16 sps:$4 sm:$0xff]  }
 0x388   :  { %4833 = vmatprep.subr.bf16.mxu1 %v9094_v13  ;;  %v9130_v13 = vld [vmem:[%s12995_s3 + $0x24c] ss:$16 sps:$4 sm:$0xff]  }
 0x389   :  { %4781 = vmatpush2.bf16.msra.mxu0 %v9089_v22  ;;  %v9125_v22 = vld [vmem:[%s12995_s3 + $0x48] ss:$16 sps:$4 sm:$0xff]  }
 0x38a   :  { %4856 = vmatprep.subr.bf16.mxu0 %v9097_v1  ;;  %v9133_v1 = vld [vmem:[%s12995_s3 + $0x2c] ss:$16 sps:$4 sm:$0xff]  }
 0x38b   :  { %4834 = vmatpush2.bf16.msra.mxu1 %v9092_v19  ;;  %v9128_v19 = vld [vmem:[%s12995_s3 + $0x248] ss:$16 sps:$4 sm:$0xff]  }
 0x38c   :  { %4909 = vmatprep.subr.bf16.mxu1 %v9100_v26  ;;  %4783 = vmatmul.mubr.bf16.vlgmr.msra.gmra.mxu0 %v11502_v52  ;;  %v9131_v26 = vld [vmem:[%s12995_s3 + $0x28] ss:$16 sps:$4 sm:$0xff]  }
 0x38d   :  { %4792 = vmatprep.mubr.bf16.mxu0 %v11514_v59  ;;  %4857 = vmatpush1.bf16.msra.mxu0 %v9095_v23  ;;  %v9137_v23 = vld [vmem:[%s12995_s3 + $0x8] ss:$16 sps:$4 sm:$0xff]  }
 0x38e   :  { %4836 = vmatmul.mubr.bf16.vlgmr.msra.gmra.mxu1 %v11508_v58  ;;  %4858 = vmatprep.subr.bf16.mxu0 %v9103_v20  ;;  %v9145_v20 = vld [vmem:[%s12995_s3 + $0x1ec] ss:$16 sps:$4 sm:$0xff]  }
 0x38f   :  { %4845 = vmatprep.mubr.bf16.mxu1 %v11521_v25  ;;  %4910 = vmatpush1.bf16.msra.mxu1 %v9098_v12  ;;  %v9140_v12 = vld [vmem:[%s12995_s3 + $0x208] ss:$16 sps:$4 sm:$0xff]  }
 0x390   :  { %4911 = vmatprep.subr.bf16.mxu1 %v9106_v4  ;;  %v9148_v4 = vld [vmem:[%s12995_s3 + $0x3ec] ss:$16 sps:$4 sm:$0xff]  }
 0x391   :  { %4859 = vmatpush1.bf16.msra.mxu0 %v9101_v11  ;;  %v9143_v11 = vld [vmem:[%s12995_s3 + $0x1e8] ss:$16 sps:$4 sm:$0xff]  }
 0x392   :  { %4860 = vmatprep.subr.bf16.mxu0 %v9109_v24  ;;  %v9154_v24 = vld [vmem:[%s12995_s3 + $0x3cc] ss:$16 sps:$4 sm:$0xff]  }
 0x393   :  { %4912 = vmatpush1.bf16.msra.mxu1 %v9104_v14  ;;  %v9146_v14 = vld [vmem:[%s12995_s3 + $0x3e8] ss:$16 sps:$4 sm:$0xff]  }
 0x394   :  { %4793 = vmatmul.mubr.bf16.gmra.mxu0 %v11542_v49  ;;  %4913 = vmatprep.subr.bf16.mxu1 %v9112_v44  ;;  %v9152_v44 = vld [vmem:[%s12995_s3 + $0x3c8] ss:$16 sps:$4 sm:$0xff]  }
 0x395   :  { %4888 = vmatprep.mubr.bf16.mxu0 %v11330_v32  ;;  %4861 = vmatpush1.bf16.msra.mxu0 %v9107_v31  ;;  %v9124_v32 = vld [vmem:[%s12995_s3 + $0x26c] ss:$16 sps:$4 sm:$0xff]  }
 0x396   :  { %4846 = vmatmul.mubr.bf16.gmra.mxu1 %v11548_v10  ;;  %4862 = vmatprep.subr.bf16.mxu0 %v9115_v40  ;;  %v9157_v31 = vld [vmem:[%s12995_s3 + $0x1ac] ss:$16 sps:$4 sm:$0xff]   ;;  %v9155_v40 = vld [vmem:[%s12995_s3 + $0x1a8] ss:$16 sps:$4 sm:$0xff]  }
 0x397   :  { %4941 = vmatprep.mubr.bf16.mxu1 %v11337_v35  ;;  %4914 = vmatpush1.bf16.msra.mxu1 %v9110_v7  ;;  %v9119_v35 = vld [vmem:[%s12995_s3 + $0x68] ss:$16 sps:$4 sm:$0xff]   ;;  %v9160_v7 = vld [vmem:[%s12995_s3 + $0x3ac] ss:$16 sps:$4 sm:$0xff]  }
 0x398   :  { %4915 = vmatprep.subr.bf16.mxu1 %v9118_v37  ;;  %v9158_v37 = vld [vmem:[%s12995_s3 + $0x3a8] ss:$16 sps:$4 sm:$0xff]  }
 0x399   :  { %4863 = vmatpush1.bf16.msra.mxu0 %v9113_v3  ;;  %v9163_v3 = vld [vmem:[%s12995_s3 + $0x18c] ss:$16 sps:$4 sm:$0xff]  }
 0x39a   :  { %4864 = vmatprep.subr.bf16.mxu0 %v9121_v63  ;;  %v9161_v63 = vld [vmem:[%s12995_s3 + $0x188] ss:$16 sps:$4 sm:$0xff]  }
 0x39b   :  { %4916 = vmatpush1.bf16.msra.mxu1 %v9116_v28  ;;  %v9166_v28 = vld [vmem:[%s12995_s3 + $0x38c] ss:$16 sps:$4 sm:$0xff]  }
 0x39c   :  { %4917 = vmatprep.subr.bf16.mxu1 %v9124_v32  ;;  %v9164_v32 = vld [vmem:[%s12995_s3 + $0x388] ss:$16 sps:$4 sm:$0xff]  }
 0x39d   :  { %4865 = vmatpush1.bf16.msra.mxu0 %v9119_v35  ;;  %v9169_v35 = vld [vmem:[%s12995_s3 + $0x16c] ss:$16 sps:$4 sm:$0xff]  }
 0x39e   :  { %4866 = vmatprep.subr.bf16.mxu0 %v9127_v46  ;;  %v9167_v46 = vld [vmem:[%s12995_s3 + $0x168] ss:$16 sps:$4 sm:$0xff]  }
 0x39f   :  { %4918 = vmatpush1.bf16.msra.mxu1 %v9122_v5  ;;  %v9172_v5 = vld [vmem:[%s12995_s3 + $0x36c] ss:$16 sps:$4 sm:$0xff]  }
 0x3a0   :  { %4919 = vmatprep.subr.bf16.mxu1 %v9130_v13  ;;  %v9170_v13 = vld [vmem:[%s12995_s3 + $0x368] ss:$16 sps:$4 sm:$0xff]  }
 0x3a1   :  { %4867 = vmatpush1.bf16.msra.mxu0 %v9125_v22  ;;  %v9175_v22 = vld [vmem:[%s12995_s3 + $0x14c] ss:$16 sps:$4 sm:$0xff]  }
 0x3a2   :  { %4868 = vmatprep.subr.bf16.mxu0 %v9133_v1  ;;  %v9173_v1 = vld [vmem:[%s12995_s3 + $0x148] ss:$16 sps:$4 sm:$0xff]  }
 0x3a3   :  { %4920 = vmatpush1.bf16.msra.mxu1 %v9128_v19  ;;  %v9178_v19 = vld [vmem:[%s12995_s3 + $0x34c] ss:$16 sps:$4 sm:$0xff]  }
 0x3a4   :  { %4921 = vmatprep.subr.bf16.mxu1 %v9136_v39  ;;  %v9176_v39 = vld [vmem:[%s12995_s3 + $0x348] ss:$16 sps:$4 sm:$0xff]  }
 0x3a5   :  { %4869 = vmatpush1.bf16.msra.mxu0 %v9131_v26  ;;  %v9181_v26 = vld [vmem:[%s12995_s3 + $0x12c] ss:$16 sps:$4 sm:$0xff]  }
 0x3a6   :  { %4870 = vmatprep.subr.bf16.mxu0 %v9139_v45  ;;  %v9179_v45 = vld [vmem:[%s12995_s3 + $0x128] ss:$16 sps:$4 sm:$0xff]  }
 0x3a7   :  { %4922 = vmatpush1.bf16.msra.mxu1 %v9134_v53  ;;  %v9184_v53 = vld [vmem:[%s12995_s3 + $0x32c] ss:$16 sps:$4 sm:$0xff]  }
 0x3a8   :  { %4923 = vmatprep.subr.bf16.mxu1 %v9142_v18  ;;  %v9182_v18 = vld [vmem:[%s12995_s3 + $0x328] ss:$16 sps:$4 sm:$0xff]  }
 0x3a9   :  { %4871 = vmatpush1.bf16.msra.mxu0 %v9137_v23  ;;  %v9187_v23 = vld [vmem:[%s12995_s3 + $0x10c] ss:$16 sps:$4 sm:$0xff]  }
 0x3aa   :  { %4872 = vmatprep.subr.bf16.mxu0 %v9145_v20  ;;  %v9185_v20 = vld [vmem:[%s12995_s3 + $0x108] ss:$16 sps:$4 sm:$0xff]  }
 0x3ab   :  { %4924 = vmatpush1.bf16.msra.mxu1 %v9140_v12  ;;  %v9190_v12 = vld [vmem:[%s12995_s3 + $0x30c] ss:$16 sps:$4 sm:$0xff]  }
 0x3ac   :  { %4925 = vmatprep.subr.bf16.mxu1 %v9148_v4  ;;  %v9188_v4 = vld [vmem:[%s12995_s3 + $0x308] ss:$16 sps:$4 sm:$0xff]  }
 0x3ad   :  { %4873 = vmatpush2.bf16.msra.mxu0 %v9143_v11  ;;  %v9193_v11 = vld [vmem:[%s12995_s3 + $0x8e4] ss:$16 sps:$4 sm:$0xff]  }
 0x3ae   :  { %4874 = vmatprep.subr.bf16.mxu0 %v9151_v60  ;;  %v4963_v60 = vld [vmem:[#allocation3] sm:$0xfc] }
 0x3af   :  { %4926 = vmatpush2.bf16.msra.mxu1 %v9146_v14  ;;  %v9196_v14 = vld [vmem:[%s12995_s3 + $0xae4] ss:$16 sps:$4 sm:$0xff]  }
 0x3b0   :  { %4927 = vmatprep.subr.bf16.mxu1 %v9154_v24  ;;  %v4967_v24 = vld [vmem:[#allocation3 + $0x90] sm:$0x3] }
 0x3b1   :  { %4875 = vmatpush2.bf16.msra.mxu0 %v9149_v21  ;;  %v9191_v21 = vld [vmem:[%s12995_s3 + $0x8e0] ss:$16 sps:$4 sm:$0xff]  }
 0x3b2   :  { %4876 = vmatprep.subr.bf16.mxu0 %v9157_v31  ;;  %v4965_v31 = vld [vmem:[#allocation3 + $0x48] sm:$0xfc] }
 0x3b3   :  { %4928 = vmatpush2.bf16.msra.mxu1 %v9152_v44 }
 0x3b4   :  { %4929 = vmatprep.subr.bf16.mxu1 %v9160_v7  ;;  %v4969_v7 = vld [vmem:[#allocation3 + $0x98] sm:$0x3] }
 0x3b5   :  { %4877 = vmatpush2.bf16.msra.mxu0 %v9155_v40  ;;  %v9194_v40 = vld [vmem:[%s12995_s3 + $0xae0] ss:$16 sps:$4 sm:$0xff]  }
 0x3b6   :  { %4878 = vmatprep.subr.bf16.mxu0 %v9163_v3  ;;  %v9199_v3 = vld [vmem:[%s12995_s3 + $0x8c4] ss:$16 sps:$4 sm:$0xff]  }
 0x3b7   :  { %4930 = vmatpush2.bf16.msra.mxu1 %v9158_v37 }
 0x3b8   :  { %4931 = vmatprep.subr.bf16.mxu1 %v9166_v28 }
 0x3b9   :  { %4879 = vmatpush2.bf16.msra.mxu0 %v9161_v63 }
 0x3ba   :  { %4880 = vmatprep.subr.bf16.mxu0 %v9169_v35  ;;  %v4998_v35 = vrot.slane %v4963_v60, 2 }
 0x3bb   :  { %4932 = vmatpush2.bf16.msra.mxu1 %v9164_v32  ;;  %v9202_v32 = vld [vmem:[%s12995_s3 + $0xac4] ss:$16 sps:$4 sm:$0xff]  }
 0x3bc   :  { %4933 = vmatprep.subr.bf16.mxu1 %v9172_v5  ;;  %v5009_v5 = vrot.slane %v4967_v24, 2 }
 0x3bd   :  { %4881 = vmatpush2.bf16.msra.mxu0 %v9167_v46 }
 0x3be   :  { %4882 = vmatprep.subr.bf16.mxu0 %v9175_v22  ;;  %v5013_v22 = vrot.slane %v4969_v7, 2 }
 0x3bf   :  { %4934 = vmatpush2.bf16.msra.mxu1 %v9170_v13  ;;  %v5004_v13 = vrot.slane %v4965_v31, 2  ;;  %v9206_v31 = vld [vmem:[%s12995_s3 + $0xaa0] ss:$16 sps:$4 sm:$0xff]  }
 0x3c0   :  { %4935 = vmatprep.subr.bf16.mxu1 %v9178_v19  ;;  %v9197_v19 = vld [vmem:[%s12995_s3 + $0x8c0] ss:$16 sps:$4 sm:$0xff]  }
 0x3c1   :  { %4883 = vmatpush2.bf16.msra.mxu0 %v9173_v1 }
 0x3c2   :  { %4884 = vmatprep.subr.bf16.mxu0 %v9181_v26 }
 0x3c3   :  { %4936 = vmatpush2.bf16.msra.mxu1 %v9176_v39  ;;  %v9388_v39 = vld [vmem:[#allocation3 + $0x28] sm:$0xff] }
 0x3c4   :  { %4937 = vmatprep.subr.bf16.mxu1 %v9184_v53  ;;  %v4999_v26 = vrot.slane %v9388_v39, 2  ;;  %v9389_v53 = vld [vmem:[#allocation3 + $0x78] sm:$0xff] }
 0x3c5   :  { %4885 = vmatpush2.bf16.msra.mxu0 %v9179_v45  ;;  %v5005_v45 = vrot.slane %v9389_v53, 2  ;;  %v9218_v53 = vld [vmem:[%s12995_s3 + $0xa60] ss:$16 sps:$4 sm:$0xff]  }
 0x3c6   :  { %4886 = vmatprep.subr.bf16.mxu0 %v9187_v23 }
 0x3c7   :  { %4938 = vmatpush2.bf16.msra.mxu1 %v9182_v18  ;;  %v5014_v60 = vsel %vm4994_vm2, %v5005_v45, %v5013_v22  ;;  %v9212_v22 = vld [vmem:[%s12995_s3 + $0xa80] ss:$16 sps:$4 sm:$0xff]  }
 0x3c8   :  { %4939 = vmatprep.subr.bf16.mxu1 %v9190_v12  ;;  %v9208_v12 = vld [vmem:[%s12995_s3 + $0xaa4] ss:$16 sps:$4 sm:$0xff]  }
 0x3c9   :  { %4887 = vmatpush2.bf16.msra.mxu0 %v9185_v20  ;;  %v5000_v20 = vsel %vm4994_vm2, %v4998_v35, %v4999_v26  ;;  %v9214_v35 = vld [vmem:[%s12995_s3 + $0xa84] ss:$16 sps:$4 sm:$0xff]  }
 0x3ca   :  { %5828 = vmatprep.subr.bf16.mxu0 %v9193_v11 }
 0x3cb   :  { %4940 = vmatpush2.bf16.msra.mxu1 %v9188_v4  ;;  %v3932_v44 = vpop.f32.mrf.mxu0  ;;  %v5010_v4 = vsel %vm4994_vm2, %v4999_v26, %v5009_v5  ;;  %v9220_v26 = vld [vmem:[%s12995_s3 + $0xa64] ss:$16 sps:$4 sm:$0xff]  }
 0x3cc   :  { %5881 = vmatprep.subr.bf16.mxu1 %v9196_v14  ;;  %4889 = vmatmul.mubr.bf16.vlgmr.msra.gmra.mxu0 %v11502_v52  ;;  %v5006_v14 = vsel %vm4994_vm2, %v5004_v13, %v5005_v45  ;;  %v9223_v45 = vld [vmem:[%s12995_s3 + $0x844] ss:$16 sps:$4 sm:$0xff]  }
 0x3cd   :  { %v3934_v63 = vpop.f32.mrf.mxu0  ;;  %4898 = vmatprep.mubr.bf16.mxu0 %v11514_v59  ;;  %5829 = vmatpush1.bf16.msra.mxu0 %v9191_v21  ;;  %v9203_v21 = vld [vmem:[%s12995_s3 + $0x8a0] ss:$16 sps:$4 sm:$0xff]  }
 0x3ce   :  { %v3985_v37 = vpop.f32.mrf.mxu1  ;;  %4942 = vmatmul.mubr.bf16.vlgmr.msra.gmra.mxu1 %v11508_v58  ;;  %5830 = vmatprep.subr.bf16.mxu0 %v9199_v3  ;;  %v9200_v58 = vld [vmem:[%s12995_s3 + $0xac0] ss:$16 sps:$4 sm:$0xff]  }
 0x3cf   :  { %v11729_v28 = vadd.f32 %v3985_v37, %v3932_v44  ;;  %4951 = vmatprep.mubr.bf16.mxu1 %v11521_v25  ;;  %v3936_v1 = vpop.f32.mrf.mxu0  ;;  %5882 = vmatpush1.bf16.msra.mxu1 %v9194_v40  ;;  %v9205_v25 = vld [vmem:[%s12995_s3 + $0x8a4] ss:$16 sps:$4 sm:$0xff]   ;;  %v11765_v40 = vpack.c.bf16 %v5010_v4, %v5000_v20  ;;  %v9224_v20 = vld [vmem:[%s12995_s3 + $0xa40] ss:$16 sps:$4 sm:$0xff]  }
 0x3d0   :  { %v3987_v46 = vpop.f32.mrf.mxu1  ;;  %5883 = vmatprep.subr.bf16.mxu1 %v9202_v32  ;;  %v9211_v37 = vld [vmem:[%s12995_s3 + $0x884] ss:$16 sps:$4 sm:$0xff]  }
 0x3d1   :  { %v11737_v52 = vadd.f32 %v3987_v46, %v3934_v63  ;;  %v3938_v23 = vpop.f32.mrf.mxu0  ;;  %5831 = vmatpush1.bf16.msra.mxu0 %v9197_v19  ;;  %v11773_v63 = vpack.c.bf16 %v5014_v60, %v5006_v14  ;;  %v9217_v19 = vld [vmem:[%s12995_s3 + $0x864] ss:$16 sps:$4 sm:$0xff]   ;;  %v9227_v14 = vld [vmem:[%s12995_s3 + $0x820] ss:$16 sps:$4 sm:$0xff]  }
 0x3d2   :  { %v3989_v59 = vpop.f32.mrf.mxu1  ;;  %5832 = vmatprep.subr.bf16.mxu0 %v9205_v25  ;;  %v9215_v25 = vld [vmem:[%s12995_s3 + $0x860] ss:$16 sps:$4 sm:$0xff]   ;;  %v9229_v4 = vld [vmem:[%s12995_s3 + $0x824] ss:$16 sps:$4 sm:$0xff]  }
 0x3d3   :  { %v11748_v18 = vadd.f32 %v3989_v59, %v3936_v1  ;;  %v3942_v44 = vpop.f32.mrf.mxu0  ;;  %5884 = vmatpush1.bf16.msra.mxu1 %v9200_v58  ;;  %v9230_v60 = vld [vmem:[%s12995_s3 + $0xa20] ss:$16 sps:$4 sm:$0xff]  }
 0x3d4   :  { %v3991_v11 = vpop.f32.mrf.mxu1  ;;  %4899 = vmatmul.mubr.bf16.gmra.mxu0 %v11542_v49  ;;  %5885 = vmatprep.subr.bf16.mxu1 %v9208_v12  ;;  %v9209_v49 = vld [vmem:[%s12995_s3 + $0x880] ss:$16 sps:$4 sm:$0xff]  }
 0x3d5   :  { %v11757_v24 = vadd.f32 %v3991_v11, %v3938_v23  ;;  %v3944_v32 = vpop.f32.mrf.mxu0  ;;  %5860 = vmatprep.mubr.bf16.mxu0 %v11765_v40  ;;  %5833 = vmatpush1.bf16.msra.mxu0 %v9203_v21  ;;  %v9226_v23 = vld [vmem:[%s12995_s3 + $0xa44] ss:$16 sps:$4 sm:$0xff]   ;;  %v9221_v12 = vld [vmem:[%s12995_s3 + $0x840] ss:$16 sps:$4 sm:$0xff]  }
 0x3d6   :  { %v3995_v7 = vpop.f32.mrf.mxu1  ;;  %4952 = vmatmul.mubr.bf16.gmra.mxu1 %v11548_v10  ;;  %5834 = vmatprep.subr.bf16.mxu0 %v9211_v37  ;;  %v9232_v11 = vld [vmem:[%s12995_s3 + $0xa24] ss:$16 sps:$4 sm:$0xff]  }
 0x3d7   :  { %v11771_v3 = vadd.f32 %v3995_v7, %v3942_v44  ;;  %5913 = vmatprep.mubr.bf16.mxu1 %v11773_v63  ;;  %v3946_v13 = vpop.f32.mrf.mxu0  ;;  %5886 = vmatpush1.bf16.msra.mxu1 %v9206_v31  ;;  %v9235_v21 = vld [vmem:[%s12995_s3 + $0x804] ss:$16 sps:$4 sm:$0xff]   ;;  %v9233_v31 = vld [vmem:[%s12995_s3 + $0x800] ss:$16 sps:$4 sm:$0xff]  }
 0x3d8   :  { %v3997_v5 = vpop.f32.mrf.mxu1  ;;  %5887 = vmatprep.subr.bf16.mxu1 %v9214_v35  ;;  %v9238_v44 = vld [vmem:[%s12995_s3 + $0xa04] ss:$16 sps:$4 sm:$0xff]   ;;  %v9236_v7 = vld [vmem:[%s12995_s3 + $0xa00] ss:$16 sps:$4 sm:$0xff]  }
 0x3d9   :  { %v11781_v46 = vadd.f32 %v3997_v5, %v3944_v32  ;;  %v3948_v39 = vpop.f32.mrf.mxu0  ;;  %5835 = vmatpush1.bf16.msra.mxu0 %v9209_v49  ;;  %v9241_v37 = vld [vmem:[%s12995_s3 + $0x9e4] ss:$16 sps:$4 sm:$0xff]   ;;  %v9239_v35 = vld [vmem:[%s12995_s3 + $0x9e0] ss:$16 sps:$4 sm:$0xff]  }
 0x3da   :  { %v3999_v10 = vpop.f32.mrf.mxu1  ;;  %5836 = vmatprep.subr.bf16.mxu0 %v9217_v19  ;;  %v9244_v32 = vld [vmem:[%s12995_s3 + $0xbe4] ss:$16 sps:$4 sm:$0xff]   ;;  %v9242_v5 = vld [vmem:[%s12995_s3 + $0xbe0] ss:$16 sps:$4 sm:$0xff]  }
 0x3db   :  { %v11792_v1 = vadd.f32 %v3999_v10, %v3946_v13  ;;  %5888 = vmatpush1.bf16.msra.mxu1 %v9212_v22  ;;  %v9247_v49 = vld [vmem:[%s12995_s3 + $0x9c4] ss:$16 sps:$4 sm:$0xff]   ;;  %v9245_v22 = vld [vmem:[%s12995_s3 + $0x9c0] ss:$16 sps:$4 sm:$0xff]  }
 0x3dc   :  { %v4001_v58 = vpop.f32.mrf.mxu1  ;;  %5889 = vmatprep.subr.bf16.mxu1 %v9220_v26  ;;  %v9250_v13 = vld [vmem:[%s12995_s3 + $0xbc4] ss:$16 sps:$4 sm:$0xff]   ;;  %v9248_v10 = vld [vmem:[%s12995_s3 + $0xbc0] ss:$16 sps:$4 sm:$0xff]  }
 0x3dd   :  { %v11797_v59 = vadd.f32 %v4001_v58, %v3948_v39  ;;  %5837 = vmatpush1.bf16.msra.mxu0 %v9215_v25  ;;  %v9253_v19 = vld [vmem:[%s12995_s3 + $0x9a4] ss:$16 sps:$4 sm:$0xff]   ;;  %v9251_v26 = vld [vmem:[%s12995_s3 + $0x9a0] ss:$16 sps:$4 sm:$0xff]  }
 0x3de   :  { %5838 = vmatprep.subr.bf16.mxu0 %v9223_v45  ;;  %v9256_v39 = vld [vmem:[%s12995_s3 + $0xba4] ss:$16 sps:$4 sm:$0xff]   ;;  %v9254_v58 = vld [vmem:[%s12995_s3 + $0xba0] ss:$16 sps:$4 sm:$0xff]  }
 0x3df   :  { %5890 = vmatpush1.bf16.msra.mxu1 %v9218_v53  ;;  %v9259_v25 = vld [vmem:[%s12995_s3 + $0x984] ss:$16 sps:$4 sm:$0xff]   ;;  %v9257_v45 = vld [vmem:[%s12995_s3 + $0x980] ss:$16 sps:$4 sm:$0xff]  }
 0x3e0   :  { %5891 = vmatprep.subr.bf16.mxu1 %v9226_v23  ;;  %v9262_v53 = vld [vmem:[%s12995_s3 + $0xb84] ss:$16 sps:$4 sm:$0xff]   ;;  %v9260_v23 = vld [vmem:[%s12995_s3 + $0xb80] ss:$16 sps:$4 sm:$0xff]  }
 0x3e1   :  { %5839 = vmatpush1.bf16.msra.mxu0 %v9221_v12  ;;  %v9265_v12 = vld [vmem:[%s12995_s3 + $0x964] ss:$16 sps:$4 sm:$0xff]  }
 0x3e2   :  { %5840 = vmatprep.subr.bf16.mxu0 %v9229_v4  ;;  %v9263_v4 = vld [vmem:[%s12995_s3 + $0x960] ss:$16 sps:$4 sm:$0xff]  }
 0x3e3   :  { %5892 = vmatpush1.bf16.msra.mxu1 %v9224_v20  ;;  %v9268_v20 = vld [vmem:[%s12995_s3 + $0xb64] ss:$16 sps:$4 sm:$0xff]  }
 0x3e4   :  { %5893 = vmatprep.subr.bf16.mxu1 %v9232_v11  ;;  %v9266_v11 = vld [vmem:[%s12995_s3 + $0xb60] ss:$16 sps:$4 sm:$0xff]  }
 0x3e5   :  { %5841 = vmatpush1.bf16.msra.mxu0 %v9227_v14  ;;  %v9271_v14 = vld [vmem:[%s12995_s3 + $0x944] ss:$16 sps:$4 sm:$0xff]  }
 0x3e6   :  { %5842 = vmatprep.subr.bf16.mxu0 %v9235_v21  ;;  %v9269_v21 = vld [vmem:[%s12995_s3 + $0x940] ss:$16 sps:$4 sm:$0xff]  }
 0x3e7   :  { %5894 = vmatpush1.bf16.msra.mxu1 %v9230_v60  ;;  %v9274_v60 = vld [vmem:[%s12995_s3 + $0xb44] ss:$16 sps:$4 sm:$0xff]  }
 0x3e8   :  { %5895 = vmatprep.subr.bf16.mxu1 %v9238_v44  ;;  %v9272_v44 = vld [vmem:[%s12995_s3 + $0xb40] ss:$16 sps:$4 sm:$0xff]  }
 0x3e9   :  { %5843 = vmatpush1.bf16.msra.mxu0 %v9233_v31  ;;  %v9277_v31 = vld [vmem:[%s12995_s3 + $0x924] ss:$16 sps:$4 sm:$0xff]  }
 0x3ea   :  { %5844 = vmatprep.subr.bf16.mxu0 %v9241_v37  ;;  %v4962_v37 = vld [vmem:[#allocation3 + $0xb0] sm:$0xfc] }
 0x3eb   :  { %5896 = vmatpush1.bf16.msra.mxu1 %v9236_v7  ;;  %v9280_v7 = vld [vmem:[%s12995_s3 + $0xb24] ss:$16 sps:$4 sm:$0xff]  }
 0x3ec   :  { %5897 = vmatprep.subr.bf16.mxu1 %v9244_v32  ;;  %v4966_v32 = vld [vmem:[#allocation3 + $0x88] sm:$0x3] }
 0x3ed   :  { %5845 = vmatpush2.bf16.msra.mxu0 %v9239_v35  ;;  %v4964_v35 = vld [vmem:[#allocation3 + $0x10] sm:$0xfc] }
 0x3ee   :  { %5846 = vmatprep.subr.bf16.mxu0 %v9247_v49  ;;  %v4971_v49 = vld [vmem:[#allocation3 + $0x50] sm:$0xfc] }
 0x3ef   :  { %5898 = vmatpush2.bf16.msra.mxu1 %v9242_v5  ;;  %v4968_v5 = vld [vmem:[#allocation3 + $0x18] sm:$0x3] }
 0x3f0   :  { %5899 = vmatprep.subr.bf16.mxu1 %v9250_v13  ;;  %v9275_v13 = vld [vmem:[%s12995_s3 + $0x920] ss:$16 sps:$4 sm:$0xff]  }
 0x3f1   :  { %5847 = vmatpush2.bf16.msra.mxu0 %v9245_v22  ;;  %v4975_v22 = vld [vmem:[#allocation3 + $0xb8] sm:$0x3] }
 0x3f2   :  { %5848 = vmatprep.subr.bf16.mxu0 %v9253_v19  ;;  %v9278_v19 = vld [vmem:[%s12995_s3 + $0xb20] ss:$16 sps:$4 sm:$0xff]  }
 0x3f3   :  { %5900 = vmatpush2.bf16.msra.mxu1 %v9248_v10  ;;  %v4973_v10 = vld [vmem:[#allocation3 + $0xa0] sm:$0xfc] }
 0x3f4   :  { %5901 = vmatprep.subr.bf16.mxu1 %v9256_v39  ;;  %v9283_v39 = vld [vmem:[%s12995_s3 + $0x904] ss:$16 sps:$4 sm:$0xff]  }
 0x3f5   :  { %5849 = vmatpush2.bf16.msra.mxu0 %v9251_v26  ;;  %v4977_v26 = vld [vmem:[#allocation3 + $0x8] sm:$0x3] }
 0x3f6   :  { %5850 = vmatprep.subr.bf16.mxu0 %v9259_v25  ;;  %v4995_v25 = vrot.slane %v4962_v37, 2  ;;  %v9289_v37 = vld [vmem:[%s12995_s3 + $0x8ec] ss:$16 sps:$4 sm:$0xff]  }
 0x3f7   :  { %5902 = vmatpush2.bf16.msra.mxu1 %v9254_v58  ;;  %v9286_v58 = vld [vmem:[%s12995_s3 + $0xb04] ss:$16 sps:$4 sm:$0xff]  }
 0x3f8   :  { %5903 = vmatprep.subr.bf16.mxu1 %v9262_v53  ;;  %v5007_v53 = vrot.slane %v4966_v32, 2  ;;  %v9392_v32 = vld [vmem:[#allocation3 + $0x68] sm:$0xff] }
 0x3f9   :  { %5851 = vmatpush2.bf16.msra.mxu0 %v9257_v45  ;;  %v5001_v45 = vrot.slane %v4964_v35, 2  ;;  %v5019_v35 = vrot.slane %v9392_v32, 2 }
 0x3fa   :  { %5852 = vmatprep.subr.bf16.mxu0 %v9265_v12  ;;  %v5018_v12 = vrot.slane %v4971_v49, 2 }
 0x3fb   :  { %5904 = vmatpush2.bf16.msra.mxu1 %v9260_v23  ;;  %v5011_v23 = vrot.slane %v4968_v5, 2 }
 0x3fc   :  { %5905 = vmatprep.subr.bf16.mxu1 %v9268_v20  ;;  %v5029_v20 = vrot.slane %v4975_v22, 2  ;;  %v9393_v22 = vld [vmem:[#allocation3 + $0x58] sm:$0xff] }
 0x3fd   :  { %5853 = vmatpush2.bf16.msra.mxu0 %v9263_v4  ;;  %v9281_v4 = vld [vmem:[%s12995_s3 + $0x900] ss:$16 sps:$4 sm:$0xff]  }
 0x3fe   :  { %5854 = vmatprep.subr.bf16.mxu0 %v9271_v14 }
 0x3ff   :  { %5906 = vmatpush2.bf16.msra.mxu1 %v9266_v11  ;;  %v9390_v11 = vld [vmem:[#allocation3 + $0x60] sm:$0xff] }
 0x400   :  { %5907 = vmatprep.subr.bf16.mxu1 %v9274_v60  ;;  %v4996_v14 = vrot.slane %v9390_v11, 2  ;;  %v5024_v60 = vrot.slane %v4973_v10, 2  ;;  %v5025_v10 = vrot.slane %v9393_v22, 2  ;;  %v5030_v11 = vsel %vm4994_vm2, %v5019_v35, %v5029_v20  ;;  %v9290_v20 = vld [vmem:[%s12995_s3 + $0xae8] ss:$16 sps:$4 sm:$0xff]  }
 0x401   :  { %5855 = vmatpush2.bf16.msra.mxu0 %v9269_v21  ;;  %v5033_v21 = vrot.slane %v4977_v26, 2  ;;  %v5020_v26 = vsel %vm4994_vm2, %v5018_v12, %v5019_v35  ;;  %v9296_v22 = vld [vmem:[%s12995_s3 + $0xac8] ss:$16 sps:$4 sm:$0xff]  }
 0x402   :  { %5856 = vmatprep.subr.bf16.mxu0 %v9277_v31  ;;  %v9391_v31 = vld [vmem:[#allocation3 + $0x40] sm:$0xff]  ;;  %v4997_v5 = vsel %vm4994_vm2, %v4995_v25, %v4996_v14  ;;  %v5008_v49 = vsel %vm4994_vm2, %v4996_v14, %v5007_v53  ;;  %v5026_v25 = vsel %vm4994_vm2, %v5024_v60, %v5025_v10 }
 0x403   :  { %5908 = vmatpush2.bf16.msra.mxu1 %v9272_v44  ;;  %v9284_v44 = vld [vmem:[%s12995_s3 + $0xb00] ss:$16 sps:$4 sm:$0xff]   ;;  %v5034_v53 = vsel %vm4994_vm2, %v5025_v10, %v5033_v21  ;;  %v9295_v21 = vld [vmem:[%s12995_s3 + $0x8cc] ss:$16 sps:$4 sm:$0xff]  }
 0x404   :  { %5909 = vmatprep.subr.bf16.mxu1 %v9280_v7  ;;  %v5002_v7 = vrot.slane %v9391_v31, 2  ;;  %v11951_v31 = vpack.c.bf16 %v5008_v49, %v4997_v5  ;;  %v9293_v49 = vld [vmem:[%s12995_s3 + $0x8c8] ss:$16 sps:$4 sm:$0xff]  }
 0x405   :  { %5857 = vmatpush2.bf16.msra.mxu0 %v9275_v13  ;;  %v9292_v13 = vld [vmem:[%s12995_s3 + $0xaec] ss:$16 sps:$4 sm:$0xff]  }
 0x406   :  { %5858 = vmatprep.subr.bf16.mxu0 %v9283_v39  ;;  %v5012_v39 = vsel %vm4994_vm2, %v5002_v7, %v5011_v23 }
 0x407   :  { %5910 = vmatpush2.bf16.msra.mxu1 %v9278_v19  ;;  %v5003_v19 = vsel %vm4994_vm2, %v5001_v45, %v5002_v7  ;;  %v9287_v45 = vld [vmem:[%s12995_s3 + $0x8e8] ss:$16 sps:$4 sm:$0xff]   ;;  %vm13763_vm2 = vnez %v13728_v43 }
 0x408   :  { %5911 = vmatprep.subr.bf16.mxu1 %v9286_v58  ;;  %v11958_v12 = vpack.c.bf16 %v5012_v39, %v5003_v19  ;;  %v9301_v19 = vld [vmem:[%s12995_s3 + $0x8ac] ss:$16 sps:$4 sm:$0xff]   ;;  %v13848_v43 = vld [vmem:[#allocation67_spill] sm:$0xff] }
 0x409   :  { %5859 = vmatpush2.bf16.msra.mxu0 %v9281_v4  ;;  %v11963_v4 = vpack.c.bf16 %v5030_v11, %v5020_v26  ;;  %v9304_v26 = vld [vmem:[%s12995_s3 + $0xaac] ss:$16 sps:$4 sm:$0xff]  }
 0x40a   :  { %5934 = vmatprep.subr.bf16.mxu0 %v9289_v37  ;;  %v9298_v37 = vld [vmem:[%s12995_s3 + $0xacc] ss:$16 sps:$4 sm:$0xff]  }
 0x40b   :  { %v4038_v58 = vpop.f32.mrf.mxu0  ;;  %5912 = vmatpush2.bf16.msra.mxu1 %v9284_v44  ;;  %v11969_v44 = vpack.c.bf16 %v5034_v53, %v5026_v25  ;;  %v9299_v53 = vld [vmem:[%s12995_s3 + $0x8a8] ss:$16 sps:$4 sm:$0xff]  }
 0x40c   :  { %5987 = vmatprep.subr.bf16.mxu1 %v9292_v13  ;;  %5861 = vmatmul.mubr.bf16.vlgmr.msra.gmra.mxu0 %v11951_v31 }
 0x40d   :  { %v4040_v60 = vpop.f32.mrf.mxu0  ;;  %5870 = vmatprep.mubr.bf16.mxu0 %v11963_v4  ;;  %5935 = vmatpush1.bf16.msra.mxu0 %v9287_v45  ;;  %v9302_v45 = vld [vmem:[%s12995_s3 + $0xaa8] ss:$16 sps:$4 sm:$0xff]  }
 0x40e   :  { %v4091_v14 = vpop.f32.mrf.mxu1  ;;  %5914 = vmatmul.mubr.bf16.vlgmr.msra.gmra.mxu1 %v11958_v12  ;;  %5936 = vmatprep.subr.bf16.mxu0 %v9295_v21 }
 0x40f   :  { %v11956_v23 = vadd.f32 %v4091_v14, %v4038_v58  ;;  %v4042_v35 = vpop.f32.mrf.mxu0  ;;  %5923 = vmatprep.mubr.bf16.mxu1 %v11969_v44  ;;  %5988 = vmatpush1.bf16.msra.mxu1 %v9290_v20 }
 0x410   :  { %v4093_v7 = vpop.f32.mrf.mxu1  ;;  %5989 = vmatprep.subr.bf16.mxu1 %v9298_v37 }
 0x411   :  { %v11976_v32 = vadd.f32 %v4093_v7, %v4040_v60  ;;  %v4044_v10 = vpop.f32.mrf.mxu0  ;;  %5937 = vmatpush1.bf16.msra.mxu0 %v9293_v49  ;;  %v9307_v60 = vld [vmem:[%s12995_s3 + $0x88c] ss:$16 sps:$4 sm:$0xff]   ;;  %v9305_v49 = vld [vmem:[%s12995_s3 + $0x888] ss:$16 sps:$4 sm:$0xff]  }
 0x412   :  { %v4095_v5 = vpop.f32.mrf.mxu1  ;;  %5938 = vmatprep.subr.bf16.mxu0 %v9301_v19  ;;  %v9310_v7 = vld [vmem:[%s12995_s3 + $0xa8c] ss:$16 sps:$4 sm:$0xff]  }
 0x413   :  { %v11982_v13 = vadd.f32 %v4095_v5, %v4042_v35  ;;  %v4048_v58 = vpop.f32.mrf.mxu0  ;;  %5990 = vmatpush1.bf16.msra.mxu1 %v9296_v22  ;;  %v9313_v19 = vld [vmem:[%s12995_s3 + $0x86c] ss:$16 sps:$4 sm:$0xff]  }
 0x414   :  { %v4097_v39 = vpop.f32.mrf.mxu1  ;;  %5871 = vmatmul.mubr.bf16.gmra.mxu0 %v11166_v34  ;;  %5991 = vmatprep.subr.bf16.mxu1 %v9304_v26 }
 0x415   :  { %v11993_v11 = vadd.f32 %v4097_v39, %v4044_v10  ;;  %v4050_v20 = vpop.f32.mrf.mxu0  ;;  %5966 = vmatprep.mubr.bf16.mxu0 %v11765_v40  ;;  %5939 = vmatpush1.bf16.msra.mxu0 %v9299_v53  ;;  %v9308_v10 = vld [vmem:[%s12995_s3 + $0xa88] ss:$16 sps:$4 sm:$0xff]   ;;  %v9316_v39 = vld [vmem:[%s12995_s3 + $0xa6c] ss:$16 sps:$4 sm:$0xff]  }
 0x416   :  { %v4101_v25 = vpop.f32.mrf.mxu1  ;;  %5924 = vmatmul.mubr.bf16.gmra.mxu1 %v11173_v15  ;;  %5940 = vmatprep.subr.bf16.mxu0 %v9307_v60  ;;  %v9319_v53 = vld [vmem:[%s12995_s3 + $0x84c] ss:$16 sps:$4 sm:$0xff]   ;;  %v9320_v60 = vld [vmem:[%s12995_s3 + $0xa48] ss:$16 sps:$4 sm:$0xff]  }
 0x417   :  { %v11998_v14 = vadd.f32 %v4101_v25, %v4048_v58  ;;  %v4052_v35 = vpop.f32.mrf.mxu0  ;;  %6019 = vmatprep.mubr.bf16.mxu1 %v11773_v63  ;;  %5992 = vmatpush1.bf16.msra.mxu1 %v9302_v45  ;;  %v9311_v58 = vld [vmem:[%s12995_s3 + $0x868] ss:$16 sps:$4 sm:$0xff]   ;;  %v9322_v45 = vld [vmem:[%s12995_s3 + $0xa4c] ss:$16 sps:$4 sm:$0xff]  }
 0x418   :  { %v4103_v21 = vpop.f32.mrf.mxu1  ;;  %5993 = vmatprep.subr.bf16.mxu1 %v9310_v7  ;;  %v9314_v25 = vld [vmem:[%s12995_s3 + $0xa68] ss:$16 sps:$4 sm:$0xff]   ;;  %v9328_v7 = vld [vmem:[%s12995_s3 + $0xa2c] ss:$16 sps:$4 sm:$0xff]  }
 0x419   :  { %v12012_v37 = vadd.f32 %v4103_v21, %v4050_v20  ;;  %v4054_v40 = vpop.f32.mrf.mxu0  ;;  %5941 = vmatpush1.bf16.msra.mxu0 %v9305_v49  ;;  %v9317_v20 = vld [vmem:[%s12995_s3 + $0x848] ss:$16 sps:$4 sm:$0xff]   ;;  %v9325_v21 = vld [vmem:[%s12995_s3 + $0x82c] ss:$16 sps:$4 sm:$0xff]  }
 0x41a   :  { %v4105_v5 = vpop.f32.mrf.mxu1  ;;  %5942 = vmatprep.subr.bf16.mxu0 %v9313_v19  ;;  %v9331_v49 = vld [vmem:[%s12995_s3 + $0x80c] ss:$16 sps:$4 sm:$0xff]   ;;  %v9332_v19 = vld [vmem:[%s12995_s3 + $0xa08] ss:$16 sps:$4 sm:$0xff]  }
 0x41b   :  { %v12018_v22 = vadd.f32 %v4105_v5, %v4052_v35  ;;  %5994 = vmatpush1.bf16.msra.mxu1 %v9308_v10  ;;  %v9323_v35 = vld [vmem:[%s12995_s3 + $0x828] ss:$16 sps:$4 sm:$0xff]   ;;  %v9334_v10 = vld [vmem:[%s12995_s3 + $0xa0c] ss:$16 sps:$4 sm:$0xff]  }
 0x41c   :  { %v4107_v63 = vpop.f32.mrf.mxu1  ;;  %5995 = vmatprep.subr.bf16.mxu1 %v9316_v39  ;;  %v9326_v5 = vld [vmem:[%s12995_s3 + $0xa28] ss:$16 sps:$4 sm:$0xff]   ;;  %v9340_v39 = vld [vmem:[%s12995_s3 + $0xbec] ss:$16 sps:$4 sm:$0xff]  }
 0x41d   :  { %v12029_v26 = vadd.f32 %v4107_v63, %v4054_v40  ;;  %5943 = vmatpush1.bf16.msra.mxu0 %v9311_v58  ;;  %v9329_v40 = vld [vmem:[%s12995_s3 + $0x808] ss:$16 sps:$4 sm:$0xff]   ;;  %v9337_v63 = vld [vmem:[%s12995_s3 + $0x9ec] ss:$16 sps:$4 sm:$0xff]  }
 0x41e   :  { %5944 = vmatprep.subr.bf16.mxu0 %v9319_v53  ;;  %v9335_v58 = vld [vmem:[%s12995_s3 + $0x9e8] ss:$16 sps:$4 sm:$0xff]   ;;  %v9343_v53 = vld [vmem:[%s12995_s3 + $0x9cc] ss:$16 sps:$4 sm:$0xff]  }
 0x41f   :  { %5996 = vmatpush1.bf16.msra.mxu1 %v9314_v25  ;;  %v9338_v25 = vld [vmem:[%s12995_s3 + $0xbe8] ss:$16 sps:$4 sm:$0xff]  }
 0x420   :  { %5997 = vmatprep.subr.bf16.mxu1 %v9322_v45  ;;  %v9346_v45 = vld [vmem:[%s12995_s3 + $0xbcc] ss:$16 sps:$4 sm:$0xff]  }
 0x421   :  { %5945 = vmatpush1.bf16.msra.mxu0 %v9317_v20  ;;  %v9341_v20 = vld [vmem:[%s12995_s3 + $0x9c8] ss:$16 sps:$4 sm:$0xff]  }
 0x422   :  { %5946 = vmatprep.subr.bf16.mxu0 %v9325_v21  ;;  %v9349_v21 = vld [vmem:[%s12995_s3 + $0x9ac] ss:$16 sps:$4 sm:$0xff]  }
 0x423   :  { %5998 = vmatpush1.bf16.msra.mxu1 %v9320_v60  ;;  %v9344_v60 = vld [vmem:[%s12995_s3 + $0xbc8] ss:$16 sps:$4 sm:$0xff]  }
 0x424   :  { %5999 = vmatprep.subr.bf16.mxu1 %v9328_v7  ;;  %v9352_v7 = vld [vmem:[%s12995_s3 + $0xbac] ss:$16 sps:$4 sm:$0xff]  }
 0x425   :  { %5947 = vmatpush1.bf16.msra.mxu0 %v9323_v35  ;;  %v9347_v35 = vld [vmem:[%s12995_s3 + $0x9a8] ss:$16 sps:$4 sm:$0xff]  }
 0x426   :  { %5948 = vmatprep.subr.bf16.mxu0 %v9331_v49  ;;  %v9355_v49 = vld [vmem:[%s12995_s3 + $0x98c] ss:$16 sps:$4 sm:$0xff]  }
 0x427   :  { %6000 = vmatpush1.bf16.msra.mxu1 %v9326_v5  ;;  %v9350_v5 = vld [vmem:[%s12995_s3 + $0xba8] ss:$16 sps:$4 sm:$0xff]  }
 0x428   :  { %6001 = vmatprep.subr.bf16.mxu1 %v9334_v10  ;;  %v9358_v10 = vld [vmem:[%s12995_s3 + $0xb8c] ss:$16 sps:$4 sm:$0xff]  }
 0x429   :  { %5949 = vmatpush1.bf16.msra.mxu0 %v9329_v40  ;;  %v9353_v40 = vld [vmem:[%s12995_s3 + $0x988] ss:$16 sps:$4 sm:$0xff]  }
 0x42a   :  { %5950 = vmatprep.subr.bf16.mxu0 %v9337_v63  ;;  %v9361_v63 = vld [vmem:[%s12995_s3 + $0x96c] ss:$16 sps:$4 sm:$0xff]  }
 0x42b   :  { %6002 = vmatpush1.bf16.msra.mxu1 %v9332_v19  ;;  %v9356_v19 = vld [vmem:[%s12995_s3 + $0xb88] ss:$16 sps:$4 sm:$0xff]  }
 0x42c   :  { %6003 = vmatprep.subr.bf16.mxu1 %v9340_v39  ;;  %v9364_v39 = vld [vmem:[%s12995_s3 + $0xb6c] ss:$16 sps:$4 sm:$0xff]  }
 0x42d   :  { %5951 = vmatpush2.bf16.msra.mxu0 %v9335_v58  ;;  %v9359_v58 = vld [vmem:[%s12995_s3 + $0x968] ss:$16 sps:$4 sm:$0xff]  }
 0x42e   :  { %5952 = vmatprep.subr.bf16.mxu0 %v9343_v53  ;;  %v9367_v53 = vld [vmem:[%s12995_s3 + $0x94c] ss:$16 sps:$4 sm:$0xff]  }
 0x42f   :  { %6004 = vmatpush2.bf16.msra.mxu1 %v9338_v25  ;;  %v9362_v25 = vld [vmem:[%s12995_s3 + $0xb68] ss:$16 sps:$4 sm:$0xff]  }
 0x430   :  { %6005 = vmatprep.subr.bf16.mxu1 %v9346_v45  ;;  %v9370_v45 = vld [vmem:[%s12995_s3 + $0xb4c] ss:$16 sps:$4 sm:$0xff]  }
 0x431   :  { %5953 = vmatpush2.bf16.msra.mxu0 %v9341_v20  ;;  %v9365_v20 = vld [vmem:[%s12995_s3 + $0x948] ss:$16 sps:$4 sm:$0xff]  }
 0x432   :  { %5954 = vmatprep.subr.bf16.mxu0 %v9349_v21  ;;  %v9373_v21 = vld [vmem:[%s12995_s3 + $0x92c] ss:$16 sps:$4 sm:$0xff]  }
 0x433   :  { %6006 = vmatpush2.bf16.msra.mxu1 %v9344_v60  ;;  %v9368_v60 = vld [vmem:[%s12995_s3 + $0xb48] ss:$16 sps:$4 sm:$0xff]  }
 0x434   :  { %6007 = vmatprep.subr.bf16.mxu1 %v9352_v7  ;;  %v9376_v7 = vld [vmem:[%s12995_s3 + $0xb2c] ss:$16 sps:$4 sm:$0xff]  }
 0x435   :  { %5955 = vmatpush2.bf16.msra.mxu0 %v9347_v35  ;;  %v9371_v35 = vld [vmem:[%s12995_s3 + $0x928] ss:$16 sps:$4 sm:$0xff]  }
 0x436   :  { %5956 = vmatprep.subr.bf16.mxu0 %v9355_v49  ;;  %v9379_v49 = vld [vmem:[%s12995_s3 + $0x90c] ss:$16 sps:$4 sm:$0xff]  }
 0x437   :  { %6008 = vmatpush2.bf16.msra.mxu1 %v9350_v5  ;;  %v9374_v5 = vld [vmem:[%s12995_s3 + $0xb28] ss:$16 sps:$4 sm:$0xff]  }
 0x438   :  { %6009 = vmatprep.subr.bf16.mxu1 %v9358_v10  ;;  %v9382_v10 = vld [vmem:[%s12995_s3 + $0xb0c] ss:$16 sps:$4 sm:$0xff]  }
 0x439   :  { %5957 = vmatpush2.bf16.msra.mxu0 %v9353_v40  ;;  %v9377_v40 = vld [vmem:[%s12995_s3 + $0x908] ss:$16 sps:$4 sm:$0xff]  }
 0x43a   :  { %5958 = vmatprep.subr.bf16.mxu0 %v9361_v63 }
 0x43b   :  { %6010 = vmatpush2.bf16.msra.mxu1 %v9356_v19  ;;  %v9380_v19 = vld [vmem:[%s12995_s3 + $0xb08] ss:$16 sps:$4 sm:$0xff]  }
 0x43c   :  { %6011 = vmatprep.subr.bf16.mxu1 %v9364_v39 }
 0x43d   :  { %5959 = vmatpush2.bf16.msra.mxu0 %v9359_v58 }
 0x43e   :  { %5960 = vmatprep.subr.bf16.mxu0 %v9367_v53  ;;  %v13786_v53 = vld [vmem:[#allocation36_spill] sm:$0xff] }
 0x43f   :  { %6012 = vmatpush2.bf16.msra.mxu1 %v9362_v25 }
 0x440   :  { %6013 = vmatprep.subr.bf16.mxu1 %v9370_v45  ;;  %v13788_v45 = vld [vmem:[#allocation37_spill] sm:$0xff] }
 0x441   :  { %5961 = vmatpush2.bf16.msra.mxu0 %v9365_v20  ;;  %v13790_v20 = vld [vmem:[#allocation38_spill] sm:$0xff] }
 0x442   :  { %5962 = vmatprep.subr.bf16.mxu0 %v9373_v21  ;;  %v13794_v21 = vld [vmem:[#allocation40_spill] sm:$0xff] }
 0x443   :  { %6014 = vmatpush2.bf16.msra.mxu1 %v9368_v60  ;;  %v13792_v60 = vld [vmem:[#allocation39_spill] sm:$0xff] }
 0x444   :  { %6015 = vmatprep.subr.bf16.mxu1 %v9376_v7  ;;  %v13796_v7 = vld [vmem:[#allocation41_spill] sm:$0xff] }
 0x445   :  { %5963 = vmatpush2.bf16.msra.mxu0 %v9371_v35  ;;  %v13798_v35 = vld [vmem:[#allocation42_spill] sm:$0xff] }
 0x446   :  { %5964 = vmatprep.subr.bf16.mxu0 %v9379_v49  ;;  %v13802_v49 = vld [vmem:[#allocation44_spill] sm:$0xff] }
 0x447   :  { %6016 = vmatpush2.bf16.msra.mxu1 %v9374_v5  ;;  %v13800_v5 = vld [vmem:[#allocation43_spill] sm:$0xff] }
 0x448   :  { %6017 = vmatprep.subr.bf16.mxu1 %v9382_v10  ;;  %v13804_v10 = vld [vmem:[#allocation45_spill] sm:$0xff] }
 0x449   :  { %5965 = vmatpush2.bf16.msra.mxu0 %v9377_v40  ;;  %v13806_v40 = vld [vmem:[#allocation46_spill] sm:$0xff] }
 0x44a   :  { %8247 = vmatprep.subr.msk.mxu0 %vm13762_vm11, %v13615_v27  ;;  %vm13791_vm11 = vnez %v13790_v20 }
 0x44b   :  { %6018 = vmatpush2.bf16.msra.mxu1 %v9380_v19  ;;  %v13808_v19 = vld [vmem:[#allocation47_spill] sm:$0xff] }
 0x44c   :  { %v4784_v63 = vpop.f32.mrf.mxu0  ;;  %8256 = vmatprep.subr.msk.mxu1 %vm13763_vm2, %v13615_v27  ;;  %5967 = vmatmul.mubr.bf16.vlgmr.msra.gmra.mxu0 %v11951_v31  ;;  %v13778_v31 = vld [vmem:[#allocation32_spill] sm:$0xff]  ;;  %vm13789_vm2 = vnez %v13788_v45 }
 0x44d   :  { %v4785_v39 = vadd.f32 %v4784_v63, %v11729_v28  ;;  %5976 = vmatprep.mubr.bf16.mxu0 %v11963_v4  ;;  %8248 = vmatpush1.msk.msra.mxu0 %vm13731_vm6, %v13615_v27  ;;  %v13767_v28 = vld [vmem:[#allocation24_spill] sm:$0xff]  ;;  %v13782_v4 = vld [vmem:[#allocation34_spill] sm:$0xff]  ;;  %vm13787_vm6 = vnez %v13786_v53 }
 0x44e   :  { %v4837_v58 = vpop.f32.mrf.mxu1  ;;  %6020 = vmatmul.mubr.bf16.vlgmr.msra.gmra.mxu1 %v11958_v12  ;;  %8249 = vmatprep.subr.msk.mxu0 %vm13735_vm5, %v13615_v27  ;;  %v13780_v12 = vld [vmem:[#allocation33_spill] sm:$0xff]  ;;  %vm13783_vm5 = vnez %v13782_v4  ;;  %v13810_v63 = vld [vmem:[#allocation48_spill] sm:$0xff] }
 0x44f   :  { %v12176_v25 = vadd.f32 %v4837_v58, %v4785_v39  ;;  %6029 = vmatprep.mubr.bf16.mxu1 %v11969_v44  ;;  %8257 = vmatpush1.msk.msra.mxu1 %vm13733_vm4, %v13615_v27  ;;  %v13784_v44 = vld [vmem:[#allocation35_spill] sm:$0xff]  ;;  %v13812_v39 = vld [vmem:[#allocation49_spill] sm:$0xff]  ;;  %v13814_v58 = vld [vmem:[#allocation50_spill] sm:$0xff] }
 0x450   :  { %8258 = vmatprep.subr.msk.mxu1 %vm13737_vm7, %v13615_v27  ;;  %8250 = vmatpush1.msk.msra.mxu0 %vm13739_vm9, %v13615_v27  ;;  %vm13779_vm9 = vnez %v13778_v31  ;;  %vm13781_vm7 = vnez %v13780_v12  ;;  %vm13785_vm4 = vnez %v13784_v44 }
 0x451   :  { %13764 = vst [vmem:[#allocation89_spill] sm:$0xff] %v12176_v25  ;;  %8259 = vmatpush1.msk.msra.mxu1 %vm13741_vm3, %v13615_v27  ;;  %8251 = vmatprep.subr.msk.mxu0 %vm13743_vm14, %v13615_v27  ;;  %vm13774_vm14 = vnez %v13619_v62  ;;  %vm13777_vm3 = vnez %v13622_v42 }
 0x452   :  { %8260 = vmatprep.subr.msk.mxu1 %vm13745_vm10, %v13615_v27  ;;  %8252 = vmatpush1.msk.msra.mxu0 %vm13747_vm8, %v13615_v27  ;;  %vm13772_vm8 = vnez %v13617_v61  ;;  %vm13773_vm10 = vnez %v13618_v54 }
 0x453   :  { %8261 = vmatpush1.msk.msra.mxu1 %vm13749_vm1, %v13615_v27  ;;  %8253 = vmatprep.subr.msk.mxu0 %vm13751_vm0, %v13615_v27 }
 0x454   :  { %5977 = vmatmul.mubr.bf16.gmra.mxu0 %v11166_v34  ;;  %8262 = vmatprep.subr.msk.mxu1 %vm13753_vm15, %v13615_v27  ;;  %v13765_v34 = vld [vmem:[#allocation23_spill] sm:$0xff]  ;;  %vm13768_vm15 = vnez %v13767_v28 }
 0x455   :  { %8254 = vmatpush1.msk.msra.mxu0 %vm13755_vm13, %v13615_v27  ;;  %8263 = vmatpush1.msk.msra.mxu1 %vm13757_vm12, %v13615_v27  ;;  %vm13766_vm0 = vnez %v13765_v34  ;;  %vm13769_vm13 = vcmask 261120   ;;  %vm13771_vm12 = vnez %v13616_v38 }
 0x456   :  { %6030 = vmatmul.mubr.bf16.gmra.mxu1 %v11173_v15  ;;  %6124 = vmatprep.mubr.f32.mxu0 %v10735_v29  ;;  %v6056_v15 = vld [vmem:[%s12996_s4] sm:$0x1]  ;;  %vm13770_vm1 = vmmov %vm13769_vm13 }
 0x457   :  { %6195 = vmatprep.mubr.f32.mxu1 %v10735_v29  ;;  %8571 = vmatprep.subr.msk.mxu0 %vm13766_vm0, %v13615_v27  ;;  %v13818_v29 = vld [vmem:[#allocation52_spill] sm:$0xff] }
 0x458   :  { %8606 = vmatprep.subr.msk.mxu1 %vm13768_vm15, %v13615_v27 }
 0x45c   :  { %8255 = vmatmul.mubr.msk.f32.vlgmr.msra.gmra.mxu0 %vm13769_vm13, %v6056_v15  ;;  %vm13775_vm13 = vnez %v13620_v47 }
 0x45d   :  { %8572 = vmatpush3.msk.msra.mxu0 %vm13771_vm12, %v13615_v27 }
 0x45e   :  { %8264 = vmatmul.mubr.msk.f32.vlgmr.msra.gmra.mxu1 %vm13770_vm1, %v6056_v15  ;;  %8573 = vmatprep.subr.msk.mxu0 %vm13773_vm10, %v13615_v27  ;;  %vm13776_vm1 = vnez %v13621_v51  ;;  %v13816_v15 = vld [vmem:[#allocation51_spill] sm:$0xff] }
 0x45f   :  { %8607 = vmatpush3.msk.msra.mxu1 %vm13772_vm8, %v13615_v27  ;;  %8574 = vmatpush3.msk.msra.mxu0 %vm13775_vm13, %v13615_v27 }
 0x460   :  { %8608 = vmatprep.subr.msk.mxu1 %vm13774_vm14, %v13615_v27  ;;  %8575 = vmatprep.subr.msk.mxu0 %vm13777_vm3, %v13615_v27 }
 0x461   :  { %8609 = vmatpush3.msk.msra.mxu1 %vm13776_vm1, %v13615_v27  ;;  %8576 = vmatpush3.msk.msra.mxu0 %vm13781_vm7, %v13615_v27  ;;  %vm13793_vm7 = vnez %v13792_v60 }
 0x462   :  { %8610 = vmatprep.subr.msk.mxu1 %vm13779_vm9, %v13615_v27  ;;  %8577 = vmatprep.subr.msk.mxu0 %vm13785_vm4, %v13615_v27  ;;  %vm13797_vm4 = vnez %v13796_v7 }
 0x463   :  { %8611 = vmatpush3.msk.msra.mxu1 %vm13783_vm5, %v13615_v27  ;;  %8578 = vmatpush3.msk.msra.mxu0 %vm13789_vm2, %v13615_v27  ;;  %vm13795_vm5 = vnez %v13794_v21  ;;  %vm13801_vm2 = vnez %v13800_v5 }
 0x464   :  { %8612 = vmatprep.subr.msk.mxu1 %vm13787_vm6, %v13615_v27  ;;  %8579 = vmatprep.subr.msk.mxu0 %vm13793_vm7, %v13615_v27  ;;  %vm13799_vm6 = vnez %v13798_v35  ;;  %vm13805_vm7 = vnez %v13804_v10 }
 0x465   :  { %8613 = vmatpush3.msk.msra.mxu1 %vm13791_vm11, %v13615_v27  ;;  %8580 = vmatpush3.msk.msra.mxu0 %vm13797_vm4, %v13615_v27  ;;  %vm13803_vm11 = vnez %v13802_v49  ;;  %vm13809_vm4 = vnez %v13808_v19 }
 0x466   :  { %8614 = vmatprep.subr.msk.mxu1 %vm13795_vm5, %v13615_v27  ;;  %8581 = vmatprep.subr.msk.mxu0 %vm13801_vm2, %v13615_v27  ;;  %vm13807_vm5 = vnez %v13806_v40  ;;  %vm13813_vm2 = vnez %v13812_v39 }
 0x467   :  { %8615 = vmatpush3.msk.msra.mxu1 %vm13799_vm6, %v13615_v27  ;;  %8582 = vmatpush3.msk.msra.mxu0 %vm13805_vm7, %v13615_v27  ;;  %vm13811_vm6 = vnez %v13810_v63  ;;  %vm13817_vm7 = vnez %v13816_v15 }
 0x468   :  { %8616 = vmatprep.subr.msk.mxu1 %vm13803_vm11, %v13615_v27  ;;  %8583 = vmatprep.subr.msk.mxu0 %vm13809_vm4, %v13615_v27  ;;  %vm13815_vm11 = vnez %v13814_v58  ;;  %vm13821_vm4 = vnez %v13820_v30 }
 0x469   :  { %8617 = vmatpush3.msk.msra.mxu1 %vm13807_vm5, %v13615_v27  ;;  %8584 = vmatpush3.msk.msra.mxu0 %vm13813_vm2, %v13615_v27  ;;  %vm13819_vm5 = vnez %v13818_v29  ;;  %vm13825_vm2 = vnez %v13824_v17 }
 0x46a   :  { %8618 = vmatprep.subr.msk.mxu1 %vm13811_vm6, %v13615_v27  ;;  %8585 = vmatprep.subr.msk.mxu0 %vm13817_vm7, %v13615_v27  ;;  %vm13823_vm6 = vnez %v13822_v6  ;;  %vm13829_vm7 = vnez %v13828_v55 }
 0x46b   :  { %8619 = vmatpush3.msk.msra.mxu1 %vm13815_vm11, %v13615_v27  ;;  %8586 = vmatpush3.msk.msra.mxu0 %vm13821_vm4, %v13615_v27  ;;  %vm13827_vm11 = vnez %v13826_v56  ;;  %vm13833_vm4 = vnez %v13832_v2 }
 0x46c   :  { %8620 = vmatprep.subr.msk.mxu1 %vm13819_vm5, %v13615_v27  ;;  %8587 = vmatprep.subr.msk.mxu0 %vm13825_vm2, %v13615_v27  ;;  %vm13831_vm5 = vnez %v13830_v57  ;;  %vm13837_vm2 = vnez %v13836_v36 }
 0x46d   :  { %8621 = vmatpush3.msk.msra.mxu1 %vm13823_vm6, %v13615_v27  ;;  %8588 = vmatpush3.msk.msra.mxu0 %vm13829_vm7, %v13615_v27  ;;  %vm13835_vm6 = vnez %v13834_v16  ;;  %vm13841_vm7 = vnez %v13840_v41  ;;  %v13852_v41 = vld [vmem:[#allocation69_spill] sm:$0xff] }
 0x46e   :  { %8622 = vmatprep.subr.msk.mxu1 %vm13827_vm11, %v13615_v27  ;;  %8589 = vmatprep.subr.msk.mxu0 %vm13833_vm4, %v13615_v27  ;;  %vm13839_vm11 = vnez %v13838_v33  ;;  %vm13845_vm4 = vnez %v13844_v8  ;;  %v13856_v8 = vld [vmem:[#allocation72_spill] sm:$0xff] }
 0x46f   :  { %8623 = vmatpush3.msk.msra.mxu1 %vm13831_vm5, %v13615_v27  ;;  %8590 = vmatpush3.msk.msra.mxu0 %vm13837_vm2, %v13615_v27  ;;  %vm13843_vm5 = vnez %v13842_v50  ;;  %vm13849_vm2 = vnez %v13848_v43  ;;  %v13854_v50 = vld [vmem:[#allocation70_spill] sm:$0xff]  ;;  %v13860_v43 = vld [vmem:[#allocation71_spill] sm:$0xff] }
 0x470   :  { %8624 = vmatprep.subr.msk.mxu1 %vm13835_vm6, %v13615_v27  ;;  %8591 = vmatprep.subr.msk.mxu0 %vm13841_vm7, %v13615_v27  ;;  %vm13847_vm6 = vnez %v13846_v9  ;;  %vm13853_vm7 = vnez %v13852_v41  ;;  %v13858_v9 = vld [vmem:[#allocation73_spill] sm:$0xff]  ;;  %v13864_v41 = vld [vmem:[#allocation75_spill] sm:$0xff] }
 0x471   :  { %8625 = vmatpush3.msk.msra.mxu1 %vm13839_vm11, %v13615_v27  ;;  %8592 = vmatpush3.msk.msra.mxu0 %vm13845_vm4, %v13615_v27  ;;  %vm13851_vm11 = vnez %v13850_v48  ;;  %vm13857_vm4 = vnez %v13856_v8  ;;  %v13862_v48 = vld [vmem:[#allocation74_spill] sm:$0xff]  ;;  %v13868_v8 = vld [vmem:[#allocation77_spill] sm:$0xff] }
 0x472   :  { %8626 = vmatprep.subr.msk.mxu1 %vm13843_vm5, %v13615_v27  ;;  %8593 = vmatprep.subr.msk.mxu0 %vm13849_vm2, %v13615_v27  ;;  %vm13855_vm5 = vnez %v13854_v50  ;;  %vm13861_vm2 = vnez %v13860_v43  ;;  %v13866_v50 = vld [vmem:[#allocation76_spill] sm:$0xff] }
 0x473   :  { %8627 = vmatpush3.msk.msra.mxu1 %vm13847_vm6, %v13615_v27  ;;  %8594 = vmatpush3.msk.msra.mxu0 %vm13853_vm7, %v13615_v27  ;;  %vm13859_vm6 = vnez %v13858_v9  ;;  %vm13865_vm7 = vnez %v13864_v41  ;;  %v13870_v9 = vld [vmem:[#allocation79_spill] sm:$0xff]  ;;  %v13872_v43 = vld [vmem:[#allocation80_spill] sm:$0xff]  ;;  %v13876_v41 = vld [vmem:[#allocation78_spill] sm:$0xff] }
 0x474   :  { %8628 = vmatprep.subr.msk.mxu1 %vm13851_vm11, %v13615_v27  ;;  %8595 = vmatprep.subr.msk.mxu0 %vm13857_vm4, %v13615_v27  ;;  %vm13863_vm11 = vnez %v13862_v48  ;;  %vm13869_vm4 = vnez %v13868_v8  ;;  %v13874_v48 = vld [vmem:[#allocation81_spill] sm:$0xff]  ;;  %v13880_v8 = vld [vmem:[#allocation84_spill] sm:$0xff] }
 0x475   :  { %8629 = vmatpush3.msk.msra.mxu1 %vm13855_vm5, %v13615_v27  ;;  %8596 = vmatpush3.msk.msra.mxu0 %vm13861_vm2, %v13615_v27  ;;  %vm13867_vm5 = vnez %v13866_v50  ;;  %vm13873_vm2 = vnez %v13872_v43  ;;  %v13878_v50 = vld [vmem:[#allocation82_spill] sm:$0xff]  ;;  %v13884_v43 = vld [vmem:[#allocation83_spill] sm:$0xff] }
 0x476   :  { %8630 = vmatprep.subr.msk.mxu1 %vm13859_vm6, %v13615_v27  ;;  %8597 = vmatprep.subr.msk.mxu0 %vm13865_vm7, %v13615_v27  ;;  %vm13871_vm6 = vnez %v13870_v9  ;;  %vm13877_vm7 = vnez %v13876_v41  ;;  %v13882_v9 = vld [vmem:[#allocation85_spill] sm:$0xff] }
 0x477   :  { %8631 = vmatpush3.msk.msra.mxu1 %vm13863_vm11, %v13615_v27  ;;  %8598 = vmatpush3.msk.msra.mxu0 %vm13869_vm4, %v13615_v27  ;;  %vm13875_vm11 = vnez %v13874_v48  ;;  %vm13881_vm4 = vnez %v13880_v8  ;;  %v13886_v48 = vld [vmem:[#allocation86_spill] sm:$0xff]  ;;  %v4786_v8 = vpop.f32.mrf.mxu0 }
 0x478   :  { %8632 = vmatprep.subr.msk.mxu1 %vm13867_vm5, %v13615_v27  ;;  %8599 = vmatprep.subr.msk.mxu0 %vm13873_vm2, %v13615_v27  ;;  %vm13879_vm5 = vnez %v13878_v50  ;;  %vm13885_vm2 = vnez %v13884_v43  ;;  %v4839_v50 = vpop.f32.mrf.mxu1 }
 0x479   :  { %8633 = vmatpush3.msk.msra.mxu1 %vm13871_vm6, %v13615_v27  ;;  %8600 = vmatpush3.msk.msra.mxu0 %vm13877_vm7, %v13615_v27  ;;  %vm13883_vm6 = vnez %v13882_v9  ;;  %v4788_v9 = vpop.f32.mrf.mxu0 }
 0x47a   :  { %8634 = vmatprep.subr.msk.mxu1 %vm13875_vm11, %v13615_v27  ;;  %8601 = vmatprep.subr.msk.mxu0 %vm13881_vm4, %v13615_v27  ;;  %vm13887_vm11 = vnez %v13886_v48  ;;  %v4841_v41 = vpop.f32.mrf.mxu1  ;;  %v4789_v25 = vadd.f32 %v4788_v9, %v11748_v18 }
 0x47b   :  { %8635 = vmatpush3.msk.msra.mxu1 %vm13879_vm5, %v13615_v27  ;;  %8602 = vmatpush3.msk.msra.mxu0 %vm13885_vm2, %v13615_v27  ;;  %v4790_v33 = vpop.f32.mrf.mxu0 }
 0x47c   :  { %8636 = vmatprep.subr.msk.mxu1 %vm13883_vm6, %v13615_v27  ;;  %8641 = vmatprep.subr.msk.mxu0 %vm13766_vm0, %v13615_v27  ;;  %v4843_v36 = vpop.f32.mrf.mxu1 }
 0x47d   :  { %8637 = vmatpush3.msk.msra.mxu1 %vm13887_vm11, %v13615_v27  ;;  %v4794_v43 = vpop.f32.mrf.mxu0 }
 0x47e   :  { %8676 = vmatprep.subr.msk.mxu1 %vm13768_vm15, %v13615_v27  ;;  %v4847_v16 = vpop.f32.mrf.mxu1 }
 0x47f   :  { %v4796_v2 = vpop.f32.mrf.mxu0 }
 0x480   :  { %v4849_v57 = vpop.f32.mrf.mxu1 }
 0x481   :  { %v4798_v48 = vpop.f32.mrf.mxu0 }
 0x482   :  { %v12431_v55 = vpop.f32.mrf.mxu1 }
 0x483   :  { %v4800_v56 = vpop.f32.mrf.mxu0 }
 0x484   :  { %v12433_v34 = vpop.f32.mrf.mxu1 }
 0x48c   :  { %v4890_v17 = vpop.f32.mrf.mxu0 }
 0x48e   :  { %v12435_v6 = vpop.f32.mrf.mxu1  ;;  %v4892_v28 = vpop.f32.mrf.mxu0 }
 0x490   :  { %v12437_v30 = vpop.f32.mrf.mxu1  ;;  %v4894_v29 = vpop.f32.mrf.mxu0 }
 0x492   :  { %v12439_v15 = vpop.f32.mrf.mxu1  ;;  %v4896_v58 = vpop.f32.mrf.mxu0 }
 0x494   :  { %v12441_v39 = vpop.f32.mrf.mxu1  ;;  %v4900_v63 = vpop.f32.mrf.mxu0 }
 0x496   :  { %v12443_v19 = vpop.f32.mrf.mxu1  ;;  %v4902_v40 = vpop.f32.mrf.mxu0 }
 0x497   :  { %13888 = vst [vmem:[#allocation23_spill] sm:$0xff] %v12443_v19 }
 0x498   :  { %v12445_v10 = vpop.f32.mrf.mxu1  ;;  %v4904_v49 = vpop.f32.mrf.mxu0 }
 0x499   :  { %13889 = vst [vmem:[#allocation24_spill] sm:$0xff] %v12445_v10 }
 0x49a   :  { %v12447_v5 = vpop.f32.mrf.mxu1  ;;  %v4906_v35 = vpop.f32.mrf.mxu0 }
 0x49b   :  { %13890 = vst [vmem:[#allocation90_spill] sm:$0xff] %v12447_v5 }
 0x49c   :  { %v12449_v7 = vpop.f32.mrf.mxu1 }
 0x49d   :  { %13891 = vst [vmem:[#allocation91_spill] sm:$0xff] %v12449_v7  ;;  %v4795_v7 = vadd.f32 %v4794_v43, %v11771_v3  ;;  %v4895_v43 = vadd.f32 %v4894_v29, %v11982_v13 }
 0x49e   :  { %v13902_v13 = vld [vmem:[#allocation23_spill] sm:$0xff] }
 0x4cc   :  { %v5862_v21 = vpop.f32.mrf.mxu0 }
 0x4ce   :  { %v5915_v60 = vpop.f32.mrf.mxu1  ;;  %v12451_v20 = vpop.f32.mrf.mxu0 }
 0x4cf   :  { %13892 = vst [vmem:[#allocation92_spill] sm:$0xff] %v12451_v20 }
 0x4d0   :  { %v12453_v45 = vpop.f32.mrf.mxu1  ;;  %v5866_v53 = vpop.f32.mrf.mxu0 }
 0x4d1   :  { %13893 = vst [vmem:[#allocation93_spill] sm:$0xff] %v12453_v45 }
 0x4d2   :  { %v5919_v44 = vpop.f32.mrf.mxu1  ;;  %v12455_v4 = vpop.f32.mrf.mxu0 }
 0x4d3   :  { %13894 = vst [vmem:[#allocation94_spill] sm:$0xff] %v12455_v4 }
 0x4d4   :  { %v12457_v12 = vpop.f32.mrf.mxu1  ;;  %v5872_v31 = vpop.f32.mrf.mxu0 }
 0x4d5   :  { %13895 = vst [vmem:[#allocation95_spill] sm:$0xff] %v12457_v12  ;;  %v4787_v12 = vadd.f32 %v4786_v8, %v11737_v52  ;;  %v4891_v8 = vadd.f32 %v4890_v17, %v11956_v23  ;;  %v4903_v17 = vadd.f32 %v4902_v40, %v12012_v37 }
 0x4d6   :  { %v5925_v42 = vpop.f32.mrf.mxu1  ;;  %v12459_v51 = vpop.f32.mrf.mxu0 }
 0x4d7   :  { %13896 = vst [vmem:[#allocation96_spill] sm:$0xff] %v12459_v51  ;;  %v4791_v51 = vadd.f32 %v4790_v33, %v11757_v24  ;;  %v12477_v19 = vadd.f32 %v4839_v50, %v4787_v12  ;;  %v4893_v33 = vadd.f32 %v4892_v28, %v11976_v32  ;;  %v4901_v50 = vadd.f32 %v4900_v63, %v11998_v14 }
 0x4d8   :  { %v12461_v47 = vpop.f32.mrf.mxu1  ;;  %v5876_v62 = vpop.f32.mrf.mxu0  ;;  %v5926_v23 = vadd.f32 %v5925_v42, %v5872_v31  ;;  %v13907_v42 = vld [vmem:[#allocation92_spill] sm:$0xff] }
 0x4d9   :  { %13897 = vst [vmem:[#allocation97_spill] sm:$0xff] %v12461_v47  ;;  %v12481_v9 = vadd.f32 %v4843_v36, %v4791_v51  ;;  %v4905_v51 = vadd.f32 %v4904_v49, %v12018_v22  ;;  %v4907_v36 = vadd.f32 %v4906_v35, %v12029_v26  ;;  %v13903_v26 = vld [vmem:[#allocation24_spill] sm:$0xff] }
 0x4da   :  { %v5929_v54 = vpop.f32.mrf.mxu1  ;;  %v12463_v61 = vpop.f32.mrf.mxu0 }
 0x4db   :  { %13898 = vst [vmem:[#allocation98_spill] sm:$0xff] %v12463_v61  ;;  %v4797_v61 = vadd.f32 %v4796_v2, %v11781_v46  ;;  %v4848_v2 = vadd.f32 %v4847_v16, %v4795_v7  ;;  %v4944_v16 = vadd.f32 %v12435_v6, %v4891_v8  ;;  %v13904_v6 = vld [vmem:[#allocation90_spill] sm:$0xff] }
 0x4dc   :  { %v12465_v38 = vpop.f32.mrf.mxu1  ;;  %v4958_v12 = vadd.f32 %v13904_v6, %v4905_v51  ;;  %v13909_v7 = vld [vmem:[#allocation94_spill] sm:$0xff]  ;;  %v13910_v35 = vld [vmem:[#allocation95_spill] sm:$0xff] }
 0x4dd   :  { %13899 = vst [vmem:[#allocation99_spill] sm:$0xff] %v12465_v38  ;;  %v4799_v38 = vadd.f32 %v4798_v48, %v11792_v1  ;;  %v12485_v24 = vadd.f32 %v4849_v57, %v4797_v61  ;;  %v4897_v48 = vadd.f32 %v4896_v58, %v11993_v11  ;;  %v5916_v61 = vadd.f32 %v5915_v60, %v5862_v21  ;;  %v13906_v60 = vld [vmem:[#allocation89_spill] sm:$0xff] }
 0x4de   :  { %v5920_v57 = vadd.f32 %v5919_v44, %v5866_v53  ;;  %v4946_v1 = vadd.f32 %v12437_v30, %v4893_v33  ;;  %v4954_v11 = vadd.f32 %v13902_v13, %v4901_v50  ;;  %v13905_v44 = vld [vmem:[#allocation91_spill] sm:$0xff]  ;;  %v5922_v49 = vadd.f32 %v13910_v35, %v13909_v7 }
 0x4df   :  { %v4950_v32 = vadd.f32 %v12441_v39, %v4897_v48  ;;  %v4960_v53 = vadd.f32 %v13905_v44, %v4907_v36  ;;  %v6040_v21 = vadd.f32 %v5916_v61, %v13906_v60  ;;  %v13913_v39 = vld [vmem:[#allocation88_spill] sm:$0xff] }
 0x4e4   :  { %v13915_v28 = vld [vmem:[#allocation99_spill] sm:$0xff] }
 0x50c   :  { %v5968_v27 = vpop.f32.mrf.mxu0 }
 0x50e   :  { %v6021_v0 = vpop.f32.mrf.mxu1  ;;  %v12467_v45 = vpop.f32.mrf.mxu0 }
 0x50f   :  { %13900 = vst [vmem:[#allocation100_spill] sm:$0xff] %v12467_v45  ;;  %v4842_v45 = vadd.f32 %v4841_v41, %v4789_v25  ;;  %v6022_v14 = vadd.f32 %v6021_v0, %v5968_v27  ;;  %v4956_v25 = vadd.f32 %v13903_v26, %v4903_v17  ;;  %v6048_v27 = vadd.f32 %v5926_v23, %v4848_v2 }
 0x510   :  { %v12469_v20 = vpop.f32.mrf.mxu1  ;;  %v5972_v4 = vpop.f32.mrf.mxu0 }
 0x511   :  { %13901 = vst [vmem:[#allocation101_spill] sm:$0xff] %v12469_v20  ;;  %v4801_v20 = vadd.f32 %v4800_v56, %v11797_v59  ;;  %v4852_v56 = vadd.f32 %v12431_v55, %v4799_v38  ;;  %v4948_v59 = vadd.f32 %v12439_v15, %v4895_v43  ;;  %v5930_v38 = vadd.f32 %v5929_v54, %v5876_v62  ;;  %v13908_v54 = vld [vmem:[#allocation93_spill] sm:$0xff] }
 0x512   :  { %v6025_v47 = vpop.f32.mrf.mxu1  ;;  %v5974_v5 = vpop.f32.mrf.mxu0  ;;  %v5918_v62 = vadd.f32 %v13908_v54, %v13907_v42  ;;  %v6044_v31 = vadd.f32 %v5920_v57, %v4842_v45 }
 0x513   :  { %v4854_v29 = vadd.f32 %v12433_v34, %v4801_v20  ;;  %v6026_v37 = vadd.f32 %v6025_v47, %v5972_v4  ;;  %v13911_v47 = vld [vmem:[#allocation96_spill] sm:$0xff]  ;;  %v13912_v4 = vld [vmem:[#allocation97_spill] sm:$0xff]  ;;  %v6052_v63 = vadd.f32 %v5930_v38, %v4852_v56  ;;  %v13914_v34 = vld [vmem:[#allocation98_spill] sm:$0xff] }
 0x514   :  { %v6027_v10 = vpop.f32.mrf.mxu1  ;;  %v5978_v52 = vpop.f32.mrf.mxu0  ;;  %v5928_v40 = vadd.f32 %v13912_v4, %v13911_v47  ;;  %v5932_v8 = vadd.f32 %v13915_v28, %v13914_v34 }
 0x515   :  { %v6046_v33 = vadd.f32 %v6026_v37, %v4948_v59  ;;  %v6028_v51 = vadd.f32 %v6027_v10, %v5974_v5 }
 0x516   :  { %v6031_v18 = vpop.f32.mrf.mxu1  ;;  %v5980_v3 = vpop.f32.mrf.mxu0  ;;  %v13916_v45 = vld [vmem:[#allocation100_spill] sm:$0xff]  ;;  %v6049_v6 = vadd.f32 %v5928_v40, %v12485_v24  ;;  %v6053_v44 = vadd.f32 %v5932_v8, %v4854_v29 }
 0x517   :  { %v6032_v20 = vadd.f32 %v6031_v18, %v5978_v52  ;;  %v6042_v52 = vadd.f32 %v6022_v14, %v4944_v16  ;;  %v6041_v16 = vadd.f32 %v5918_v62, %v12477_v19 }
 0x518   :  { %v6033_v41 = vpop.f32.mrf.mxu1  ;;  %v5982_v46 = vpop.f32.mrf.mxu0  ;;  %v13917_v18 = vld [vmem:[#allocation101_spill] sm:$0xff] }
 0x519   :  { %v6024_v48 = vadd.f32 %v13917_v18, %v13916_v45  ;;  %v6050_v50 = vadd.f32 %v6032_v20, %v4954_v11  ;;  %v6034_v59 = vadd.f32 %v6033_v41, %v5980_v3  ;;  %v6045_v11 = vadd.f32 %v5922_v49, %v12481_v9 }
 0x51a   :  { %v6035_v55 = vpop.f32.mrf.mxu1  ;;  %v5984_v22 = vpop.f32.mrf.mxu0  ;;  %v6047_v41 = vadd.f32 %v6028_v51, %v4950_v32 }
 0x51b   :  { %v6036_v57 = vadd.f32 %v6035_v55, %v5982_v46  ;;  %v6043_v3 = vadd.f32 %v6024_v48, %v4946_v1  ;;  %v6051_v9 = vadd.f32 %v6034_v59, %v4956_v25 }
 0x51c   :  { %v6037_v30 = vpop.f32.mrf.mxu1  ;;  %v6126_v0 = vpop.f32.mrf.mxu0 }
 0x51d   :  { %v6205_v58 = vrot.slane %v6126_v0, %v13913_v39  ;;  %v6038_v26 = vadd.f32 %v6037_v30, %v5984_v22  ;;  %v6054_v60 = vadd.f32 %v6036_v57, %v4958_v12 }
 0x51e   :  { %v6197_v15 = vpop.f32.mrf.mxu1  ;;  %v6128_v46 = vpop.f32.mrf.mxu0 }
 0x51f   :  { %v6213_v43 = vrot.slane %v6197_v15, %v13913_v39  ;;  %v6218_v17 = vadd.f32 %v6205_v58, %v6040_v21  ;;  %v6222_v2 = vadd.f32 %v6205_v58, %v6044_v31  ;;  %v6226_v36 = vadd.f32 %v6205_v58, %v6048_v27 }
 0x520   :  { %v6230_v5 = vadd.f32 %v6205_v58, %v6052_v63  ;;  %v6199_v55 = vpop.f32.mrf.mxu1  ;;  %v6209_v30 = vrot.slane %v6128_v46, %v13913_v39  ;;  %v6055_v54 = vadd.f32 %v6038_v26, %v4960_v53 }
 0x521   :  { %v6220_v61 = vadd.f32 %v6213_v43, %v6042_v52  ;;  %v6224_v56 = vadd.f32 %v6213_v43, %v6046_v33  ;;  %v12515_v23 = vmax.f32 %v6218_v17, 0.0  ;;  %v12517_v38 = vmax.f32 %v6222_v2, 0.0 }
 0x522   :  { %v6228_v13 = vadd.f32 %v6213_v43, %v6050_v50  ;;  %v12528_v20 = vmax.f32 %v6226_v36, 0.0  ;;  %v6217_v42 = vrot.slane %v6199_v55, %v13913_v39  ;;  %v12537_v24 = vmax.f32 %v6230_v5, 0.0 }
 0x523   :  { %v12520_v14 = vmax.f32 %v6220_v61, 0.0  ;;  %v12522_v37 = vmax.f32 %v6224_v56, 0.0  ;;  %v6250_v10 = vadd.f32 %v12517_v38, %v12515_v23  ;;  %v6232_v29 = vadd.f32 %v6213_v43, %v6054_v60 }
 0x524   :  { %v12532_v21 = vmax.f32 %v6228_v13, 0.0  ;;  %v6219_v31 = vadd.f32 %v6209_v30, %v6041_v16  ;;  %v6223_v7 = vadd.f32 %v6209_v30, %v6045_v11  ;;  %v6227_v1 = vadd.f32 %v6209_v30, %v6049_v6 }
 0x525   :  { %v6268_v19 = vadd.f32 %v12522_v37, %v12520_v14  ;;  %v6251_v22 = vadd.f32 %v6250_v10, %v12528_v20  ;;  %v6231_v32 = vadd.f32 %v6209_v30, %v6053_v44  ;;  %v6221_v12 = vadd.f32 %v6217_v42, %v6043_v3 }
 0x526   :  { %v6225_v35 = vadd.f32 %v6217_v42, %v6047_v41  ;;  %v6229_v49 = vadd.f32 %v6217_v42, %v6051_v9  ;;  %v6233_v25 = vadd.f32 %v6217_v42, %v6055_v54  ;;  %v12540_v0 = vmax.f32 %v6219_v31, 0.0 }
 0x527   :  { %v6269_v62 = vadd.f32 %v6268_v19, %v12532_v21  ;;  %v12542_v27 = vmax.f32 %v6223_v7, 0.0  ;;  %v12544_v47 = vmax.f32 %v6227_v1, 0.0  ;;  %v6252_v53 = vadd.f32 %v6251_v22, %v12537_v24 }
 0x528   :  { %v12547_v4 = vmax.f32 %v6232_v29, 0.0  ;;  %v12549_v40 = vmax.f32 %v6221_v12, 0.0  ;;  %v12551_v63 = vmax.f32 %v6225_v35, 0.0  ;;  %v12553_v58 = vmax.f32 %v6229_v49, 0.0 }
 0x529   :  { %v12555_v15 = vmax.f32 %v6231_v32, 0.0  ;;  %v6259_v34 = vadd.f32 %v12542_v27, %v12540_v0  ;;  %v6428_v28 = vmul.f32 %v12540_v0, %v12540_v0  ;;  %v6432_v8 = vmul.f32 %v12542_v27, %v12542_v27 }
 0x52a   :  { %v12563_v52 = vmax.f32 %v6233_v25, 0.0  ;;  %v6277_v33 = vadd.f32 %v12551_v63, %v12549_v40  ;;  %v6430_v43 = vmul.f32 %v12549_v40, %v12549_v40  ;;  %v6434_v45 = vmul.f32 %v12551_v63, %v12551_v63 }
 0x52b   :  { %v6436_v18 = vmul.f32 %v12544_v47, %v12544_v47  ;;  %v6260_v48 = vadd.f32 %v6259_v34, %v12544_v47  ;;  %v6253_v50 = vrot.slane %v6252_v53, 4  ;;  %v6270_v17 = vadd.f32 %v6269_v62, %v12547_v4 }
 0x52c   :  { %v6438_v2 = vmul.f32 %v12553_v58, %v12553_v58  ;;  %v6278_v51 = vadd.f32 %v6277_v33, %v12553_v58  ;;  %v6452_v36 = vadd.f32 %v6432_v8, %v6428_v28  ;;  %v6470_v61 = vadd.f32 %v6434_v45, %v6430_v43 }
 0x52d   :  { %v6261_v56 = vadd.f32 %v6260_v48, %v12555_v15  ;;  %v6254_v57 = vadd.f32 %v6253_v50, %v6252_v53  ;;  %v6271_v13 = vrot.slane %v6270_v17, 4  ;;  %v6440_v16 = vmul.f32 %v12555_v15, %v12555_v15 }
 0x52e   :  { %v6279_v59 = vadd.f32 %v6278_v51, %v12563_v52  ;;  %v6453_v11 = vadd.f32 %v6452_v36, %v6436_v18  ;;  %v6442_v26 = vmul.f32 %v12563_v52, %v12563_v52  ;;  %v6471_v5 = vadd.f32 %v6470_v61, %v6438_v2 }
 0x52f   :  { %v6262_v10 = vrot.slane %v6261_v56, 4  ;;  %v6255_v46 = vrot.slane %v6254_v57, 2  ;;  %v6272_v55 = vadd.f32 %v6271_v13, %v6270_v17  ;;  %v6427_v7 = vmul.f32 %v12515_v23, %v12515_v23 }
 0x530   :  { %v6280_v6 = vrot.slane %v6279_v59, 4  ;;  %v6454_v44 = vadd.f32 %v6453_v11, %v6440_v16  ;;  %v6472_v19 = vadd.f32 %v6471_v5, %v6442_v26  ;;  %v6431_v25 = vmul.f32 %v12517_v38, %v12517_v38  ;;  %v13983_v26 = vld [vmem:[#allocation61_spill] sm:$0xff] }
 0x531   :  { %v6263_v3 = vadd.f32 %v6262_v10, %v6261_v56  ;;  %v6273_v41 = vrot.slane %v6272_v55, 2  ;;  %v6256_v9 = vadd.f32 %v6255_v46, %v6254_v57  ;;  %v6429_v53 = vmul.f32 %v12520_v14, %v12520_v14  ;;  %v13985_v10 = vld [vmem:[#allocation62_spill] sm:$0xff] }
 0x532   :  { %v6281_v60 = vadd.f32 %v6280_v6, %v6279_v59  ;;  %v6455_v22 = vrot.slane %v6454_v44, 4  ;;  %v6473_v30 = vrot.slane %v6472_v19, 4  ;;  %v6433_v8 = vmul.f32 %v12522_v37, %v12522_v37 }
 0x533   :  { %v6264_v42 = vrot.slane %v6263_v3, 2  ;;  %v6274_v54 = vadd.f32 %v6273_v41, %v6272_v55  ;;  %v6257_v12 = vrot.slane %v6256_v9, 1  ;;  %v6443_v51 = vadd.f32 %v6431_v25, %v6427_v7  ;;  %v13939_v7 = vld [vmem:[#allocation39_spill] sm:$0xff]  ;;  %v13949_v25 = vld [vmem:[#allocation44_spill] sm:$0xff] }
 0x534   :  { %v6282_v29 = vrot.slane %v6281_v60, 2  ;;  %v6456_v62 = vadd.f32 %v6455_v22, %v6454_v44  ;;  %v6474_v31 = vadd.f32 %v6473_v30, %v6472_v19  ;;  %v6461_v61 = vadd.f32 %v6433_v8, %v6429_v53  ;;  %v13929_v22 = vld [vmem:[#allocation34_spill] sm:$0xff]  ;;  %v13931_v30 = vld [vmem:[#allocation35_spill] sm:$0xff]  ;;  %v13951_v53 = vld [vmem:[#allocation45_spill] sm:$0xff] }
 0x535   :  { %v6265_v1 = vadd.f32 %v6264_v42, %v6263_v3  ;;  %v6275_v28 = vrot.slane %v6274_v54, 1  ;;  %v6258_v50 = vadd.f32 %v6257_v12, %v6256_v9  ;;  %v6435_v13 = vmul.f32 %v12528_v20, %v12528_v20  ;;  %v13927_v9 = vld [vmem:[#allocation33_spill] sm:$0xff]  ;;  %v13945_v12 = vld [vmem:[#allocation42_spill] sm:$0xff]  ;;  %v13955_v8 = vld [vmem:[#allocation47_spill] sm:$0xff] }
 0x536   :  { %v6283_v32 = vadd.f32 %v6282_v29, %v6281_v60  ;;  %v6457_v35 = vrot.slane %v6456_v62, 2  ;;  %v6475_v49 = vrot.slane %v6474_v31, 2  ;;  %v13918_v16 = vmov 1.0   ;;  %v13935_v29 = vld [vmem:[#allocation37_spill] sm:$0xff]  ;;  %v13989_v55 = vld [vmem:[#allocation64_spill] sm:$0xff]  ;;  %v13995_v19 = vld [vmem:[#allocation67_spill] sm:$0xff] }
 0x537   :  { %v6266_v34 = vrot.slane %v6265_v1, 1  ;;  %v6276_v36 = vadd.f32 %v6275_v28, %v6274_v54  ;;  %v6437_v11 = vmul.f32 %v12532_v21, %v12532_v21  ;;  %v6444_v46 = vadd.f32 %v6443_v51, %v6435_v13  ;;  %v13933_v54 = vld [vmem:[#allocation36_spill] sm:$0xff]  ;;  %v13953_v28 = vld [vmem:[#allocation46_spill] sm:$0xff]  ;;  %v13979_v13 = vld [vmem:[#allocation59_spill] sm:$0xff] }
 0x538   :  { %v6284_v33 = vrot.slane %v6283_v32, 1  ;;  %v6458_v43 = vadd.f32 %v6457_v35, %v6456_v62  ;;  %v6476_v45 = vadd.f32 %v6475_v49, %v6474_v31  ;;  %v6439_v44 = vmul.f32 %v12537_v24, %v12537_v24  ;;  %v13937_v31 = vld [vmem:[#allocation38_spill] sm:$0xff]  ;;  %v13947_v35 = vld [vmem:[#allocation43_spill] sm:$0xff]  ;;  %v13999_v60 = vld [vmem:[#allocation69_spill] sm:$0xff] }
 0x539   :  { %v6267_v18 = vadd.f32 %v6266_v34, %v6265_v1  ;;  %v6462_v6 = vadd.f32 %v6461_v61, %v6437_v11  ;;  %v6441_v41 = vmul.f32 %v12547_v4, %v12547_v4  ;;  %vm13928_vm0 = vnez %v13927_v9  ;;  %v13941_v1 = vld [vmem:[#allocation40_spill] sm:$0xff]  ;;  %v13969_v51 = vld [vmem:[#allocation54_spill] sm:$0xff] }
 0x53a   :  { %v6285_v48 = vadd.f32 %v6284_v33, %v6283_v32  ;;  %v6459_v17 = vrot.slane %v6458_v43, 1  ;;  %v6477_v2 = vrot.slane %v6476_v45, 1  ;;  %v6445_v42 = vadd.f32 %v6444_v46, %v6439_v44  ;;  %v13943_v32 = vld [vmem:[#allocation41_spill] sm:$0xff]  ;;  %v13957_v33 = vld [vmem:[#allocation48_spill] sm:$0xff]  ;;  %v13987_v46 = vld [vmem:[#allocation63_spill] sm:$0xff] }
 0x53b   :  { %6350 = vmatprep.mubr.f32.mxu0 %v6267_v18  ;;  %v6463_v62 = vadd.f32 %v6462_v6, %v6441_v41  ;;  %vm13940_vm15 = vnez %v13939_v7  ;;  %v13963_v18 = vld [vmem:[#allocation51_spill] sm:$0xff]  ;;  %v13973_v61 = vld [vmem:[#allocation56_spill] sm:$0xff]  ;;  %v13991_v6 = vld [vmem:[#allocation65_spill] sm:$0xff] }
 0x53c   :  { %6420 = vmatprep.mubr.f32.mxu1 %v6285_v48  ;;  %6351 = vmatmul.mubr.f32.vlgmr.msra.gmra.mxu0 %v6258_v50  ;;  %v6460_v56 = vadd.f32 %v6459_v17, %v6458_v43  ;;  %v6478_v57 = vadd.f32 %v6477_v2, %v6476_v45  ;;  %v6446_v49 = vrot.slane %v6445_v42, 4  ;;  %v13959_v43 = vld [vmem:[#allocation49_spill] sm:$0xff]  ;;  %v13961_v45 = vld [vmem:[#allocation50_spill] sm:$0xff]  ;;  %v13965_v50 = vld [vmem:[#allocation52_spill] sm:$0xff] }
 0x53d   :  { %6421 = vmatmul.mubr.f32.vlgmr.msra.gmra.mxu1 %v6276_v36  ;;  %8642 = vmatpush3.msk.msra.mxu0 %vm13771_vm12, %v13918_v16  ;;  %vm13942_vm12 = vnez %v13941_v1  ;;  %v6464_v34 = vrot.slane %v6463_v62, 4  ;;  %v13967_v17 = vld [vmem:[#allocation53_spill] sm:$0xff]  ;;  %v13971_v36 = vld [vmem:[#allocation55_spill] sm:$0xff]  ;;  %v13981_v11 = vld [vmem:[#allocation60_spill] sm:$0xff] }
 0x53e   :  { %8677 = vmatpush3.msk.msra.mxu1 %vm13772_vm8, %v13918_v16  ;;  %8643 = vmatprep.subr.msk.mxu0 %vm13773_vm10, %v13918_v16  ;;  %vm13930_vm8 = vnez %v13929_v22  ;;  %vm13932_vm10 = vnez %v13931_v30  ;;  %v6447_v48 = vadd.f32 %v6446_v49, %v6445_v42  ;;  %v13993_v44 = vld [vmem:[#allocation66_spill] sm:$0xff]  ;;  %v13997_v41 = vld [vmem:[#allocation68_spill] sm:$0xff]  ;;  %v14005_v42 = vld [vmem:[#allocation73_spill] sm:$0xff] }
 0x53f   :  { %6543 = vmatprep.mubr.f32.mxu0 %v6460_v56  ;;  %8678 = vmatprep.subr.msk.mxu1 %vm13774_vm14, %v13918_v16  ;;  %vm13938_vm14 = vnez %v13937_v31  ;;  %v6465_v2 = vadd.f32 %v6464_v34, %v6463_v62  ;;  %v13975_v56 = vld [vmem:[#allocation57_spill] sm:$0xff]  ;;  %v14001_v22 = vld [vmem:[#allocation70_spill] sm:$0xff]  ;;  %v14003_v30 = vld [vmem:[#allocation72_spill] sm:$0xff] }
 0x540   :  { %6613 = vmatprep.mubr.f32.mxu1 %v6478_v57  ;;  %8644 = vmatpush3.msk.msra.mxu0 %vm13775_vm13, %v13918_v16  ;;  %vm13944_vm13 = vnez %v13943_v32  ;;  %v13977_v57 = vld [vmem:[#allocation58_spill] sm:$0xff]  ;;  %v6448_v59 = vrot.slane %v6447_v48, 2  ;;  %v14011_v62 = vld [vmem:[#allocation75_spill] sm:$0xff]  ;;  %v14013_v7 = vld [vmem:[#allocation76_spill] sm:$0xff] }
 0x541   :  { %8679 = vmatpush3.msk.msra.mxu1 %vm13776_vm1, %v13918_v16  ;;  %8645 = vmatprep.subr.msk.mxu0 %vm13777_vm3, %v13918_v16  ;;  %vm13934_vm3 = vnez %v13933_v54  ;;  %vm13946_vm1 = vnez %v13945_v12  ;;  %v6466_v5 = vrot.slane %v6465_v2, 2  ;;  %v14007_v54 = vld [vmem:[#allocation71_spill] sm:$0xff]  ;;  %v14015_v1 = vld [vmem:[#allocation77_spill] sm:$0xff] }
 0x542   :  { %8680 = vmatprep.subr.msk.mxu1 %vm13779_vm9, %v13918_v16  ;;  %8646 = vmatpush3.msk.msra.mxu0 %vm13928_vm0, %v13918_v16  ;;  %vm13936_vm9 = vnez %v13935_v29  ;;  %vm13948_vm0 = vnez %v13947_v35  ;;  %v6449_v3 = vadd.f32 %v6448_v59, %v6447_v48  ;;  %v14009_v29 = vld [vmem:[#allocation74_spill] sm:$0xff]  ;;  %v14017_v12 = vld [vmem:[#allocation79_spill] sm:$0xff]  ;;  %v14019_v35 = vld [vmem:[#allocation80_spill] sm:$0xff] }
 0x543   :  { %8681 = vmatpush3.msk.msra.mxu1 %vm13930_vm8, %v13918_v16  ;;  %8647 = vmatprep.subr.msk.mxu0 %vm13932_vm10, %v13918_v16  ;;  %vm13950_vm8 = vnez %v13949_v25  ;;  %vm13952_vm10 = vnez %v13951_v53  ;;  %v6467_v9 = vadd.f32 %v6466_v5, %v6465_v2  ;;  %v14021_v49 = vld [vmem:[#allocation81_spill] sm:$0xff]  ;;  %v14031_v48 = vld [vmem:[#allocation8_spill] sm:$0xff]  ;;  %v14037_v2 = vld [vmem:[#allocation11_spill] sm:$0xff] }
 0x544   :  { %8682 = vmatprep.subr.msk.mxu1 %vm13934_vm3, %v13918_v16  ;;  %8648 = vmatpush3.msk.msra.mxu0 %vm13936_vm9, %v13918_v16  ;;  %vm13954_vm3 = vnez %v13953_v28  ;;  %vm13956_vm9 = vnez %v13955_v8  ;;  %v6450_v31 = vrot.slane %v6449_v3, 1  ;;  %v14051_v59 = vld [vmem:[#allocation18_spill] sm:$0xff]  ;;  %v14057_v5 = vld [vmem:[#allocation21_spill] sm:$0xff] }
 0x545   :  { %8683 = vmatpush3.msk.msra.mxu1 %vm13938_vm14, %v13918_v16  ;;  %8649 = vmatprep.subr.msk.mxu0 %vm13940_vm15, %v13918_v16  ;;  %vm13958_vm14 = vnez %v13957_v33  ;;  %vm13960_vm15 = vnez %v13959_v43  ;;  %v6468_v32 = vrot.slane %v6467_v9, 1  ;;  %v6626_v34 = vld [vmem:[%s12996_s4 + $0x2] sm:$0x1] }
 0x546   :  { %8684 = vmatprep.subr.msk.mxu1 %vm13942_vm12, %v13918_v16  ;;  %8650 = vmatpush3.msk.msra.mxu0 %vm13944_vm13, %v13918_v16  ;;  %vm13962_vm12 = vnez %v13961_v45  ;;  %vm13964_vm13 = vnez %v13963_v18  ;;  %v6451_v28 = vadd.f32 %v6450_v31, %v6449_v3  ;;  %v14029_v18 = vld [vmem:[#allocation7_spill] sm:$0xff] }
 0x547   :  { %8685 = vmatpush3.msk.msra.mxu1 %vm13946_vm1, %v13918_v16  ;;  %8651 = vmatprep.subr.msk.mxu0 %vm13948_vm0, %v13918_v16  ;;  %vm13966_vm1 = vnez %v13965_v50  ;;  %vm13968_vm0 = vnez %v13967_v17  ;;  %v6469_v43 = vadd.f32 %v6468_v32, %v6467_v9  ;;  %v14033_v50 = vld [vmem:[#allocation9_spill] sm:$0xff]  ;;  %v14035_v17 = vld [vmem:[#allocation10_spill] sm:$0xff] }
 0x548   :  { %8686 = vmatprep.subr.msk.mxu1 %vm13950_vm8, %v13918_v16  ;;  %8652 = vmatpush3.msk.msra.mxu0 %vm13952_vm10, %v13918_v16  ;;  %vm13970_vm8 = vnez %v13969_v51  ;;  %vm13972_vm10 = vnez %v13971_v36  ;;  %v14039_v51 = vld [vmem:[#allocation12_spill] sm:$0xff]  ;;  %v14041_v36 = vld [vmem:[#allocation13_spill] sm:$0xff] }
 0x549   :  { %8687 = vmatpush3.msk.msra.mxu1 %vm13954_vm3, %v13918_v16  ;;  %8653 = vmatprep.subr.msk.mxu0 %vm13956_vm9, %v13918_v16  ;;  %vm13974_vm3 = vnez %v13973_v61  ;;  %vm13976_vm9 = vnez %v13975_v56  ;;  %v14043_v61 = vld [vmem:[#allocation14_spill] sm:$0xff]  ;;  %v14045_v56 = vld [vmem:[#allocation15_spill] sm:$0xff] }
 0x54a   :  { %8688 = vmatprep.subr.msk.mxu1 %vm13958_vm14, %v13918_v16  ;;  %8654 = vmatpush3.msk.msra.mxu0 %vm13960_vm15, %v13918_v16  ;;  %vm13978_vm14 = vnez %v13977_v57  ;;  %vm13980_vm15 = vnez %v13979_v13  ;;  %v14047_v57 = vld [vmem:[#allocation16_spill] sm:$0xff]  ;;  %v14049_v13 = vld [vmem:[#allocation17_spill] sm:$0xff] }
 0x54b   :  { %8689 = vmatpush3.msk.msra.mxu1 %vm13962_vm12, %v13918_v16  ;;  %8655 = vmatprep.subr.msk.mxu0 %vm13964_vm13, %v13918_v16  ;;  %vm13982_vm12 = vnez %v13981_v11  ;;  %vm13984_vm13 = vnez %v13983_v26  ;;  %v14053_v11 = vld [vmem:[#allocation19_spill] sm:$0xff]  ;;  %v14055_v26 = vld [vmem:[#allocation20_spill] sm:$0xff] }
 0x54c   :  { %8690 = vmatprep.subr.msk.mxu1 %vm13966_vm1, %v13918_v16  ;;  %8656 = vmatpush3.msk.msra.mxu0 %vm13968_vm0, %v13918_v16  ;;  %vm13986_vm1 = vnez %v13985_v10  ;;  %vm13988_vm0 = vnez %v13987_v46  ;;  %v14059_v10 = vld [vmem:[#allocation22_spill] sm:$0xff]  ;;  %v14061_v46 = vld [vmem:[#allocation87_spill] sm:$0xff] }
 0x54d   :  { %8691 = vmatpush3.msk.msra.mxu1 %vm13970_vm8, %v13918_v16  ;;  %8657 = vmatprep.subr.msk.mxu0 %vm13972_vm10, %v13918_v16  ;;  %vm13990_vm8 = vnez %v13989_v55  ;;  %vm13992_vm10 = vnez %v13991_v6 }
 0x54e   :  { %8692 = vmatprep.subr.msk.mxu1 %vm13974_vm3, %v13918_v16  ;;  %8658 = vmatpush3.msk.msra.mxu0 %vm13976_vm9, %v13918_v16  ;;  %vm13994_vm3 = vnez %v13993_v44  ;;  %vm13996_vm9 = vnez %v13995_v19 }
 0x54f   :  { %8693 = vmatpush3.msk.msra.mxu1 %vm13978_vm14, %v13918_v16  ;;  %8659 = vmatprep.subr.msk.mxu0 %vm13980_vm15, %v13918_v16  ;;  %vm13998_vm14 = vnez %v13997_v41  ;;  %vm14000_vm15 = vnez %v13999_v60 }
 0x550   :  { %8694 = vmatprep.subr.msk.mxu1 %vm13982_vm12, %v13918_v16  ;;  %8660 = vmatpush3.msk.msra.mxu0 %vm13984_vm13, %v13918_v16  ;;  %vm14002_vm12 = vnez %v14001_v22  ;;  %vm14004_vm13 = vnez %v14003_v30 }
 0x551   :  { %8695 = vmatpush3.msk.msra.mxu1 %vm13986_vm1, %v13918_v16  ;;  %8661 = vmatprep.subr.msk.mxu0 %vm13988_vm0, %v13918_v16  ;;  %vm14006_vm1 = vnez %v14005_v42  ;;  %vm14008_vm0 = vnez %v14007_v54 }
 0x552   :  { %8696 = vmatprep.subr.msk.mxu1 %vm13990_vm8, %v13918_v16  ;;  %8662 = vmatpush3.msk.msra.mxu0 %vm13992_vm10, %v13918_v16  ;;  %vm14010_vm8 = vnez %v14009_v29  ;;  %vm14012_vm10 = vnez %v14011_v62 }
 0x553   :  { %8697 = vmatpush3.msk.msra.mxu1 %vm13994_vm3, %v13918_v16  ;;  %8663 = vmatprep.subr.msk.mxu0 %vm13996_vm9, %v13918_v16  ;;  %vm14014_vm3 = vnez %v14013_v7  ;;  %vm14016_vm9 = vnez %v14015_v1 }
 0x554   :  { %8698 = vmatprep.subr.msk.mxu1 %vm13998_vm14, %v13918_v16  ;;  %8664 = vmatpush3.msk.msra.mxu0 %vm14000_vm15, %v13918_v16  ;;  %vm14018_vm14 = vnez %v14017_v12  ;;  %vm14020_vm15 = vnez %v14019_v35  ;;  %v6622_v35 = vld [vmem:[%s12996_s4 + $0x1] sm:$0x1]  ;;  %s9419_s4 = smov 64  }
 0x555   :  { %8699 = vmatpush3.msk.msra.mxu1 %vm14002_vm12, %v13918_v16  ;;  %8665 = vmatprep.subr.msk.mxu0 %vm14004_vm13, %v13918_v16  ;;  %vm14022_vm12 = vnez %v14021_v49  ;;  %vm14042_vm13 = vnez %v14041_v36 }
 0x556   :  { %8700 = vmatprep.subr.msk.mxu1 %vm14006_vm1, %v13918_v16  ;;  %8666 = vmatpush3.msk.msra.mxu0 %vm14008_vm0, %v13918_v16  ;;  %vm14044_vm1 = vnez %v14043_v61  ;;  %vm14046_vm0 = vnez %v14045_v56 }
 0x557   :  { %8701 = vmatpush3.msk.msra.mxu1 %vm14010_vm8, %v13918_v16  ;;  %8667 = vmatprep.subr.msk.mxu0 %vm14012_vm10, %v13918_v16  ;;  %vm14048_vm8 = vnez %v14047_v57  ;;  %vm14050_vm10 = vnez %v14049_v13 }
 0x558   :  { %8702 = vmatprep.subr.msk.mxu1 %vm14014_vm3, %v13918_v16  ;;  %8668 = vmatpush3.msk.msra.mxu0 %vm14016_vm9, %v13918_v16  ;;  %vm14052_vm3 = vnez %v14051_v59  ;;  %vm14054_vm9 = vnez %v14053_v11 }
 0x559   :  { %8703 = vmatpush3.msk.msra.mxu1 %vm14018_vm14, %v13918_v16  ;;  %8669 = vmatprep.subr.msk.mxu0 %vm14020_vm15, %v13918_v16  ;;  %vm14056_vm14 = vnez %v14055_v26  ;;  %vm14058_vm15 = vnez %v14057_v5 }
 0x55a   :  { %8704 = vmatprep.subr.msk.mxu1 %vm14022_vm12, %v13918_v16  ;;  %8670 = vmatpush3.msk.msra.mxu0 %vm13877_vm7, %v13918_v16  ;;  %vm14036_vm7 = vnez %v14035_v17  ;;  %vm14060_vm12 = vnez %v14059_v10 }
 0x55b   :  { %8705 = vmatpush3.msk.msra.mxu1 %vm13879_vm5, %v13918_v16  ;;  %8671 = vmatprep.subr.msk.mxu0 %vm13881_vm4, %v13918_v16  ;;  %vm14030_vm5 = vnez %v14029_v18  ;;  %vm14032_vm4 = vnez %v14031_v48 }
 0x55c   :  { %8706 = vmatprep.subr.msk.mxu1 %vm13883_vm6, %v13918_v16  ;;  %8672 = vmatpush3.msk.msra.mxu0 %vm13885_vm2, %v13918_v16  ;;  %vm14034_vm6 = vnez %v14033_v50  ;;  %vm14040_vm2 = vnez %v14039_v51 }
 0x55d   :  { %8707 = vmatpush3.msk.msra.mxu1 %vm13887_vm11, %v13918_v16  ;;  %6544 = vmatmul.mubr.f32.vlgmr.msra.gmra.mxu0 %v6451_v28  ;;  %vm14038_vm11 = vnez %v14037_v2 }
 0x55e   :  { %6614 = vmatmul.mubr.f32.vlgmr.msra.gmra.mxu1 %v6469_v43  ;;  %8393 = vmatprep.subr.msk.mxu0 %vm14030_vm5, %v13918_v16 }
 0x55f   :  { %8402 = vmatprep.subr.msk.mxu1 %vm14032_vm4, %v13918_v16  ;;  %8394 = vmatpush1.msk.msra.mxu0 %vm14034_vm6, %v13918_v16 }
 0x560   :  { %8403 = vmatpush1.msk.msra.mxu1 %vm14036_vm7, %v13918_v16  ;;  %8395 = vmatprep.subr.msk.mxu0 %vm14038_vm11, %v13918_v16 }
 0x561   :  { %8404 = vmatprep.subr.msk.mxu1 %vm14040_vm2, %v13918_v16  ;;  %8396 = vmatpush1.msk.msra.mxu0 %vm14042_vm13, %v13918_v16 }
 0x562   :  { %8405 = vmatpush1.msk.msra.mxu1 %vm14044_vm1, %v13918_v16  ;;  %8397 = vmatprep.subr.msk.mxu0 %vm14046_vm0, %v13918_v16 }
 0x563   :  { %8406 = vmatprep.subr.msk.mxu1 %vm14048_vm8, %v13918_v16  ;;  %8398 = vmatpush1.msk.msra.mxu0 %vm14050_vm10, %v13918_v16 }
 0x564   :  { %8407 = vmatpush1.msk.msra.mxu1 %vm14052_vm3, %v13918_v16  ;;  %8399 = vmatprep.subr.msk.mxu0 %vm14054_vm9, %v13918_v16 }
 0x565   :  { %8408 = vmatprep.subr.msk.mxu1 %vm14056_vm14, %v13918_v16  ;;  %8400 = vmatpush1.msk.msra.mxu0 %vm14058_vm15, %v13918_v16 }
 0x566   :  { %8409 = vmatpush1.msk.msra.mxu1 %vm14060_vm12, %v13918_v16  ;;  %6696 = vmatprep.mubr.f32.mxu0 %v14061_v46 }
 0x567   :  { %6767 = vmatprep.mubr.f32.mxu1 %v14061_v46  ;;  %8411 = vmatprep.subr.msk.mxu0 %vm14030_vm5, %v13918_v16  ;;  %vm14062_vm5 = vcmask 261120  }
 0x568   :  { %8420 = vmatprep.subr.msk.mxu1 %vm14032_vm4, %v13918_v16  ;;  %vm14063_vm4 = vmmov %vm14062_vm5 }
 0x5fc   :  { %v8603_v55 = vpop.f32.mrf.mxu0 }
 0x5fd   :  { %v8638_v6 = vpop.f32.mrf.mxu1 }
 0x5fe   :  { %v8604_v44 = vpop.f32.mrf.mxu0 }
 0x5ff   :  { %v8639_v19 = vpop.f32.mrf.mxu1  ;;  %v8605_v3 = vadd.f32 %v8604_v44, %v8603_v55 }
 0x600   :  { %v8640_v41 = vadd.f32 %v8639_v19, %v8638_v6 }
 0x602   :  { %v6423_v60 = vadd.f32 %v8640_v41, %v8605_v3 }
 0x604   :  { %v6426_v29 = vmul.f32 0.001953125, %v6423_v60 }
 0x606   :  { %v6620_v7 = vmul.f32 %v6426_v29, %v6426_v29 }
 0x61d   :  { %v8673_v9 = vpop.f32.mrf.mxu0 }
 0x61e   :  { %v8708_v22 = vpop.f32.mrf.mxu1 }
 0x61f   :  { %v8674_v30 = vpop.f32.mrf.mxu0 }
 0x620   :  { %v8675_v42 = vadd.f32 %v8674_v30, %v8673_v9  ;;  %v8709_v54 = vpop.f32.mrf.mxu1 }
 0x621   :  { %v8710_v62 = vadd.f32 %v8709_v54, %v8708_v22 }
 0x623   :  { %v6616_v31 = vadd.f32 %v8710_v62, %v8675_v42 }
 0x625   :  { %v6619_v1 = vmul.f32 0.001953125, %v6616_v31 }
 0x627   :  { %v6621_v32 = vsub.f32 %v6619_v1, %v6620_v7 }
 0x629   :  { %v6623_v12 = vadd.f32 1e-05, %v6621_v32 }
 0x62b   :  { %9385 = vrsqrt.f32 %v6623_v12 }
 0x638   :  { %v9386_v49 = vpop.eup %9385 }
 0x639   :  { %v6625_v25 = vmul.f32 %v9386_v49, %v6622_v35 }
 0x63b   :  { %8401 = vmatmul.mubr.msk.f32.vlgmr.msra.gmra.mxu0 %vm14062_vm5, %v6625_v25  ;;  %8410 = vmatmul.mubr.msk.f32.vlgmr.msra.gmra.mxu1 %vm14063_vm4, %v6625_v25  ;;  %v6627_v53 = vmul.f32 %v6625_v25, %v6426_v29 }
 0x63c   :  { %8412 = vmatpush1.msk.msra.mxu0 %vm14034_vm6, %v13918_v16  ;;  %8421 = vmatpush1.msk.msra.mxu1 %vm14036_vm7, %v13918_v16  ;;  %vm14064_vm6 = vmmov %vm14063_vm4 }
 0x63d   :  { %8413 = vmatprep.subr.msk.mxu0 %vm14038_vm11, %v13918_v16  ;;  %8422 = vmatprep.subr.msk.mxu1 %vm14040_vm2, %v13918_v16  ;;  %v6628_v28 = vsub.f32 %v6626_v34, %v6627_v53  ;;  %vm14065_vm7 = vmmov %vm14063_vm4  ;;  %vm9422_vm11 = vmmov 0   ;;  %vm7163_vm2 = vcmask 1041409  }
 0x63e   :  { %8414 = vmatpush1.msk.msra.mxu0 %vm14042_vm13, %v13918_v16  ;;  %8423 = vmatpush1.msk.msra.mxu1 %vm14044_vm1, %v13918_v16  ;;  %vm14066_vm13 = vmmov %vm14063_vm4  ;;  %vm7237_vm1 = vcmask 74752  }
 0x63f   :  { %8415 = vmatprep.subr.msk.mxu0 %vm14046_vm0, %v13918_v16  ;;  %8424 = vmatprep.subr.msk.mxu1 %vm14048_vm8, %v13918_v16 }
 0x640   :  { %8416 = vmatpush1.msk.msra.mxu0 %vm14050_vm10, %v13918_v16  ;;  %8425 = vmatpush1.msk.msra.mxu1 %vm14052_vm3, %v13918_v16 }
 0x641   :  { %8417 = vmatprep.subr.msk.mxu0 %vm14054_vm9, %v13918_v16  ;;  %8426 = vmatprep.subr.msk.mxu1 %vm14056_vm14, %v13918_v16 }
 0x642   :  { %8418 = vmatpush1.msk.msra.mxu0 %vm14058_vm15, %v13918_v16  ;;  %6873 = vmatprep.mubr.f32.mxu0 %v14061_v46 }
 0x643   :  { %8427 = vmatpush1.msk.msra.mxu1 %vm14060_vm12, %v13918_v16  ;;  %6944 = vmatprep.mubr.f32.mxu1 %v14061_v46 }
 0x644   :  { %8419 = vmatmul.mubr.msk.f32.vlgmr.msra.gmra.mxu0 %vm14064_vm6, %v6628_v28  ;;  %8428 = vmatmul.mubr.msk.f32.vlgmr.msra.gmra.mxu1 %vm14065_vm7, %v6628_v28 }
 0x645   :  { %8716 = vmatprep.subr.mxu0 %v14061_v46  ;;  %8724 = vmatprep.mubr.msk.f32.mxu0 %vm9422_vm11, %v14061_v46 }
 0x6fb   :  { %v6698_v8 = vpop.f32.mrf.mxu0  ;;  %v6769_v33 = vpop.f32.mrf.mxu1 }
 0x6fc   :  { %v6777_v43 = vrot.slane %v6698_v8, %v13913_v39  ;;  %v6785_v45 = vrot.slane %v6769_v33, %v13913_v39 }
 0x6fd   :  { %v6700_v18 = vpop.f32.mrf.mxu0  ;;  %v6771_v48 = vpop.f32.mrf.mxu1 }
 0x6fe   :  { %v6790_v50 = vmul.f32 %v6777_v43, %v12515_v23  ;;  %v6794_v16 = vmul.f32 %v6777_v43, %v12517_v38  ;;  %v6798_v17 = vmul.f32 %v6777_v43, %v12528_v20  ;;  %v6802_v36 = vmul.f32 %v6777_v43, %v12537_v24 }
 0x6ff   :  { %v6792_v61 = vmul.f32 %v6785_v45, %v12520_v14  ;;  %v6796_v13 = vmul.f32 %v6785_v45, %v12522_v37  ;;  %v6800_v59 = vmul.f32 %v6785_v45, %v12532_v21  ;;  %v6804_v23 = vmul.f32 %v6785_v45, %v12547_v4 }
 0x700   :  { %v6781_v38 = vrot.slane %v6700_v18, %v13913_v39 }
 0x702   :  { %v6791_v37 = vmul.f32 %v6781_v38, %v12540_v0  ;;  %v6795_v21 = vmul.f32 %v6781_v38, %v12542_v27  ;;  %v6799_v60 = vmul.f32 %v6781_v38, %v12544_v47  ;;  %v6803_v9 = vmul.f32 %v6781_v38, %v12555_v15 }
 0x704   :  { %v6875_v2 = vpop.f32.mrf.mxu0  ;;  %v6946_v51 = vpop.f32.mrf.mxu1 }
 0x705   :  { %v6954_v56 = vrot.slane %v6875_v2, %v13913_v39  ;;  %v6962_v57 = vrot.slane %v6946_v51, %v13913_v39 }
 0x706   :  { %v6877_v11 = vpop.f32.mrf.mxu0  ;;  %v6948_v8 = vpop.f32.mrf.mxu1 }
 0x707   :  { %v6967_v20 = vadd.f32 %v6954_v56, %v6790_v50  ;;  %v6971_v26 = vadd.f32 %v6954_v56, %v6794_v16  ;;  %v6975_v5 = vadd.f32 %v6954_v56, %v6798_v17  ;;  %v6979_v10 = vadd.f32 %v6954_v56, %v6802_v36 }
 0x708   :  { %v6969_v24 = vadd.f32 %v6962_v57, %v6792_v61  ;;  %v6973_v55 = vadd.f32 %v6962_v57, %v6796_v13  ;;  %v6977_v14 = vadd.f32 %v6962_v57, %v6800_v59  ;;  %v6981_v6 = vadd.f32 %v6962_v57, %v6804_v23 }
 0x709   :  { %v6983_v44 = vmax.f32 %v6967_v20, %v6971_v26  ;;  %v7011_v19 = vmax.f32 %v6975_v5, %v6979_v10  ;;  %v6958_v3 = vrot.slane %v6877_v11, %v13913_v39  ;;  %v6789_v50 = vrot.slane %v6771_v48, %v13913_v39 }
 0x70a   :  { %v6997_v4 = vmax.f32 %v6969_v24, %v6973_v55  ;;  %v7025_v41 = vmax.f32 %v6977_v14, %v6981_v6  ;;  %v6966_v16 = vrot.slane %v6948_v8, %v13913_v39 }
 0x70b   :  { %v6984_v22 = vrot.slane %v6983_v44, 4  ;;  %v7012_v30 = vrot.slane %v7011_v19, 4  ;;  %v6968_v42 = vadd.f32 %v6958_v3, %v6791_v37  ;;  %v6972_v54 = vadd.f32 %v6958_v3, %v6795_v21 }
 0x70c   :  { %v6976_v29 = vadd.f32 %v6958_v3, %v6799_v60  ;;  %v6980_v62 = vadd.f32 %v6958_v3, %v6803_v9  ;;  %v6998_v31 = vrot.slane %v6997_v4, 4  ;;  %v7026_v7 = vrot.slane %v7025_v41, 4 }
 0x70d   :  { %v7013_v1 = vmax.f32 %v7011_v19, %v7012_v30  ;;  %v6985_v32 = vmax.f32 %v6983_v44, %v6984_v22  ;;  %v6990_v35 = vmax.f32 %v6968_v42, %v6972_v54  ;;  %v6793_v56 = vmul.f32 %v6789_v50, %v12549_v40  ;;  %v7152_v22 = vld [vmem:[%s12997_s5 + $0x18] sm:$0xff] }
 0x70e   :  { %v7018_v27 = vmax.f32 %v6976_v29, %v6980_v62  ;;  %v6999_v53 = vmax.f32 %v6997_v4, %v6998_v31  ;;  %v7027_v47 = vmax.f32 %v7025_v41, %v7026_v7  ;;  %v6797_v48 = vmul.f32 %v6789_v50, %v12551_v63  ;;  %8717 = vmatpush3.msra.mxu0 %v7152_v22  ;;  %v7151_v62 = vld [vmem:[%s12997_s5 + $0x10] sm:$0xff]  ;;  %v7150_v31 = vld [vmem:[%s12997_s5 + $0x8] sm:$0xff]  ;;  %v7149_v7 = vld [vmem:[%s12997_s5] sm:$0xff] }
 0x70f   :  { %v7014_v12 = vrot.slane %v7013_v1, 2  ;;  %v6986_v0 = vrot.slane %v6985_v32, 2  ;;  %v6991_v15 = vrot.slane %v6990_v35, 4  ;;  %v6801_v57 = vmul.f32 %v6789_v50, %v12553_v58  ;;  %8718 = vmatprep.subr.mxu0 %v14061_v46  ;;  %v8429_v22 = vld [vmem:[%s12998_s6] ss:$0 sm:$0xff] }
 0x710   :  { %v7019_v28 = vrot.slane %v7018_v27, 4  ;;  %v7000_v45 = vrot.slane %v6999_v53, 2  ;;  %v7028_v18 = vrot.slane %v7027_v47, 2  ;;  %v6805_v13 = vmul.f32 %v6789_v50, %v12563_v52  ;;  %8719 = vmatpush3.msra.mxu0 %v7151_v62 }
 0x711   :  { %v7015_v49 = vmax.f32 %v7013_v1, %v7014_v12  ;;  %v6987_v25 = vmax.f32 %v6985_v32, %v6986_v0  ;;  %v6992_v17 = vmax.f32 %v6990_v35, %v6991_v15  ;;  %v6970_v39 = vadd.f32 %v6966_v16, %v6793_v56  ;;  %8720 = vmatprep.subr.mxu0 %v14061_v46 }
 0x712   :  { %v7001_v51 = vmax.f32 %v6999_v53, %v7000_v45  ;;  %v7029_v36 = vmax.f32 %v7027_v47, %v7028_v18  ;;  %v7020_v61 = vmax.f32 %v7018_v27, %v7019_v28  ;;  %v6974_v59 = vadd.f32 %v6966_v16, %v6797_v48  ;;  %8721 = vmatpush3.msra.mxu0 %v7150_v31 }
 0x713   :  { %v7016_v34 = vrot.slane %v7015_v49, 1  ;;  %v6988_v43 = vrot.slane %v6987_v25, 1  ;;  %v6978_v23 = vadd.f32 %v6966_v16, %v6801_v57  ;;  %v6982_v38 = vadd.f32 %v6966_v16, %v6805_v13  ;;  %8722 = vmatprep.subr.mxu0 %v14061_v46 }
 0x714   :  { %v7002_v11 = vrot.slane %v7001_v51, 1  ;;  %v7030_v20 = vrot.slane %v7029_v36, 1  ;;  %v7021_v26 = vrot.slane %v7020_v61, 2  ;;  %v6993_v40 = vrot.slane %v6992_v17, 2  ;;  %8723 = vmatpush3.msra.mxu0 %v7149_v7 }
 0x715   :  { %v12915_v33 = vmax.f32 %v7015_v49, %v7016_v34  ;;  %v12923_v2 = vmax.f32 %v6987_v25, %v6988_v43  ;;  %v7004_v63 = vmax.f32 %v6970_v39, %v6974_v59  ;;  %v7032_v58 = vmax.f32 %v6978_v23, %v6982_v38 }
 0x716   :  { %v12937_v52 = vmax.f32 %v7001_v51, %v7002_v11  ;;  %v12939_v5 = vmax.f32 %v7029_v36, %v7030_v20  ;;  %v7022_v10 = vmax.f32 %v7020_v61, %v7021_v26  ;;  %v6994_v24 = vmax.f32 %v6992_v17, %v6993_v40 }
 0x717   :  { %7051 = vrot.lane.b32.xlu1 %v12915_v33, %s9419_s4  ;;  %7043 = vrot.lane.b32.xlu0 %v12915_v33, %s9420_s9  ;;  %v7005_v55 = vrot.slane %v7004_v63, 4  ;;  %v7033_v14 = vrot.slane %v7032_v58, 4 }
 0x718   :  { %v7023_v6 = vrot.slane %v7022_v10, 1  ;;  %v6995_v44 = vrot.slane %v6994_v24, 1 }
 0x719   :  { %v7034_v37 = vmax.f32 %v7032_v58, %v7033_v14  ;;  %v7006_v21 = vmax.f32 %v7004_v63, %v7005_v55 }
 0x71a   :  { %v7024_v19 = vmax.f32 %v7022_v10, %v7023_v6  ;;  %v6996_v3 = vmax.f32 %v6994_v24, %v6995_v44 }
 0x71b   :  { %7049 = vrot.lane.b32.xlu1 %v12923_v2, %s9419_s4  ;;  %7041 = vrot.lane.b32.xlu0 %v12923_v2, %s9420_s9  ;;  %v7035_v4 = vrot.slane %v7034_v37, 2  ;;  %v7007_v41 = vrot.slane %v7006_v21, 2 }
 0x71d   :  { %v7036_v60 = vmax.f32 %v7034_v37, %v7035_v4  ;;  %v7008_v9 = vmax.f32 %v7006_v21, %v7007_v41 }
 0x71f   :  { %7057 = vrot.lane.b32.xlu1 %v12923_v2, %s9421_s1  ;;  %7059 = vrot.lane.b32.xlu0 %v12915_v33, %s9421_s1  ;;  %v7037_v30 = vrot.slane %v7036_v60, 1  ;;  %v7009_v42 = vrot.slane %v7008_v9, 1 }
 0x721   :  { %v7038_v54 = vmax.f32 %v7036_v60, %v7037_v30  ;;  %v7010_v29 = vmax.f32 %v7008_v9, %v7009_v42 }
 0x723   :  { %7097 = vrot.lane.b32.xlu1 %v12937_v52, %s9420_s9  ;;  %7099 = vrot.lane.b32.xlu0 %v12939_v5, %s9420_s9 }
 0x727   :  { %7105 = vrot.lane.b32.xlu1 %v12937_v52, %s9419_s4  ;;  %7107 = vrot.lane.b32.xlu0 %v12939_v5, %s9419_s4 }
 0x72b   :  { %7071 = vrot.lane.b32.xlu0 %v7024_v19, %s9420_s9  ;;  %7069 = vrot.lane.b32.xlu1 %v6996_v3, %s9420_s9 }
 0x72f   :  { %7079 = vrot.lane.b32.xlu0 %v7024_v19, %s9419_s4  ;;  %7077 = vrot.lane.b32.xlu1 %v6996_v3, %s9419_s4 }
 0x733   :  { %7087 = vrot.lane.b32.xlu0 %v7024_v19, %s9421_s1  ;;  %7085 = vrot.lane.b32.xlu1 %v6996_v3, %s9421_s1 }
 0x737   :  { %7115 = vrot.lane.b32.xlu0 %v12939_v5, %s9421_s1  ;;  %7113 = vrot.lane.b32.xlu1 %v12937_v52, %s9421_s1 }
 0x73b   :  { %7127 = vrot.lane.b32.xlu0 %v7038_v54, %s9420_s9  ;;  %7125 = vrot.lane.b32.xlu1 %v7010_v29, %s9420_s9 }
 0x73f   :  { %7135 = vrot.lane.b32.xlu0 %v7038_v54, %s9419_s4  ;;  %7133 = vrot.lane.b32.xlu1 %v7010_v29, %s9419_s4 }
 0x743   :  { %7143 = vrot.lane.b32.xlu0 %v7038_v54, %s9421_s1  ;;  %7141 = vrot.lane.b32.xlu1 %v7010_v29, %s9421_s1 }
 0x789   :  { %v7052_v1 = vpop.permute.xlu1 %7051  ;;  %v7044_v32 = vpop.permute.xlu0 %7043 }
 0x78a   :  { %v7048_v47 = vmax.f32 %v12915_v33, %v7044_v32 }
 0x78c   :  { %v7056_v28 = vmax.f32 %v7048_v47, %v7052_v1 }
 0x78d   :  { %v7050_v12 = vpop.permute.xlu1 %7049  ;;  %v7042_v0 = vpop.permute.xlu0 %7041 }
 0x78e   :  { %v7047_v49 = vmax.f32 %v12923_v2, %v7042_v0 }
 0x790   :  { %v7055_v34 = vmax.f32 %v7047_v49, %v7050_v12 }
 0x791   :  { %v7058_v35 = vpop.permute.xlu1 %7057  ;;  %v7060_v27 = vpop.permute.xlu0 %7059 }
 0x792   :  { %v7063_v8 = vmax.f32 %v7055_v34, %v7058_v35  ;;  %v7064_v43 = vmax.f32 %v7056_v28, %v7060_v27 }
 0x794   :  { %v7066_v50 = vmax.f32 %v7064_v43, %v7024_v19  ;;  %v7065_v16 = vmax.f32 %v7063_v8, %v6996_v3 }
 0x795   :  { %v7098_v25 = vpop.permute.xlu1 %7097  ;;  %v7100_v53 = vpop.permute.xlu0 %7099 }
 0x799   :  { %v7106_v15 = vpop.permute.xlu1 %7105  ;;  %v7108_v46 = vpop.permute.xlu0 %7107 }
 0x79d   :  { %v7072_v45 = vpop.permute.xlu0 %7071  ;;  %v7070_v18 = vpop.permute.xlu1 %7069 }
 0x79e   :  { %v7076_v36 = vmax.f32 %v7066_v50, %v7072_v45  ;;  %v7075_v61 = vmax.f32 %v7065_v16, %v7070_v18 }
 0x7a1   :  { %v7080_v17 = vpop.permute.xlu0 %7079  ;;  %v7078_v51 = vpop.permute.xlu1 %7077 }
 0x7a2   :  { %v7084_v56 = vmax.f32 %v7076_v36, %v7080_v17  ;;  %v7083_v2 = vmax.f32 %v7075_v61, %v7078_v51 }
 0x7a5   :  { %v7088_v48 = vpop.permute.xlu0 %7087  ;;  %v7086_v57 = vpop.permute.xlu1 %7085 }
 0x7a6   :  { %v7092_v13 = vmax.f32 %v7084_v56, %v7088_v48  ;;  %v7091_v33 = vmax.f32 %v7083_v2, %v7086_v57 }
 0x7a8   :  { %v7094_v39 = vmax.f32 %v7092_v13, %v12939_v5  ;;  %v7093_v59 = vmax.f32 %v7091_v33, %v12937_v52 }
 0x7a9   :  { %v7116_v23 = vpop.permute.xlu0 %7115  ;;  %v7114_v38 = vpop.permute.xlu1 %7113 }
 0x7aa   :  { %v7104_v11 = vmax.f32 %v7094_v39, %v7100_v53  ;;  %v7103_v20 = vmax.f32 %v7093_v59, %v7098_v25 }
 0x7ac   :  { %v7112_v26 = vmax.f32 %v7104_v11, %v7108_v46  ;;  %v7111_v40 = vmax.f32 %v7103_v20, %v7106_v15 }
 0x7ad   :  { %v7128_v63 = vpop.permute.xlu0 %7127  ;;  %v7126_v58 = vpop.permute.xlu1 %7125 }
 0x7ae   :  { %v7120_v10 = vmax.f32 %v7112_v26, %v7116_v23  ;;  %v7119_v24 = vmax.f32 %v7111_v40, %v7114_v38 }
 0x7b0   :  { %v7122_v55 = vmax.f32 %v7120_v10, %v7038_v54  ;;  %v7121_v14 = vmax.f32 %v7119_v24, %v7010_v29 }
 0x7b1   :  { %v7136_v6 = vpop.permute.xlu0 %7135  ;;  %v7134_v44 = vpop.permute.xlu1 %7133 }
 0x7b2   :  { %v7132_v19 = vmax.f32 %v7122_v55, %v7128_v63  ;;  %v7131_v3 = vmax.f32 %v7121_v14, %v7126_v58 }
 0x7b4   :  { %v7140_v37 = vmax.f32 %v7132_v19, %v7136_v6  ;;  %v7139_v5 = vmax.f32 %v7131_v3, %v7134_v44 }
 0x7b5   :  { %v7144_v21 = vpop.permute.xlu0 %7143  ;;  %v7142_v52 = vpop.permute.xlu1 %7141 }
 0x7b6   :  { %v7148_v4 = vmax.f32 %v7140_v37, %v7144_v21  ;;  %v7147_v60 = vmax.f32 %v7139_v5, %v7142_v52 }
 0x7b8   :  { %v7162_v41 = vrot.slane %v7148_v4, 7 }
 0x7ba   :  { %v7164_v9 = vsel %vm7163_vm2, %v7162_v41, %v7147_v60 }
 0x7bb   :  { %8725 = vmatmul.mubr.msk.f32.vlgmr.msra.gmra.mxu0 %vm14066_vm13, %v7164_v9 }
 0x87b   :  { %v7233_v30 = vpop.f32.mrf.mxu0 }
 0x87c   :  { %v7234_v42 = vadd.f32 %v8429_v22, %v7233_v30 }
 0x87d   :  { %v8726_v54 = vpop.f32.mrf.mxu0 }
 0x87e   :  { %7238 = vst.msk [vmem:[#allocation4] sm:$0x3] %vm7237_vm1, %v7234_v42 }
 0x87f   :  { %9405 = shalt.err (!%p9402_p4)
}
 0x880   :  { %7248 = dma.vmem_to_hbm [thread:$0]  %s7246_s19, 32, %s12999_s7, [#allocation5]  }
 0x881   :  { %9414 = dma.done.wait [#allocation5], 32  }
 0x882   :  { %9415 = vsyncadd [#allocation5], 4294967264 }
 0x883   :  { %7252 = vsyncpa [#allocation5], 1 }

</bundles_post_ra>
